<compile_context>
chip_gen: v6e
topology: v6e:2x2x1
jax: 0.10.0
libtpu: 0.0.40
codegen_flags: <defaults>
</compile_context>

<pallas_src>
import functools

import jax
import jax.numpy as jnp
from jax.experimental import pallas as pl
from jax.experimental.pallas import tpu as pltpu

_VMEM_LIMIT = 32 * 1024 * 1024     # explicit, portable across v5e / v6e / v7x
_BN_EPS = 1e-5


# ----------------------------------------------------------------------------
# Fused kernel: [previous layer's BN-affine + LeakyReLU on the input tile]
#   -> stride-1 conv as one MXU matmul per kh row (K = kw*cin, bf16 operands,
#      f32 accumulation) -> +bias -> per-grid-step partial sum / sum-of-squares
#      for this layer's BatchNorm statistics.
# ----------------------------------------------------------------------------
def _fused_conv_kernel(x_ref, scale_ref, shift_ref, w_ref, b_ref,
                       y_ref, psum_ref, pssq_ref,
                       *, kh_size, kw_size, ho, wo,
                       apply_input_act, neg_slope):
    hp, wp, cin = x_ref.shape[1], x_ref.shape[2], x_ref.shape[3]
    cout = w_ref.shape[-1]

    x = x_ref[...].reshape(hp, wp, cin)                 # f32 pre-activation
    if apply_input_act:
        # Previous layer's BatchNorm affine + LeakyReLU, fused here (saves a
        # full HBM round-trip per layer).  All in f32 (safe on v5e too).
        s = scale_ref[...].reshape(1, 1, cin)
        t = shift_ref[...].reshape(1, 1, cin)
        z = x * s + t
        x = jnp.where(z >= 0, z, neg_slope * z)
    xb = x.astype(jnp.bfloat16)                         # MXU operands in bf16

    acc = jnp.zeros((ho * wo, cout), jnp.float32)
    for kh in range(kh_size):
        rows = xb[kh:kh + ho]                           # (ho, wp, cin)
        taps = [rows[:, kw:kw + wo, :] for kw in range(kw_size)]
        patch = taps[0] if kw_size == 1 else jnp.concatenate(taps, axis=-1)
        patch = patch.reshape(ho * wo, kw_size * cin)   # im2col of kw taps
        acc += jnp.dot(patch, w_ref[kh],                # (kw*cin, cout) bf16
                       preferred_element_type=jnp.float32)

    acc = acc + b_ref[...]                              # conv bias, f32
    y_ref[...] = acc.reshape(1, ho, wo, cout)
    psum_ref[...] = jnp.sum(acc, axis=0, keepdims=True).reshape(1, 1, cout)
    pssq_ref[...] = jnp.sum(acc * acc, axis=0, keepdims=True).reshape(1, 1, cout)


def _fused_conv(xp, scale_in, shift_in, w_flat, bias, *, ho, wo,
                apply_input_act, neg_slope):
    n, hp, wp, cin = xp.shape
    kh_e, kwc, cout = w_flat.shape
    kw_e = kwc // cin

    kern = functools.partial(_fused_conv_kernel, kh_size=kh_e, kw_size=kw_e,
                             ho=ho, wo=wo, apply_input_act=apply_input_act,
                             neg_slope=neg_slope)
    y, psum, pssq = pl.pallas_call(
        kern,
        out_shape=(jax.ShapeDtypeStruct((n, ho, wo, cout), jnp.float32),
                   jax.ShapeDtypeStruct((n, 1, cout), jnp.float32),
                   jax.ShapeDtypeStruct((n, 1, cout), jnp.float32)),
        grid=(n,),
        in_specs=[
            pl.BlockSpec((1, hp, wp, cin), lambda i: (i, 0, 0, 0)),
            pl.BlockSpec((1, cin), lambda i: (0, 0)),
            pl.BlockSpec((1, cin), lambda i: (0, 0)),
            pl.BlockSpec((kh_e, kwc, cout), lambda i: (0, 0, 0)),
            pl.BlockSpec((1, cout), lambda i: (0, 0)),
        ],
        out_specs=(
            pl.BlockSpec((1, ho, wo, cout), lambda i: (i, 0, 0, 0)),
            pl.BlockSpec((1, 1, cout), lambda i: (i, 0, 0)),   # partial sums
            pl.BlockSpec((1, 1, cout), lambda i: (i, 0, 0)),   # -> no resident
        ),                                                     #    accumulator
        compiler_params=pltpu.CompilerParams(
            dimension_semantics=("parallel",),
            vmem_limit_bytes=_VMEM_LIMIT),
    )(xp, scale_in, shift_in, w_flat, bias)
    return y, psum, pssq


# ----------------------------------------------------------------------------
# Space-to-depth rewrite of stride-2 convolutions (stride-1 in-kernel access).
# ----------------------------------------------------------------------------
def _space_to_depth(xp):
    """(n,H,W,c) -> (n,ceil(H/2),ceil(W/2),4c); 2x2 pixel blocks folded into
    channels in (row-parity, col-parity, channel) order."""
    n, h, w, c = xp.shape
    if h % 2:
        xp = jnp.pad(xp, ((0, 0), (0, 1), (0, 0), (0, 0)))
    if w % 2:
        xp = jnp.pad(xp, ((0, 0), (0, 0), (0, 1), (0, 0)))
    n, h, w, c = xp.shape
    x = xp.reshape(n, h // 2, 2, w // 2, 2, c)
    x = jnp.transpose(x, (0, 1, 3, 2, 4, 5))
    return x.reshape(n, h // 2, w // 2, 4 * c)


def _weight_to_s2d(w):
    """Stride-2 weights (kh,kw,cin,cout) -> stride-1 weights over the
    space-to-depth input: (ceil(kh/2), ceil(kw/2), 4*cin, cout).  Zero-filled
    taps correspond to positions outside the original kernel and only ever
    multiply padding, so the result is exact."""
    kh, kw, cin, cout = w.shape
    kh2, kw2 = (kh + 1) // 2, (kw + 1) // 2
    wpad = jnp.pad(w, ((0, 2 * kh2 - kh), (0, 2 * kw2 - kw), (0, 0), (0, 0)))
    wpad = wpad.reshape(kh2, 2, kw2, 2, cin, cout)
    wpad = jnp.transpose(wpad, (0, 2, 1, 3, 4, 5))
    return wpad.reshape(kh2, kw2, 4 * cin, cout)


# ----------------------------------------------------------------------------
# One SingleConvolution layer (previous layer's BN+act fused into its conv).
# ----------------------------------------------------------------------------
def fused_single_convolution(x_pre, in_scale, in_shift, in_slope, params, *,
                             stride, padding, apply_input_act, eps=_BN_EPS):
    """Returns (y_pre, scale, shift): this layer's conv+bias output and the BN
    affine that the *next* consumer must apply (followed by LeakyReLU)."""
    w, b, gamma, beta = params
    n, h, wdt, _ = x_pre.shape
    kh, kw, _, cout = w.shape
    ho = (h + 2 * padding - kh) // stride + 1
    wo = (wdt + 2 * padding - kw) // stride + 1

    # Reflect pad (commutes with the per-channel affine + LeakyReLU that the
    # kernel applies to its input tile, so padding the pre-activation is exact).
    xp = jnp.pad(x_pre, ((0, 0), (padding, padding), (padding, padding), (0, 0)),
                 mode="reflect")

    if stride == 1:
        w_eff, scale_eff, shift_eff = w, in_scale, in_shift
    elif stride == 2:
        xp = _space_to_depth(xp)
        w_eff = _weight_to_s2d(w)
        scale_eff = jnp.tile(in_scale, (1, 4))
        shift_eff = jnp.tile(in_shift, (1, 4))
    else:
        raise NotImplementedError("stride must be 1 or 2")

    kh_e, kw_e, cin_e, _ = w_eff.shape
    w_flat = w_eff.reshape(kh_e, kw_e * cin_e, cout).astype(jnp.bfloat16)

    y, psum, pssq = _fused_conv(xp, scale_eff, shift_eff, w_flat, b,
                                ho=ho, wo=wo, apply_input_act=apply_input_act,
                                neg_slope=in_slope)

    # Training-mode BatchNorm batch statistics (biased variance), reduced from
    # per-grid-step partial sums.  Clamp var >= 0 (E[x^2]-E[x]^2 cancellation).
    count = float(n * ho * wo)
    mean = jnp.sum(psum, axis=0)[0] / count
    var = jnp.maximum(jnp.sum(pssq, axis=0)[0] / count - mean * mean, 0.0)
    scale = gamma / jnp.sqrt(var + eps)
    shift = beta - mean * scale
    return y, scale.reshape(1, cout), shift.reshape(1, cout)


# ----------------------------------------------------------------------------
# Standalone BN affine + LeakyReLU (only for the final layer's output).
# ----------------------------------------------------------------------------
def _bn_act_kernel(y_ref, scale_ref, shift_ref, o_ref, *, neg_slope):
    z = y_ref[...] * scale_ref[...] + shift_ref[...]
    o_ref[...] = jnp.where(z >= 0, z, neg_slope * z)


def bn_leaky_relu(y, scale, shift, neg_slope):
    n, h, w, c = y.shape
    m = n * h * w
    y2 = y.reshape(m, c)                     # flatten -> few large blocks
    tile_m = m if m <= 4096 else 4096
    out = pl.pallas_call(
        functools.partial(_bn_act_kernel, neg_slope=neg_slope),
        out_shape=jax.ShapeDtypeStruct((m, c), jnp.float32),
        grid=(pl.cdiv(m, tile_m),),
        in_specs=[pl.BlockSpec((tile_m, c), lambda i: (i, 0)),
                  pl.BlockSpec((1, c), lambda i: (0, 0)),
                  pl.BlockSpec((1, c), lambda i: (0, 0))],
        out_specs=pl.BlockSpec((tile_m, c), lambda i: (i, 0)),
        compiler_params=pltpu.CompilerParams(
            dimension_semantics=("parallel",),
            vmem_limit_bytes=_VMEM_LIMIT),
    )(y2, scale, shift)
    return out.reshape(n, h, w, c)


# ----------------------------------------------------------------------------
# Encoder: parameter construction + forward pass (stack of SingleConvolutions).
# ----------------------------------------------------------------------------
def make_encoder(key, in_channels, neg_slope=0.01,
                 pre_layer_filters=64,
                 down_layer_filters=(128, 256, 256),
                 post_layer_filters=(32,)):
    cfgs = []
    lf = [pre_layer_filters] + list(down_layer_filters)
    cfgs.append(dict(in_ch=in_channels, out_ch=lf[0], k=7, stride=1, pad=3,
                     slope=neg_slope))
    for i in range(1, len(lf)):
        cfgs.append(dict(in_ch=lf[i - 1], out_ch=lf[i], k=3, stride=2, pad=1,
                         slope=neg_slope))
    lf2 = [lf[-1]] + list(post_layer_filters)
    for i in range(1, len(lf2)):
        # post layers use the default LeakyReLU slope (0.01) in the PyTorch module
        cfgs.append(dict(in_ch=lf2[i - 1], out_ch=lf2[i], k=3, stride=1, pad=1,
                         slope=0.01))

    params = []
    for cfg in cfgs:
        key, kw_key, kb_key = jax.random.split(key, 3)
        fan_in = cfg["in_ch"] * cfg["k"] * cfg["k"]
        bound = 1.0 / (fan_in ** 0.5)
        w = jax.random.uniform(
            kw_key, (cfg["k"], cfg["k"], cfg["in_ch"], cfg["out_ch"]),
            jnp.float32, -bound, bound)
        b = jax.random.uniform(kb_key, (1, cfg["out_ch"]), jnp.float32,
                               -bound, bound)
        gamma = jnp.ones((cfg["out_ch"],), jnp.float32)    # BN default init
        beta = jnp.zeros((cfg["out_ch"],), jnp.float32)
        params.append((w, b, gamma, beta))
    return cfgs, params


def encoder_forward(x_nchw, cfgs, params):
    # NCHW (PyTorch) -> NHWC (kernel layout)
    x = jnp.transpose(x_nchw, (0, 2, 3, 1)).astype(jnp.float32)

    cin0 = x.shape[-1]
    scale = jnp.ones((1, cin0), jnp.float32)   # identity "previous activation"
    shift = jnp.zeros((1, cin0), jnp.float32)
    slope = 0.0

    y = x
    for idx, (cfg, p) in enumerate(zip(cfgs, params)):
        y, scale, shift = fused_single_convolution(
            y, scale, shift, slope, p,
            stride=cfg["stride"], padding=cfg["pad"],
            apply_input_act=(idx > 0))
        slope = cfg["slope"]

    # Final layer's BatchNorm + LeakyReLU (no next conv to fuse it into).
    y = bn_leaky_relu(y, scale, shift, slope)
    return jnp.transpose(y, (0, 3, 1, 2))      # back to NCHW


if __name__ == "__main__":
    key = jax.random.PRNGKey(0)
    k_param, k_input = jax.random.split(key)

    in_channels = 4
    cfgs, params = make_encoder(k_param, in_channels)

    x = jax.random.normal(k_input, (2, in_channels, 16, 16), jnp.float32)

    out = encoder_forward(x, cfgs, params)
    out = jax.block_until_ready(out)

    # Expected: 16 -> (k7 s1) 16 -> (s2) 8 -> (s2) 4 -> (s2) 2, channels 32.
    assert out.shape == (2, 32, 2, 2), out.shape
    assert jnp.all(jnp.isfinite(out))
    print("KERNEL_OK")
</pallas_src>

<mosaic_0001>
module attributes {stable_mosaic.version = 11 : i64} {
  func.func @_fused_conv_kernel(%arg0: i32, %arg1: memref<1x22x22x4xf32, #tpu.memory_space<vmem>>, %arg2: memref<1x4xf32, #tpu.memory_space<vmem>>, %arg3: memref<1x4xf32, #tpu.memory_space<vmem>>, %arg4: memref<7x28x64xbf16, #tpu.memory_space<vmem>>, %arg5: memref<1x64xf32, #tpu.memory_space<vmem>>, %arg6: memref<1x16x16x64xf32, #tpu.memory_space<vmem>>, %arg7: memref<1x1x64xf32, #tpu.memory_space<vmem>>, %arg8: memref<1x1x64xf32, #tpu.memory_space<vmem>>) attributes {dimension_semantics = [#tpu.dimension_semantics<parallel>], iteration_bounds = array<i64: 2>, scalar_prefetch = 0 : i64, scratch_operands = 0 : i64, tpu.core_type = #tpu.core_type<tc>, window_params = [{transform_indices = @transform_0, window_bounds = array<i64: 1, 22, 22, 4>}, {pipeline_mode = #tpu.pipeline_mode<synchronous>, transform_indices = @transform_1, window_bounds = array<i64: 1, 4>}, {pipeline_mode = #tpu.pipeline_mode<synchronous>, transform_indices = @transform_2, window_bounds = array<i64: 1, 4>}, {pipeline_mode = #tpu.pipeline_mode<synchronous>, transform_indices = @transform_3, window_bounds = array<i64: 7, 28, 64>}, {pipeline_mode = #tpu.pipeline_mode<synchronous>, transform_indices = @transform_4, window_bounds = array<i64: 1, 64>}, {transform_indices = @transform_5, window_bounds = array<i64: 1, 16, 16, 64>}, {transform_indices = @transform_6, window_bounds = array<i64: 1, 1, 64>}, {transform_indices = @transform_7, window_bounds = array<i64: 1, 1, 64>}]} {
    %c0 = arith.constant 0 : index
    %c0_0 = arith.constant 0 : index
    %c0_1 = arith.constant 0 : index
    %c0_2 = arith.constant 0 : index
    %0 = vector.load %arg1[%c0, %c0_0, %c0_1, %c0_2] : memref<1x22x22x4xf32, #tpu.memory_space<vmem>>, vector<1x22x22x4xf32>
    %1 = vector.shape_cast %0 : vector<1x22x22x4xf32> to vector<22x22x4xf32>
    %2 = arith.truncf %1 : vector<22x22x4xf32> to vector<22x22x4xbf16>
    %cst = arith.constant 0.000000e+00 : f32
    %3 = vector.broadcast %cst : f32 to vector<256x64xf32>
    %4 = vector.extract_strided_slice %2 {offsets = [0, 0, 0], sizes = [16, 22, 4], strides = [1, 1, 1]} : vector<22x22x4xbf16> to vector<16x22x4xbf16>
    %5 = vector.extract_strided_slice %4 {offsets = [0, 0, 0], sizes = [16, 16, 4], strides = [1, 1, 1]} : vector<16x22x4xbf16> to vector<16x16x4xbf16>
    %6 = vector.extract_strided_slice %4 {offsets = [0, 1, 0], sizes = [16, 16, 4], strides = [1, 1, 1]} : vector<16x22x4xbf16> to vector<16x16x4xbf16>
    %7 = vector.extract_strided_slice %4 {offsets = [0, 2, 0], sizes = [16, 16, 4], strides = [1, 1, 1]} : vector<16x22x4xbf16> to vector<16x16x4xbf16>
    %8 = vector.extract_strided_slice %4 {offsets = [0, 3, 0], sizes = [16, 16, 4], strides = [1, 1, 1]} : vector<16x22x4xbf16> to vector<16x16x4xbf16>
    %9 = vector.extract_strided_slice %4 {offsets = [0, 4, 0], sizes = [16, 16, 4], strides = [1, 1, 1]} : vector<16x22x4xbf16> to vector<16x16x4xbf16>
    %10 = vector.extract_strided_slice %4 {offsets = [0, 5, 0], sizes = [16, 16, 4], strides = [1, 1, 1]} : vector<16x22x4xbf16> to vector<16x16x4xbf16>
    %11 = vector.extract_strided_slice %4 {offsets = [0, 6, 0], sizes = [16, 16, 4], strides = [1, 1, 1]} : vector<16x22x4xbf16> to vector<16x16x4xbf16>
    %12 = tpu.concatenate %5, %6, %7, %8, %9, %10, %11 in 2 : vector<16x16x4xbf16>, vector<16x16x4xbf16>, vector<16x16x4xbf16>, vector<16x16x4xbf16>, vector<16x16x4xbf16>, vector<16x16x4xbf16>, vector<16x16x4xbf16> -> vector<16x16x28xbf16>
    %13 = vector.shape_cast %12 : vector<16x16x28xbf16> to vector<256x28xbf16>
    %c0_3 = arith.constant 0 : index
    %c0_4 = arith.constant 0 : index
    %c0_5 = arith.constant 0 : index
    %14 = vector.load %arg4[%c0_3, %c0_4, %c0_5] : memref<7x28x64xbf16, #tpu.memory_space<vmem>>, vector<1x28x64xbf16>
    %15 = vector.shape_cast %14 : vector<1x28x64xbf16> to vector<28x64xbf16>
    %cst_6 = arith.constant dense<0.000000e+00> : vector<256x64xf32>
    %16 = tpu.matmul %13, %15, %cst_6 {dimension_numbers = #tpu.dot_dimension_numbers<[1], [0], [0], [1], [0, 0, 1, 1], [], []>} : vector<256x28xbf16>, vector<28x64xbf16>, vector<256x64xf32> -> vector<256x64xf32>
    %17 = arith.addf %3, %16 : vector<256x64xf32>
    %18 = vector.extract_strided_slice %2 {offsets = [1, 0, 0], sizes = [16, 22, 4], strides = [1, 1, 1]} : vector<22x22x4xbf16> to vector<16x22x4xbf16>
    %19 = vector.extract_strided_slice %18 {offsets = [0, 0, 0], sizes = [16, 16, 4], strides = [1, 1, 1]} : vector<16x22x4xbf16> to vector<16x16x4xbf16>
    %20 = vector.extract_strided_slice %18 {offsets = [0, 1, 0], sizes = [16, 16, 4], strides = [1, 1, 1]} : vector<16x22x4xbf16> to vector<16x16x4xbf16>
    %21 = vector.extract_strided_slice %18 {offsets = [0, 2, 0], sizes = [16, 16, 4], strides = [1, 1, 1]} : vector<16x22x4xbf16> to vector<16x16x4xbf16>
    %22 = vector.extract_strided_slice %18 {offsets = [0, 3, 0], sizes = [16, 16, 4], strides = [1, 1, 1]} : vector<16x22x4xbf16> to vector<16x16x4xbf16>
    %23 = vector.extract_strided_slice %18 {offsets = [0, 4, 0], sizes = [16, 16, 4], strides = [1, 1, 1]} : vector<16x22x4xbf16> to vector<16x16x4xbf16>
    %24 = vector.extract_strided_slice %18 {offsets = [0, 5, 0], sizes = [16, 16, 4], strides = [1, 1, 1]} : vector<16x22x4xbf16> to vector<16x16x4xbf16>
    %25 = vector.extract_strided_slice %18 {offsets = [0, 6, 0], sizes = [16, 16, 4], strides = [1, 1, 1]} : vector<16x22x4xbf16> to vector<16x16x4xbf16>
    %26 = tpu.concatenate %19, %20, %21, %22, %23, %24, %25 in 2 : vector<16x16x4xbf16>, vector<16x16x4xbf16>, vector<16x16x4xbf16>, vector<16x16x4xbf16>, vector<16x16x4xbf16>, vector<16x16x4xbf16>, vector<16x16x4xbf16> -> vector<16x16x28xbf16>
    %27 = vector.shape_cast %26 : vector<16x16x28xbf16> to vector<256x28xbf16>
    %c1 = arith.constant 1 : index
    %c0_7 = arith.constant 0 : index
    %c0_8 = arith.constant 0 : index
    %28 = vector.load %arg4[%c1, %c0_7, %c0_8] : memref<7x28x64xbf16, #tpu.memory_space<vmem>>, vector<1x28x64xbf16>
    %29 = vector.shape_cast %28 : vector<1x28x64xbf16> to vector<28x64xbf16>
    %cst_9 = arith.constant dense<0.000000e+00> : vector<256x64xf32>
    %30 = tpu.matmul %27, %29, %cst_9 {dimension_numbers = #tpu.dot_dimension_numbers<[1], [0], [0], [1], [0, 0, 1, 1], [], []>} : vector<256x28xbf16>, vector<28x64xbf16>, vector<256x64xf32> -> vector<256x64xf32>
    %31 = arith.addf %17, %30 : vector<256x64xf32>
    %32 = vector.extract_strided_slice %2 {offsets = [2, 0, 0], sizes = [16, 22, 4], strides = [1, 1, 1]} : vector<22x22x4xbf16> to vector<16x22x4xbf16>
    %33 = vector.extract_strided_slice %32 {offsets = [0, 0, 0], sizes = [16, 16, 4], strides = [1, 1, 1]} : vector<16x22x4xbf16> to vector<16x16x4xbf16>
    %34 = vector.extract_strided_slice %32 {offsets = [0, 1, 0], sizes = [16, 16, 4], strides = [1, 1, 1]} : vector<16x22x4xbf16> to vector<16x16x4xbf16>
    %35 = vector.extract_strided_slice %32 {offsets = [0, 2, 0], sizes = [16, 16, 4], strides = [1, 1, 1]} : vector<16x22x4xbf16> to vector<16x16x4xbf16>
    %36 = vector.extract_strided_slice %32 {offsets = [0, 3, 0], sizes = [16, 16, 4], strides = [1, 1, 1]} : vector<16x22x4xbf16> to vector<16x16x4xbf16>
    %37 = vector.extract_strided_slice %32 {offsets = [0, 4, 0], sizes = [16, 16, 4], strides = [1, 1, 1]} : vector<16x22x4xbf16> to vector<16x16x4xbf16>
    %38 = vector.extract_strided_slice %32 {offsets = [0, 5, 0], sizes = [16, 16, 4], strides = [1, 1, 1]} : vector<16x22x4xbf16> to vector<16x16x4xbf16>
    %39 = vector.extract_strided_slice %32 {offsets = [0, 6, 0], sizes = [16, 16, 4], strides = [1, 1, 1]} : vector<16x22x4xbf16> to vector<16x16x4xbf16>
    %40 = tpu.concatenate %33, %34, %35, %36, %37, %38, %39 in 2 : vector<16x16x4xbf16>, vector<16x16x4xbf16>, vector<16x16x4xbf16>, vector<16x16x4xbf16>, vector<16x16x4xbf16>, vector<16x16x4xbf16>, vector<16x16x4xbf16> -> vector<16x16x28xbf16>
    %41 = vector.shape_cast %40 : vector<16x16x28xbf16> to vector<256x28xbf16>
    %c2 = arith.constant 2 : index
    %c0_10 = arith.constant 0 : index
    %c0_11 = arith.constant 0 : index
    %42 = vector.load %arg4[%c2, %c0_10, %c0_11] : memref<7x28x64xbf16, #tpu.memory_space<vmem>>, vector<1x28x64xbf16>
    %43 = vector.shape_cast %42 : vector<1x28x64xbf16> to vector<28x64xbf16>
    %cst_12 = arith.constant dense<0.000000e+00> : vector<256x64xf32>
    %44 = tpu.matmul %41, %43, %cst_12 {dimension_numbers = #tpu.dot_dimension_numbers<[1], [0], [0], [1], [0, 0, 1, 1], [], []>} : vector<256x28xbf16>, vector<28x64xbf16>, vector<256x64xf32> -> vector<256x64xf32>
    %45 = arith.addf %31, %44 : vector<256x64xf32>
    %46 = vector.extract_strided_slice %2 {offsets = [3, 0, 0], sizes = [16, 22, 4], strides = [1, 1, 1]} : vector<22x22x4xbf16> to vector<16x22x4xbf16>
    %47 = vector.extract_strided_slice %46 {offsets = [0, 0, 0], sizes = [16, 16, 4], strides = [1, 1, 1]} : vector<16x22x4xbf16> to vector<16x16x4xbf16>
    %48 = vector.extract_strided_slice %46 {offsets = [0, 1, 0], sizes = [16, 16, 4], strides = [1, 1, 1]} : vector<16x22x4xbf16> to vector<16x16x4xbf16>
    %49 = vector.extract_strided_slice %46 {offsets = [0, 2, 0], sizes = [16, 16, 4], strides = [1, 1, 1]} : vector<16x22x4xbf16> to vector<16x16x4xbf16>
    %50 = vector.extract_strided_slice %46 {offsets = [0, 3, 0], sizes = [16, 16, 4], strides = [1, 1, 1]} : vector<16x22x4xbf16> to vector<16x16x4xbf16>
    %51 = vector.extract_strided_slice %46 {offsets = [0, 4, 0], sizes = [16, 16, 4], strides = [1, 1, 1]} : vector<16x22x4xbf16> to vector<16x16x4xbf16>
    %52 = vector.extract_strided_slice %46 {offsets = [0, 5, 0], sizes = [16, 16, 4], strides = [1, 1, 1]} : vector<16x22x4xbf16> to vector<16x16x4xbf16>
    %53 = vector.extract_strided_slice %46 {offsets = [0, 6, 0], sizes = [16, 16, 4], strides = [1, 1, 1]} : vector<16x22x4xbf16> to vector<16x16x4xbf16>
    %54 = tpu.concatenate %47, %48, %49, %50, %51, %52, %53 in 2 : vector<16x16x4xbf16>, vector<16x16x4xbf16>, vector<16x16x4xbf16>, vector<16x16x4xbf16>, vector<16x16x4xbf16>, vector<16x16x4xbf16>, vector<16x16x4xbf16> -> vector<16x16x28xbf16>
    %55 = vector.shape_cast %54 : vector<16x16x28xbf16> to vector<256x28xbf16>
    %c3 = arith.constant 3 : index
    %c0_13 = arith.constant 0 : index
    %c0_14 = arith.constant 0 : index
    %56 = vector.load %arg4[%c3, %c0_13, %c0_14] : memref<7x28x64xbf16, #tpu.memory_space<vmem>>, vector<1x28x64xbf16>
    %57 = vector.shape_cast %56 : vector<1x28x64xbf16> to vector<28x64xbf16>
    %cst_15 = arith.constant dense<0.000000e+00> : vector<256x64xf32>
    %58 = tpu.matmul %55, %57, %cst_15 {dimension_numbers = #tpu.dot_dimension_numbers<[1], [0], [0], [1], [0, 0, 1, 1], [], []>} : vector<256x28xbf16>, vector<28x64xbf16>, vector<256x64xf32> -> vector<256x64xf32>
    %59 = arith.addf %45, %58 : vector<256x64xf32>
    %60 = vector.extract_strided_slice %2 {offsets = [4, 0, 0], sizes = [16, 22, 4], strides = [1, 1, 1]} : vector<22x22x4xbf16> to vector<16x22x4xbf16>
    %61 = vector.extract_strided_slice %60 {offsets = [0, 0, 0], sizes = [16, 16, 4], strides = [1, 1, 1]} : vector<16x22x4xbf16> to vector<16x16x4xbf16>
    %62 = vector.extract_strided_slice %60 {offsets = [0, 1, 0], sizes = [16, 16, 4], strides = [1, 1, 1]} : vector<16x22x4xbf16> to vector<16x16x4xbf16>
    %63 = vector.extract_strided_slice %60 {offsets = [0, 2, 0], sizes = [16, 16, 4], strides = [1, 1, 1]} : vector<16x22x4xbf16> to vector<16x16x4xbf16>
    %64 = vector.extract_strided_slice %60 {offsets = [0, 3, 0], sizes = [16, 16, 4], strides = [1, 1, 1]} : vector<16x22x4xbf16> to vector<16x16x4xbf16>
    %65 = vector.extract_strided_slice %60 {offsets = [0, 4, 0], sizes = [16, 16, 4], strides = [1, 1, 1]} : vector<16x22x4xbf16> to vector<16x16x4xbf16>
    %66 = vector.extract_strided_slice %60 {offsets = [0, 5, 0], sizes = [16, 16, 4], strides = [1, 1, 1]} : vector<16x22x4xbf16> to vector<16x16x4xbf16>
    %67 = vector.extract_strided_slice %60 {offsets = [0, 6, 0], sizes = [16, 16, 4], strides = [1, 1, 1]} : vector<16x22x4xbf16> to vector<16x16x4xbf16>
    %68 = tpu.concatenate %61, %62, %63, %64, %65, %66, %67 in 2 : vector<16x16x4xbf16>, vector<16x16x4xbf16>, vector<16x16x4xbf16>, vector<16x16x4xbf16>, vector<16x16x4xbf16>, vector<16x16x4xbf16>, vector<16x16x4xbf16> -> vector<16x16x28xbf16>
    %69 = vector.shape_cast %68 : vector<16x16x28xbf16> to vector<256x28xbf16>
    %c4 = arith.constant 4 : index
    %c0_16 = arith.constant 0 : index
    %c0_17 = arith.constant 0 : index
    %70 = vector.load %arg4[%c4, %c0_16, %c0_17] : memref<7x28x64xbf16, #tpu.memory_space<vmem>>, vector<1x28x64xbf16>
    %71 = vector.shape_cast %70 : vector<1x28x64xbf16> to vector<28x64xbf16>
    %cst_18 = arith.constant dense<0.000000e+00> : vector<256x64xf32>
    %72 = tpu.matmul %69, %71, %cst_18 {dimension_numbers = #tpu.dot_dimension_numbers<[1], [0], [0], [1], [0, 0, 1, 1], [], []>} : vector<256x28xbf16>, vector<28x64xbf16>, vector<256x64xf32> -> vector<256x64xf32>
    %73 = arith.addf %59, %72 : vector<256x64xf32>
    %74 = vector.extract_strided_slice %2 {offsets = [5, 0, 0], sizes = [16, 22, 4], strides = [1, 1, 1]} : vector<22x22x4xbf16> to vector<16x22x4xbf16>
    %75 = vector.extract_strided_slice %74 {offsets = [0, 0, 0], sizes = [16, 16, 4], strides = [1, 1, 1]} : vector<16x22x4xbf16> to vector<16x16x4xbf16>
    %76 = vector.extract_strided_slice %74 {offsets = [0, 1, 0], sizes = [16, 16, 4], strides = [1, 1, 1]} : vector<16x22x4xbf16> to vector<16x16x4xbf16>
    %77 = vector.extract_strided_slice %74 {offsets = [0, 2, 0], sizes = [16, 16, 4], strides = [1, 1, 1]} : vector<16x22x4xbf16> to vector<16x16x4xbf16>
    %78 = vector.extract_strided_slice %74 {offsets = [0, 3, 0], sizes = [16, 16, 4], strides = [1, 1, 1]} : vector<16x22x4xbf16> to vector<16x16x4xbf16>
    %79 = vector.extract_strided_slice %74 {offsets = [0, 4, 0], sizes = [16, 16, 4], strides = [1, 1, 1]} : vector<16x22x4xbf16> to vector<16x16x4xbf16>
    %80 = vector.extract_strided_slice %74 {offsets = [0, 5, 0], sizes = [16, 16, 4], strides = [1, 1, 1]} : vector<16x22x4xbf16> to vector<16x16x4xbf16>
    %81 = vector.extract_strided_slice %74 {offsets = [0, 6, 0], sizes = [16, 16, 4], strides = [1, 1, 1]} : vector<16x22x4xbf16> to vector<16x16x4xbf16>
    %82 = tpu.concatenate %75, %76, %77, %78, %79, %80, %81 in 2 : vector<16x16x4xbf16>, vector<16x16x4xbf16>, vector<16x16x4xbf16>, vector<16x16x4xbf16>, vector<16x16x4xbf16>, vector<16x16x4xbf16>, vector<16x16x4xbf16> -> vector<16x16x28xbf16>
    %83 = vector.shape_cast %82 : vector<16x16x28xbf16> to vector<256x28xbf16>
    %c5 = arith.constant 5 : index
    %c0_19 = arith.constant 0 : index
    %c0_20 = arith.constant 0 : index
    %84 = vector.load %arg4[%c5, %c0_19, %c0_20] : memref<7x28x64xbf16, #tpu.memory_space<vmem>>, vector<1x28x64xbf16>
    %85 = vector.shape_cast %84 : vector<1x28x64xbf16> to vector<28x64xbf16>
    %cst_21 = arith.constant dense<0.000000e+00> : vector<256x64xf32>
    %86 = tpu.matmul %83, %85, %cst_21 {dimension_numbers = #tpu.dot_dimension_numbers<[1], [0], [0], [1], [0, 0, 1, 1], [], []>} : vector<256x28xbf16>, vector<28x64xbf16>, vector<256x64xf32> -> vector<256x64xf32>
    %87 = arith.addf %73, %86 : vector<256x64xf32>
    %88 = vector.extract_strided_slice %2 {offsets = [6, 0, 0], sizes = [16, 22, 4], strides = [1, 1, 1]} : vector<22x22x4xbf16> to vector<16x22x4xbf16>
    %89 = vector.extract_strided_slice %88 {offsets = [0, 0, 0], sizes = [16, 16, 4], strides = [1, 1, 1]} : vector<16x22x4xbf16> to vector<16x16x4xbf16>
    %90 = vector.extract_strided_slice %88 {offsets = [0, 1, 0], sizes = [16, 16, 4], strides = [1, 1, 1]} : vector<16x22x4xbf16> to vector<16x16x4xbf16>
    %91 = vector.extract_strided_slice %88 {offsets = [0, 2, 0], sizes = [16, 16, 4], strides = [1, 1, 1]} : vector<16x22x4xbf16> to vector<16x16x4xbf16>
    %92 = vector.extract_strided_slice %88 {offsets = [0, 3, 0], sizes = [16, 16, 4], strides = [1, 1, 1]} : vector<16x22x4xbf16> to vector<16x16x4xbf16>
    %93 = vector.extract_strided_slice %88 {offsets = [0, 4, 0], sizes = [16, 16, 4], strides = [1, 1, 1]} : vector<16x22x4xbf16> to vector<16x16x4xbf16>
    %94 = vector.extract_strided_slice %88 {offsets = [0, 5, 0], sizes = [16, 16, 4], strides = [1, 1, 1]} : vector<16x22x4xbf16> to vector<16x16x4xbf16>
    %95 = vector.extract_strided_slice %88 {offsets = [0, 6, 0], sizes = [16, 16, 4], strides = [1, 1, 1]} : vector<16x22x4xbf16> to vector<16x16x4xbf16>
    %96 = tpu.concatenate %89, %90, %91, %92, %93, %94, %95 in 2 : vector<16x16x4xbf16>, vector<16x16x4xbf16>, vector<16x16x4xbf16>, vector<16x16x4xbf16>, vector<16x16x4xbf16>, vector<16x16x4xbf16>, vector<16x16x4xbf16> -> vector<16x16x28xbf16>
    %97 = vector.shape_cast %96 : vector<16x16x28xbf16> to vector<256x28xbf16>
    %c6 = arith.constant 6 : index
    %c0_22 = arith.constant 0 : index
    %c0_23 = arith.constant 0 : index
    %98 = vector.load %arg4[%c6, %c0_22, %c0_23] : memref<7x28x64xbf16, #tpu.memory_space<vmem>>, vector<1x28x64xbf16>
    %99 = vector.shape_cast %98 : vector<1x28x64xbf16> to vector<28x64xbf16>
    %cst_24 = arith.constant dense<0.000000e+00> : vector<256x64xf32>
    %100 = tpu.matmul %97, %99, %cst_24 {dimension_numbers = #tpu.dot_dimension_numbers<[1], [0], [0], [1], [0, 0, 1, 1], [], []>} : vector<256x28xbf16>, vector<28x64xbf16>, vector<256x64xf32> -> vector<256x64xf32>
    %101 = arith.addf %87, %100 : vector<256x64xf32>
    %c0_25 = arith.constant 0 : index
    %c0_26 = arith.constant 0 : index
    %102 = vector.load %arg5[%c0_25, %c0_26] : memref<1x64xf32, #tpu.memory_space<vmem>>, vector<1x64xf32>
    %103 = vector.broadcast %102 : vector<1x64xf32> to vector<256x64xf32>
    %104 = arith.addf %101, %103 : vector<256x64xf32>
    %105 = vector.shape_cast %104 : vector<256x64xf32> to vector<1x16x16x64xf32>
    %c0_27 = arith.constant 0 : index
    %c0_28 = arith.constant 0 : index
    %c0_29 = arith.constant 0 : index
    %c0_30 = arith.constant 0 : index
    %106 = vector.load %arg6[%c0_27, %c0_28, %c0_29, %c0_30] : memref<1x16x16x64xf32, #tpu.memory_space<vmem>>, vector<1x16x16x64xf32>
    tpu.vector_store %arg6[%c0_27, %c0_28, %c0_29, %c0_30], %105 {strides = array<i32>} : memref<1x16x16x64xf32, #tpu.memory_space<vmem>>, vector<1x16x16x64xf32>,
    %cst_31 = arith.constant dense<0.000000e+00> : vector<64xf32>
    %107 = vector.multi_reduction <add>, %104, %cst_31 [0] : vector<256x64xf32> to vector<64xf32>
    %108 = vector.shape_cast %107 : vector<64xf32> to vector<1x64xf32>
    %109 = vector.shape_cast %108 : vector<1x64xf32> to vector<1x1x64xf32>
    %c0_32 = arith.constant 0 : index
    %c0_33 = arith.constant 0 : index
    %c0_34 = arith.constant 0 : index
    %110 = vector.load %arg7[%c0_32, %c0_33, %c0_34] : memref<1x1x64xf32, #tpu.memory_space<vmem>>, vector<1x1x64xf32>
    tpu.vector_store %arg7[%c0_32, %c0_33, %c0_34], %109 {strides = array<i32>} : memref<1x1x64xf32, #tpu.memory_space<vmem>>, vector<1x1x64xf32>,
    %111 = arith.mulf %104, %104 : vector<256x64xf32>
    %cst_35 = arith.constant dense<0.000000e+00> : vector<64xf32>
    %112 = vector.multi_reduction <add>, %111, %cst_35 [0] : vector<256x64xf32> to vector<64xf32>
    %113 = vector.shape_cast %112 : vector<64xf32> to vector<1x64xf32>
    %114 = vector.shape_cast %113 : vector<1x64xf32> to vector<1x1x64xf32>
    %c0_36 = arith.constant 0 : index
    %c0_37 = arith.constant 0 : index
    %c0_38 = arith.constant 0 : index
    %115 = vector.load %arg8[%c0_36, %c0_37, %c0_38] : memref<1x1x64xf32, #tpu.memory_space<vmem>>, vector<1x1x64xf32>
    tpu.vector_store %arg8[%c0_36, %c0_37, %c0_38], %114 {strides = array<i32>} : memref<1x1x64xf32, #tpu.memory_space<vmem>>, vector<1x1x64xf32>,
    return
  }
  func.func @transform_0(%arg0: i32) -> (i32, i32, i32, i32) {
    %c0_i32 = arith.constant 0 : i32
    %c0_i32_0 = arith.constant 0 : i32
    %c0_i32_1 = arith.constant 0 : i32
    %c0_i32_2 = arith.constant 0 : i32
    return %arg0, %c0_i32, %c0_i32_0, %c0_i32_1 : i32, i32, i32, i32
  }
  func.func @transform_1(%arg0: i32) -> (i32, i32) {
    %c0_i32 = arith.constant 0 : i32
    %c0_i32_0 = arith.constant 0 : i32
    %c0_i32_1 = arith.constant 0 : i32
    return %c0_i32, %c0_i32_0 : i32, i32
  }
  func.func @transform_2(%arg0: i32) -> (i32, i32) {
    %c0_i32 = arith.constant 0 : i32
    %c0_i32_0 = arith.constant 0 : i32
    %c0_i32_1 = arith.constant 0 : i32
    return %c0_i32, %c0_i32_0 : i32, i32
  }
  func.func @transform_3(%arg0: i32) -> (i32, i32, i32) {
    %c0_i32 = arith.constant 0 : i32
    %c0_i32_0 = arith.constant 0 : i32
    %c0_i32_1 = arith.constant 0 : i32
    %c0_i32_2 = arith.constant 0 : i32
    return %c0_i32, %c0_i32_0, %c0_i32_1 : i32, i32, i32
  }
  func.func @transform_4(%arg0: i32) -> (i32, i32) {
    %c0_i32 = arith.constant 0 : i32
    %c0_i32_0 = arith.constant 0 : i32
    %c0_i32_1 = arith.constant 0 : i32
    return %c0_i32, %c0_i32_0 : i32, i32
  }
  func.func @transform_5(%arg0: i32) -> (i32, i32, i32, i32) {
    %c0_i32 = arith.constant 0 : i32
    %c0_i32_0 = arith.constant 0 : i32
    %c0_i32_1 = arith.constant 0 : i32
    %c0_i32_2 = arith.constant 0 : i32
    return %arg0, %c0_i32, %c0_i32_0, %c0_i32_1 : i32, i32, i32, i32
  }
  func.func @transform_6(%arg0: i32) -> (i32, i32, i32) {
    %c0_i32 = arith.constant 0 : i32
    %c0_i32_0 = arith.constant 0 : i32
    %c0_i32_1 = arith.constant 0 : i32
    return %arg0, %c0_i32, %c0_i32_0 : i32, i32, i32
  }
  func.func @transform_7(%arg0: i32) -> (i32, i32, i32) {
    %c0_i32 = arith.constant 0 : i32
    %c0_i32_0 = arith.constant 0 : i32
    %c0_i32_1 = arith.constant 0 : i32
    return %arg0, %c0_i32, %c0_i32_0 : i32, i32, i32
  }
}

</mosaic_0001>

<bundles_post_ra>
// kernel: tpu_custom_call.1
= control target key start
LH: loop header
LB: loop body
LE: loop exit
PB: predicated region body
PF: predicated region fallthrough
CT: control target
= control target key end

     0   :  { %13 = vsyncpa [#allocation3], 0  ;;  %s6811_s0 = inlined_call_operand.vmem [shape: f32[2,22,22,4], index: 0, kind: input, shape index: {}]   ;;  %s6812_s1 = inlined_call_operand.vmem [shape: f32[1,4], index: 1, kind: input, shape index: {}]   ;;  %s6813_s2 = inlined_call_operand.vmem [shape: f32[1,4], index: 2, kind: input, shape index: {}]   ;;  %s6814_s3 = inlined_call_operand.vmem [shape: bf16[7,28,64], index: 3, kind: input, shape index: {}]   ;;  %s6815_s4 = inlined_call_operand.vmem [shape: f32[1,64], index: 4, kind: input, shape index: {}]   ;;  %s6816_s5 = inlined_call_operand.hbm [shape: f32[2,16,16,64], index: 5, kind: output, shape index: {0}]   ;;  %s6817_s6 = inlined_call_operand.hbm [shape: f32[2,1,64], index: 6, kind: output, shape index: {1}]   ;;  %s6818_s7 = inlined_call_operand.hbm [shape: f32[2,1,64], index: 7, kind: output, shape index: {2}]  }
   0x1   :  { %15 = vsyncpa [#allocation3 + $0x1], 0 }
   0x2   :  { %16 = vsyncpa [#allocation5], 0 }
   0x3   :  { %18 = vsyncpa [#allocation5 + $0x1], 0  ;;  %s4469_s1 = smov 0   ;;  %s4471_s2 = smov 0  }
   0x4   :  { %s4473_s24 = smov 0   ;;  %s4475_s25 = smov 0  }
   0x5 LB: > { %s4490_s26 = sadd.s32 4294967295, %s4417_s25   ;;  %s3675_s27 = sadd.s32 4294967294, %s4417_s25   ;;  %s4417_s25 = sphi %s4475_s25, %s6905_s25   ;;  %s4413_s24 = sphi %s4473_s24, %s6904_s24   ;;  %s4409_s2 = sphi %s4471_s2, %s6903_s2   ;;  %s4405_s1 = sphi %s4469_s1, %s6902_s1  }
   0x6   : > { %s4494_s28 = sadd.s32 1, %s4417_s25   ;;  %s141_s29 = sadd.s32 1, %s4413_s24 }
   0x7   : > { %s138_s30 = ssub.s32 %s4417_s25, %s4494_s28  ;;  %p151_p0 = scmp.ne.s32.totalorder %s4413_s24, %s4409_s2 }
   0x8   : > { %p139_p1 = scmp.eq.s32.totalorder %s138_s30, 0  ;;  %p152_p2 = scmp.eq.s32.totalorder %s4490_s26, 1 }
   0x9   : > { %p157_p3 = scmp.ne.s32.totalorder %s4409_s2, %s4405_s1  ;;  %p158_p4 = scmp.eq.s32.totalorder %s3675_s27, 1 }
   0xa   : > { %s4507_s8 = scalar_select %p139_p1, %s4413_s24, %s141_s29  }
   0xb   : > { %p4509_p5 = por %p152_p2, %p151_p0  ;;  %p4513_p6 = por %p158_p4, %p157_p3 }
   0xc   : > { %p3678_p7 = scmp.ge.s32.totalorder %s4417_s25, 1  ;;  %p248_p8 = scmp.lt.s32.totalorder %s4417_s25, 3 }
   0xe   : > { %p249_p9 = pnand %p3678_p7, %p248_p8 }
  0x10   : > { %252 = sbr.rel (%p249_p9) target bundleno = 806 (0x326), region = 40 }
  0x15   : > { %p288_p10 = scmp.lt.s32.totalorder %s4490_s26, 1  ;;  %vm404_vm0 = vsmask.f32 7424  ;;  %vm661_vm1 = vcmask 1046528   ;;  %vm919_vm2 = vcmask 1045504   ;;  %s4419_s16 = smov 8  }
  0x16   : > { %s4420_s17 = smov 4   ;;  %vm742_vm3 = vsmask.f32 6400  ;;  %s4421_s18 = smov 16   ;;  %vm1000_vm4 = vsmask.f32 5376 }
  0x17   : > { %s289_s11 = scalar_select %p288_p10, %s4490_s26, 1  ;;  %vm1145_vm5 = vcmask 1044480   ;;  %vm1226_vm6 = vcmask 31744   ;;  %vm1259_vm7 = vcmask 64512   ;;  %vm1292_vm8 = vcmask 97280  }
  0x18   : > { %s4422_s19 = smov 12   ;;  %s4423_s22 = smov 20   ;;  %vm1325_vm9 = vcmask 130048   ;;  %vm1358_vm10 = vcmask 162816   ;;  %vm1391_vm11 = vcmask 195584   ;;  %vm1507_vm12 = vcmask 228352  }
  0x19   : > { %s4230_s12 = smul.u32 528, %s289_s11  ;;  %s4424_s23 = smov 24   ;;  %vm3306_vm13 = vcmask 523264  }
  0x1a   : > { %s6376_s13 = sand.u32 1, %s4409_s2   ;;  %s4425_s11 = smov [#allocation2]  }
  0x1b   : > { %s4524_s15 = scalar_lea.vmem %s6811_s0, %s4230_s12  ;;  %s3679_s14 = sshll.u32 %s6376_s13, 8 }
  0x1c   : > { %v324_v0 = vld [vmem:[%s4524_s15 + $0xf0] sm:$0xff]  ;;  %v325_v1 = vld [vmem:[%s4524_s15 + $0xf8] sm:$0xff]  ;;  %v326_v2 = vld [vmem:[%s4524_s15 + $0x100] sm:$0x3f]  ;;  %s3513_s29 = scalar_lea.sflag [#allocation3], %s6376_s13  ;;  %s4305_s12 = sshll.u32 %s4425_s11, 4  ;;  %s4306_s12 = int_to_ptr.vmem [resolvable:$false] %s4305_s12 }
  0x1d   : > { %v4529_v3 = vpack.c.bf16 %v325_v1, %v324_v0  ;;  %v4531_v4 = vpack.c.bf16 %v326_v2, %v326_v2  ;;  %v321_v5 = vld [vmem:[%s4524_s15 + $0xd8] sm:$0xff]  ;;  %v322_v6 = vld [vmem:[%s4524_s15 + $0xe0] sm:$0xff]  ;;  %v323_v7 = vld [vmem:[%s4524_s15 + $0xe8] sm:$0x3f] }
  0x1e   : > { %v4536_v8 = vpack.c.bf16 %v322_v6, %v321_v5  ;;  %v4538_v9 = vpack.c.bf16 %v323_v7, %v323_v7  ;;  %v297_v10 = vld [vmem:[%s4524_s15 + $0x18] sm:$0xff]  ;;  %v298_v11 = vld [vmem:[%s4524_s15 + $0x20] sm:$0xff]  ;;  %v299_v12 = vld [vmem:[%s4524_s15 + $0x28] sm:$0x3f] }
  0x1f   : > { %v692_v13 = vrot.slane %v4529_v3, 1  ;;  %v693_v14 = vrot.slane %v4531_v4, 1  ;;  %v4545_v15 = vpack.c.bf16 %v298_v11, %v297_v10  ;;  %v4547_v16 = vpack.c.bf16 %v299_v12, %v299_v12  ;;  %v300_v25 = vld [vmem:[%s4524_s15 + $0x30] sm:$0xff]  ;;  %v301_v26 = vld [vmem:[%s4524_s15 + $0x38] sm:$0xff]  ;;  %v302_v31 = vld [vmem:[%s4524_s15 + $0x40] sm:$0x3f] }
  0x20   : > { %v689_v17 = vrot.slane %v4536_v8, 1  ;;  %v690_v18 = vrot.slane %v4538_v9, 1  ;;  %v4552_v19 = vshrl.u32 %v4536_v8, 16  ;;  %v4555_v20 = vshll.u32 %v4536_v8, 16 }
  0x21   : > { %v694_v21 = vsel %vm661_vm1, %v692_v13, %v693_v14  ;;  %v4559_v22 = vshll.u32 %v4538_v9, 16  ;;  %v665_v23 = vrot.slane %v4545_v15, 1  ;;  %v666_v24 = vrot.slane %v4547_v16, 1 }
  0x22   : > { %730 = vrot.lane.b32.xlu0 %v694_v21, %s4419_s16  ;;  %v691_v27 = vsel %vm661_vm1, %v689_v17, %v690_v18  ;;  %v518_v28 = vrot.slane %v4555_v20, 1  ;;  %v4569_v29 = vshrl.u32 %v4529_v3, 16  ;;  %v4572_v30 = vshll.u32 %v4529_v3, 16 }
  0x23   : > { %728 = vrot.lane.b32.xlu1 %v691_v27, %s4419_s16  ;;  %v523_v32 = vrot.slane %v4559_v22, 1  ;;  %v667_v33 = vsel %vm661_vm1, %v665_v23, %v666_v24  ;;  %v4579_v34 = vshll.u32 %v4531_v4, 16  ;;  %v947_v35 = vrot.slane %v4536_v8, 2 }
  0x24   : > { %v519_v36 = vor.u32 %v518_v28, %v4552_v19  ;;  %v530_v37 = vrot.slane %v4572_v30, 1  ;;  %v948_v38 = vrot.slane %v4538_v9, 2  ;;  %v4585_v39 = vpack.c.bf16 %v301_v26, %v300_v25 }
  0x25   : > { %v535_v40 = vrot.slane %v4579_v34, 1  ;;  %v4588_v41 = vpack.c.bf16 %v302_v31, %v302_v31  ;;  %v4591_v42 = vshrl.u32 %v4545_v15, 16  ;;  %v4594_v43 = vshll.u32 %v4545_v15, 16 }
  0x26   : > { %v524_v44 = vsel %vm404_vm0, %v519_v36, %v523_v32  ;;  %v531_v45 = vor.u32 %v530_v37, %v4569_v29  ;;  %v949_v46 = vsel %vm919_vm2, %v947_v35, %v948_v38  ;;  %v4600_v47 = vshrl.u32 %v4585_v39, 16 }
  0x27   : > { %615 = vrot.lane.b32.xlu0 %v524_v44, %s4420_s17  ;;  %712 = vrot.lane.b32.xlu1 %v667_v33, %s4419_s16  ;;  %v4605_v48 = vshll.u32 %v4585_v39, 16  ;;  %v4608_v49 = vshll.u32 %v4588_v41, 16  ;;  %v422_v50 = vrot.slane %v4594_v43, 1  ;;  %v4612_v51 = vshll.u32 %v4547_v16, 16 }
  0x28   : > { %v536_v52 = vsel %vm404_vm0, %v531_v45, %v535_v40  ;;  %v833_v53 = vrot.slane %v4569_v29, 1  ;;  %v834_v54 = vrot.slane %v4572_v30, 2  ;;  %v836_v55 = vshrl.u32 %v4531_v4, 16 }
  0x29   : > { %v434_v56 = vrot.slane %v4605_v48, 1  ;;  %v439_v57 = vrot.slane %v4608_v49, 1  ;;  %v423_v58 = vor.u32 %v422_v50, %v4591_v42  ;;  %v427_v59 = vrot.slane %v4612_v51, 1 }
  0x2a   : > { %v838_v60 = vrot.slane %v836_v55, 1  ;;  %v839_v61 = vrot.slane %v4579_v34, 2  ;;  %v824_v62 = vrot.slane %v4552_v19, 1  ;;  %v835_v0 = vor.u32 %v834_v54, %v833_v53  ;;  %v4660_v53 = vld [vmem:[%s6814_s3 + $0x18] sm:$0x3f]  }
  0x2b   : > { %617 = vrot.lane.b32.xlu0 %v536_v52, %s4420_s17  ;;  %986 = vrot.lane.b32.xlu1 %v949_v46, %s4421_s18  ;;  %v435_v63 = vor.u32 %v434_v56, %v4600_v47  ;;  %v825_v1 = vrot.slane %v4555_v20, 2  ;;  %v827_v2 = vshrl.u32 %v4538_v9, 16  ;;  %v428_v5 = vsel %vm404_vm0, %v423_v58, %v427_v59 }
  0x2c   : > { %v840_v6 = vor.u32 %v839_v61, %v838_v60  ;;  %v830_v7 = vrot.slane %v4559_v22, 2  ;;  %v752_v13 = vrot.slane %v4591_v42, 1  ;;  %v668_v14 = vrot.slane %v4585_v39, 1  ;;  %4223 = vmatprep.subr.msk.bf16.mxu1 %vm919_vm2, %v4660_v53  ;;  %4222 = vmatprep.subr.msk.bf16.mxu0 %vm919_vm2, %v4660_v53 }
  0x2d   : > { %v440_v10 = vsel %vm404_vm0, %v435_v63, %v439_v57  ;;  %v826_v11 = vor.u32 %v825_v1, %v824_v62  ;;  %v829_v12 = vrot.slane %v827_v2, 1  ;;  %v753_v17 = vrot.slane %v4594_v43, 2  ;;  %v327_v1 = vld [vmem:[%s4524_s15 + $0x108] sm:$0xff] }
  0x2e   : > { %v755_v18 = vshrl.u32 %v4547_v16, 16  ;;  %v841_v21 = vsel %vm742_vm3, %v835_v0, %v840_v6  ;;  %v669_v24 = vrot.slane %v4588_v41, 1  ;;  %v758_v25 = vrot.slane %v4612_v51, 2 }
  0x2f   : > { %601 = vrot.lane.b32.xlu0 %v440_v10, %s4420_s17  ;;  %599 = vrot.lane.b32.xlu1 %v428_v5, %s4420_s17  ;;  %v831_v23 = vor.u32 %v830_v7, %v829_v12  ;;  %v754_v26 = vor.u32 %v753_v17, %v752_v13  ;;  %v1064_v28 = vrot.slane %v4552_v19, 2  ;;  %v1065_v31 = vrot.slane %v4555_v20, 3  ;;  %v331_v12 = vld [vmem:[%s4524_s15 + $0x128] sm:$0xff]  ;;  %v329_v13 = vld [vmem:[%s4524_s15 + $0x118] sm:$0x3f] }
  0x30   : > { %v757_v27 = vrot.slane %v755_v18, 1  ;;  %v1067_v33 = vrot.slane %v827_v2, 2  ;;  %v1068_v35 = vrot.slane %v4559_v22, 3  ;;  %v950_v37 = vrot.slane %v4529_v3, 2  ;;  %v328_v2 = vld [vmem:[%s4524_s15 + $0x110] sm:$0xff] }
  0x31   : > { %v832_v32 = vsel %vm742_vm3, %v826_v11, %v831_v23  ;;  %v951_v38 = vrot.slane %v4531_v4, 2  ;;  %v1066_v40 = vor.u32 %v1065_v31, %v1064_v28  ;;  %v761_v19 = vrot.slane %v4600_v47, 1 }
  0x32   : > { %v759_v36 = vor.u32 %v758_v25, %v757_v27  ;;  %v1069_v44 = vor.u32 %v1068_v35, %v1067_v33  ;;  %v762_v20 = vrot.slane %v4605_v48, 2  ;;  %v764_v45 = vshrl.u32 %v4588_v41, 16  ;;  %v303_v33 = vld [vmem:[%s4524_s15 + $0x48] sm:$0xff]  ;;  %v304_v35 = vld [vmem:[%s4524_s15 + $0x50] sm:$0xff] }
  0x33   : > { %907 = vrot.lane.b32.xlu0 %v841_v21, %s4422_s19  ;;  %905 = vrot.lane.b32.xlu1 %v832_v32, %s4422_s19  ;;  %v670_v22 = vsel %vm661_vm1, %v668_v14, %v669_v24  ;;  %v767_v50 = vrot.slane %v4608_v49, 2  ;;  %v952_v54 = vsel %vm919_vm2, %v950_v37, %v951_v38  ;;  %v923_v56 = vrot.slane %v4545_v15, 2 }
  0x34   : > { %v760_v46 = vsel %vm742_vm3, %v754_v26, %v759_v36  ;;  %v766_v52 = vrot.slane %v764_v45, 1  ;;  %v1070_v57 = vsel %vm1000_vm4, %v1066_v40, %v1069_v44  ;;  %v763_v58 = vor.u32 %v762_v20, %v761_v19 }
  0x35   : > { %v924_v59 = vrot.slane %v4547_v16, 2  ;;  %v1071_v60 = vrot.slane %v4569_v29, 2  ;;  %v1072_v62 = vrot.slane %v4572_v30, 3  ;;  %v1074_v63 = vrot.slane %v836_v55, 2 }
  0x36   : > { %v768_v61 = vor.u32 %v767_v50, %v766_v52  ;;  %v1075_v0 = vrot.slane %v4579_v34, 3  ;;  %v1008_v29 = vrot.slane %v4591_v42, 2  ;;  %v1009_v5 = vrot.slane %v4594_v43, 3  ;;  %v330_v43 = vld [vmem:[%s4524_s15 + $0x120] sm:$0xff] }
  0x37   : > { %714 = vrot.lane.b32.xlu0 %v670_v22, %s4419_s16  ;;  %889 = vrot.lane.b32.xlu1 %v760_v46, %s4422_s19  ;;  %v1011_v30 = vrot.slane %v755_v18, 2  ;;  %v1012_v55 = vrot.slane %v4612_v51, 3  ;;  %v925_v34 = vsel %vm919_vm2, %v923_v56, %v924_v59  ;;  %v1173_v6 = vrot.slane %v4536_v8, 3 }
  0x38   : > { %v769_v7 = vsel %vm742_vm3, %v763_v58, %v768_v61  ;;  %v1073_v10 = vor.u32 %v1072_v62, %v1071_v60  ;;  %v1076_v11 = vor.u32 %v1075_v0, %v1074_v63  ;;  %v1174_v42 = vrot.slane %v4538_v9, 3  ;;  %v306_v63 = vld [vmem:[%s4524_s15 + $0x60] sm:$0xff]  ;;  %v307_v0 = vld [vmem:[%s4524_s15 + $0x68] sm:$0xff] }
  0x39   : > { %v926_v51 = vrot.slane %v4585_v39, 2  ;;  %v4692_v14 = vpack.c.bf16 %v328_v2, %v327_v1  ;;  %v927_v17 = vrot.slane %v4588_v41, 2  ;;  %v1010_v18 = vor.u32 %v1009_v5, %v1008_v29 }
  0x3a   : > { %v1013_v21 = vor.u32 %v1012_v55, %v1011_v30  ;;  %v1015_v23 = vrot.slane %v4600_v47, 2  ;;  %v1016_v9 = vrot.slane %v4605_v48, 3  ;;  %v1018_v24 = vrot.slane %v764_v45, 2  ;;  %v332_v47 = vld [vmem:[%s4524_s15 + $0x130] sm:$0x3f] }
  0x3b   : > { %988 = vrot.lane.b32.xlu0 %v952_v54, %s4421_s18  ;;  %1131 = vrot.lane.b32.xlu1 %v1070_v57, %s4423_s22  ;;  %v1019_v25 = vrot.slane %v4608_v49, 3  ;;  %v4700_v26 = vpack.c.bf16 %v331_v12, %v330_v43  ;;  %v1077_v27 = vsel %vm1000_vm4, %v1073_v10, %v1076_v11  ;;  %v1175_v28 = vsel %vm1145_vm5, %v1173_v6, %v1174_v42  ;;  %v308_v11 = vld [vmem:[%s4524_s15 + $0x70] sm:$0x3f] }
  0x3c   : > { %v4704_v31 = vpack.c.bf16 %v329_v13, %v329_v13  ;;  %v4707_v32 = vshll.u32 %v4692_v14, 16  ;;  %v928_v48 = vsel %vm919_vm2, %v926_v51, %v927_v17  ;;  %v1014_v36 = vsel %vm1000_vm4, %v1010_v18, %v1013_v21 }
  0x3d   : > { %v1176_v49 = vrot.slane %v4529_v3, 3  ;;  %v1177_v37 = vrot.slane %v4531_v4, 3  ;;  %v1017_v38 = vor.u32 %v1016_v9, %v1015_v23  ;;  %v1020_v40 = vor.u32 %v1019_v25, %v1018_v24  ;;  %v305_v4 = vld [vmem:[%s4524_s15 + $0x58] sm:$0x3f] }
  0x3e   : > { %v4718_v44 = vpack.c.bf16 %v332_v47, %v332_v47  ;;  %v4721_v19 = vshll.u32 %v4700_v26, 16  ;;  %v4724_v20 = vshrl.u32 %v4692_v14, 16  ;;  %v542_v45 = vrot.slane %v4707_v32, 1 }
  0x3f   : > { %891 = vrot.lane.b32.xlu0 %v769_v7, %s4422_s19  ;;  %970 = vrot.lane.b32.xlu1 %v925_v34, %s4421_s18  ;;  %v4728_v22 = vshll.u32 %v4704_v31, 16  ;;  %v4731_v46 = vpack.c.bf16 %v304_v35, %v303_v33  ;;  %v1178_v50 = vsel %vm1145_vm5, %v1176_v49, %v1177_v37  ;;  %v1149_v52 = vrot.slane %v4545_v15, 3 }
  0x40   : > { %v1150_v54 = vrot.slane %v4547_v16, 3  ;;  %v4739_v56 = vshrl.u32 %v4700_v26, 16  ;;  %v554_v57 = vrot.slane %v4721_v19, 1  ;;  %v4743_v58 = vshll.u32 %v4718_v44, 16 }
  0x41   : > { %v4745_v59 = vpack.c.bf16 %v305_v4, %v305_v4  ;;  %v1021_v60 = vsel %vm1000_vm4, %v1017_v38, %v1020_v40  ;;  %v543_v61 = vor.u32 %v542_v45, %v4724_v20  ;;  %v547_v16 = vrot.slane %v4728_v22, 1 }
  0x42   : > { %v4751_v62 = vshll.u32 %v4731_v46, 16  ;;  %v1151_v1 = vsel %vm1145_vm5, %v1149_v52, %v1150_v54  ;;  %v1152_v2 = vrot.slane %v4585_v39, 3  ;;  %v1153_v29 = vrot.slane %v4588_v41, 3 }
  0x43   : > { %1133 = vrot.lane.b32.xlu0 %v1077_v27, %s4423_s22  ;;  %1212 = vrot.lane.b32.xlu1 %v1175_v28, %s4424_s23  ;;  %v555_v5 = vor.u32 %v554_v57, %v4739_v56  ;;  %v559_v30 = vrot.slane %v4743_v58, 1  ;;  %v4763_v55 = vshrl.u32 %v4731_v46, 16  ;;  %v4766_v34 = vshll.u32 %v4745_v59, 16 }
  0x44   : > { %v548_v6 = vsel %vm404_vm0, %v543_v61, %v547_v16  ;;  %v446_v7 = vrot.slane %v4751_v62, 1  ;;  %v845_v41 = vshrl.u32 %v4704_v31, 16  ;;  %v4771_v10 = vpack.c.bf16 %v307_v0, %v306_v63 }
  0x45   : > { %v1154_v42 = vsel %vm1145_vm5, %v1152_v2, %v1153_v29  ;;  %v695_v43 = vrot.slane %v4692_v14, 1  ;;  %v696_v12 = vrot.slane %v4704_v31, 1  ;;  %v842_v51 = vrot.slane %v4724_v20, 1 }
  0x46   : > { %v560_v13 = vsel %vm404_vm0, %v555_v5, %v559_v30  ;;  %v451_v17 = vrot.slane %v4766_v34, 1  ;;  %v843_v18 = vrot.slane %v4707_v32, 2  ;;  %v848_v21 = vrot.slane %v4728_v22, 2 }
  0x47   : > { %972 = vrot.lane.b32.xlu0 %v928_v48, %s4421_s18  ;;  %1115 = vrot.lane.b32.xlu1 %v1014_v36, %s4423_s22  ;;  %v447_v23 = vor.u32 %v446_v7, %v4763_v55  ;;  %v847_v9 = vrot.slane %v845_v41, 1  ;;  %v4787_v24 = vpack.c.bf16 %v308_v11, %v308_v11  ;;  %v4790_v25 = vshll.u32 %v4771_v10, 16 }
  0x48   : > { %v698_v27 = vrot.slane %v4700_v26, 1  ;;  %v699_v28 = vrot.slane %v4718_v44, 1  ;;  %v697_v47 = vsel %vm661_vm1, %v695_v43, %v696_v12  ;;  %v844_v33 = vor.u32 %v843_v18, %v842_v51 }
  0x49   : > { %v4798_v35 = vshrl.u32 %v4771_v10, 16  ;;  %v854_v48 = vshrl.u32 %v4718_v44, 16  ;;  %v452_v36 = vsel %vm404_vm0, %v447_v23, %v451_v17  ;;  %v849_v49 = vor.u32 %v848_v21, %v847_v9 }
  0x4a   : > { %v458_v37 = vrot.slane %v4790_v25, 1  ;;  %v4804_v38 = vshll.u32 %v4787_v24, 16  ;;  %v700_v40 = vsel %vm661_vm1, %v698_v27, %v699_v28  ;;  %v671_v45 = vrot.slane %v4731_v46, 1 }
  0x4b   : > { %1214 = vrot.lane.b32.xlu0 %v1178_v50, %s4424_s23  ;;  %1117 = vrot.lane.b32.xlu1 %v1021_v60, %s4423_s22  ;;  %v672_v4 = vrot.slane %v4745_v59, 1  ;;  %v851_v50 = vrot.slane %v4739_v56, 1  ;;  %v852_v52 = vrot.slane %v4721_v19, 2  ;;  %v856_v54 = vrot.slane %v854_v48, 1 }
  0x4c   : > { %v857_v57 = vrot.slane %v4743_v58, 2  ;;  %v850_v60 = vsel %vm742_vm3, %v844_v33, %v849_v49  ;;  %v459_v61 = vor.u32 %v458_v37, %v4798_v35  ;;  %v463_v16 = vrot.slane %v4804_v38, 1 }
  0x4d   : > { %v773_v63 = vshrl.u32 %v4745_v59, 16  ;;  %v953_v0 = vrot.slane %v4692_v14, 2  ;;  %v853_v2 = vor.u32 %v852_v52, %v851_v50  ;;  %v770_v5 = vrot.slane %v4763_v55, 1 }
  0x4e   : > { %v858_v29 = vor.u32 %v857_v57, %v856_v54  ;;  %v771_v30 = vrot.slane %v4751_v62, 2  ;;  %v673_v7 = vsel %vm661_vm1, %v671_v45, %v672_v4  ;;  %v674_v12 = vrot.slane %v4771_v10, 1 }
  0x4f   : > { %1196 = vrot.lane.b32.xlu0 %v1151_v1, %s4424_s23  ;;  %619 = vrot.lane.b32.xlu1 %v548_v6, %s4420_s17  ;;  %v954_v1 = vrot.slane %v4704_v31, 2  ;;  %v464_v6 = vsel %vm404_vm0, %v459_v61, %v463_v16  ;;  %v775_v11 = vrot.slane %v773_v63, 1  ;;  %v675_v51 = vrot.slane %v4787_v24, 1 }
  0x50   : > { %v772_v17 = vor.u32 %v771_v30, %v770_v5  ;;  %v1078_v18 = vrot.slane %v4724_v20, 2  ;;  %v1079_v21 = vrot.slane %v4707_v32, 3  ;;  %v1081_v9 = vrot.slane %v845_v41, 2 }
  0x51   : > { %v955_v43 = vsel %vm919_vm2, %v953_v0, %v954_v1  ;;  %v1082_v27 = vrot.slane %v4728_v22, 3  ;;  %v782_v28 = vshrl.u32 %v4787_v24, 16  ;;  %v957_v33 = vrot.slane %v4718_v44, 2  ;;  %v333_v1 = vld [vmem:[%s4524_s15 + $0x138] sm:$0xff] }
  0x52   : > { %v676_v20 = vsel %vm661_vm1, %v674_v12, %v675_v51  ;;  %v779_v32 = vrot.slane %v4798_v35, 1  ;;  %v780_v49 = vrot.slane %v4790_v25, 2  ;;  %v929_v4 = vrot.slane %v4731_v46, 2 }
  0x53   : > { %1198 = vrot.lane.b32.xlu0 %v1154_v42, %s4424_s23  ;;  %621 = vrot.lane.b32.xlu1 %v560_v13, %s4420_s17  ;;  %v776_v42 = vrot.slane %v4766_v34, 2  ;;  %v859_v13 = vsel %vm742_vm3, %v853_v2, %v858_v29  ;;  %v1083_v22 = vor.u32 %v1082_v27, %v1081_v9  ;;  %v784_v37 = vrot.slane %v782_v28, 1  ;;  %v334_v2 = vld [vmem:[%s4524_s15 + $0x140] sm:$0xff] }
  0x54   : > { %v781_v50 = vor.u32 %v780_v49, %v779_v32  ;;  %v930_v52 = vrot.slane %v4745_v59, 2  ;;  %v1085_v54 = vrot.slane %v4739_v56, 2  ;;  %v1086_v57 = vrot.slane %v4721_v19, 3 }
  0x55   : > { %v777_v23 = vor.u32 %v776_v42, %v775_v11  ;;  %v1088_v16 = vrot.slane %v854_v48, 2  ;;  %v1089_v0 = vrot.slane %v4743_v58, 3  ;;  %v1022_v29 = vrot.slane %v4763_v55, 2  ;;  %v335_v42 = vld [vmem:[%s4524_s15 + $0x148] sm:$0x3f] }
  0x56   : > { %v1023_v5 = vrot.slane %v4751_v62, 3  ;;  %v1025_v56 = vrot.slane %v773_v63, 2  ;;  %v1026_v19 = vrot.slane %v4766_v34, 3  ;;  %v931_v48 = vsel %vm919_vm2, %v929_v4, %v930_v52  ;;  %v336_v62 = vld [vmem:[%s4524_s15 + $0x150] sm:$0xff]  ;;  %v337_v63 = vld [vmem:[%s4524_s15 + $0x158] sm:$0xff] }
  0x57   : > { %732 = vrot.lane.b32.xlu0 %v697_v47, %s4419_s16  ;;  %603 = vrot.lane.b32.xlu1 %v452_v36, %s4420_s17  ;;  %v956_v47 = vrot.slane %v4700_v26, 2  ;;  %v1080_v36 = vor.u32 %v1079_v21, %v1078_v18  ;;  %v778_v41 = vsel %vm742_vm3, %v772_v17, %v777_v23  ;;  %v1087_v30 = vor.u32 %v1086_v57, %v1085_v54 }
  0x58   : > { %v1179_v58 = vrot.slane %v4692_v14, 3  ;;  %v1180_v55 = vrot.slane %v4704_v31, 3  ;;  %v4872_v11 = vpack.c.bf16 %v334_v2, %v333_v1  ;;  %v932_v34 = vrot.slane %v4771_v10, 2 }
  0x59   : > { %v958_v45 = vsel %vm919_vm2, %v956_v47, %v957_v33  ;;  %v1024_v12 = vor.u32 %v1023_v5, %v1022_v29  ;;  %v1027_v51 = vor.u32 %v1026_v19, %v1025_v56  ;;  %v1030_v31 = vrot.slane %v4790_v25, 3  ;;  %v309_v33 = vld [vmem:[%s4524_s15 + $0x78] sm:$0xff]  ;;  %v312_v29 = vld [vmem:[%s4524_s15 + $0x90] sm:$0xff] }
  0x5a   : > { %v1032_v17 = vrot.slane %v782_v28, 2  ;;  %v1033_v18 = vrot.slane %v4804_v38, 3  ;;  %v4884_v21 = vpack.c.bf16 %v337_v63, %v336_v62  ;;  %v1181_v9 = vsel %vm1145_vm5, %v1179_v58, %v1180_v55  ;;  %v313_v5 = vld [vmem:[%s4524_s15 + $0x98] sm:$0xff] }
  0x5b   : > { %734 = vrot.lane.b32.xlu0 %v700_v40, %s4419_s16  ;;  %909 = vrot.lane.b32.xlu1 %v850_v60, %s4422_s19  ;;  %v785_v40 = vrot.slane %v4804_v38, 2  ;;  %v1084_v60 = vsel %vm1000_vm4, %v1080_v36, %v1083_v22  ;;  %v4888_v27 = vpack.c.bf16 %v335_v42, %v335_v42  ;;  %v4891_v47 = vshll.u32 %v4872_v11, 16 }
  0x5c   : > { %v1028_v28 = vsel %vm1000_vm4, %v1024_v12, %v1027_v51  ;;  %v1182_v38 = vrot.slane %v4700_v26, 3  ;;  %v1183_v36 = vrot.slane %v4718_v44, 3  ;;  %v1034_v49 = vor.u32 %v1033_v18, %v1032_v17  ;;  %v311_v44 = vld [vmem:[%s4524_s15 + $0x88] sm:$0x3f] }
  0x5d   : > { %v786_v61 = vor.u32 %v785_v40, %v784_v37  ;;  %v4905_v22 = vshll.u32 %v4884_v21, 16  ;;  %v4908_v37 = vshrl.u32 %v4872_v11, 16  ;;  %v566_v40 = vrot.slane %v4891_v47, 1 }
  0x5e   : > { %v1155_v52 = vrot.slane %v4731_v46, 3  ;;  %v1156_v54 = vrot.slane %v4745_v59, 3  ;;  %v4923_v57 = vshrl.u32 %v4884_v21, 16  ;;  %v1158_v19 = vrot.slane %v4771_v10, 3 }
  0x5f   : > { %605 = vrot.lane.b32.xlu0 %v464_v6, %s4420_s17  ;;  %716 = vrot.lane.b32.xlu1 %v673_v7, %s4419_s16  ;;  %v787_v6 = vsel %vm742_vm3, %v781_v50, %v786_v61  ;;  %v1090_v7 = vor.u32 %v1089_v0, %v1088_v16  ;;  %v1184_v50 = vsel %vm1145_vm5, %v1182_v38, %v1183_v36  ;;  %v702_v12 = vrot.slane %v4888_v27, 1 }
  0x60   : > { %v4929_v16 = vpack.c.bf16 %v311_v44, %v311_v44  ;;  %v567_v1 = vor.u32 %v566_v40, %v4908_v37  ;;  %v1157_v56 = vsel %vm1145_vm5, %v1155_v52, %v1156_v54  ;;  %v4955_v63 = vpack.c.bf16 %v313_v5, %v312_v29  ;;  %v4288_v52 = vld [vmem:[%s6814_s3 + $0x10] sm:$0xff]  }
  0x61   : > { %v1091_v23 = vsel %vm1000_vm4, %v1087_v30, %v1090_v7  ;;  %v860_v51 = vrot.slane %v4908_v37, 1  ;;  %v861_v17 = vrot.slane %v4891_v47, 2 }
  0x62   : > { %v4950_v7 = vshll.u32 %v4929_v16, 16  ;;  %6826 = vst [vmem:[#allocation9_spill] sm:$0xff] %v4955_v63  ;;  %v4982_v36 = vshrl.u32 %v4955_v63, 16 }
  0x63   : > { %911 = vrot.lane.b32.xlu0 %v859_v13, %s4422_s19  ;;  %990 = vrot.lane.b32.xlu1 %v955_v43, %s4421_s18  ;;  %v933_v43 = vrot.slane %v4787_v24, 2  ;;  %v1029_v13 = vrot.slane %v4798_v35, 2  ;;  %v338_v35 = vld [vmem:[%s4524_s15 + $0x160] sm:$0x3f]  ;;  %v862_v38 = vor.u32 %v861_v17, %v860_v51 }
  0x65   : > { %v934_v25 = vsel %vm919_vm2, %v932_v34, %v933_v43  ;;  %v1031_v32 = vor.u32 %v1030_v31, %v1029_v13  ;;  %v314_v34 = vld [vmem:[%s4524_s15 + $0xa0] sm:$0x3f]  ;;  %v701_v43 = vrot.slane %v4872_v11, 1  ;;  %v475_v31 = vrot.slane %v4950_v7, 1 }
  0x67   : > { %718 = vrot.lane.b32.xlu0 %v676_v20, %s4419_s16  ;;  %893 = vrot.lane.b32.xlu1 %v778_v41, %s4422_s19  ;;  %v310_v20 = vld [vmem:[%s4524_s15 + $0x80] sm:$0xff]  ;;  %v4902_v41 = vpack.c.bf16 %v338_v35, %v338_v35  ;;  %v1035_v0 = vsel %vm1000_vm4, %v1031_v32, %v1034_v49  ;;  %v4971_v35 = vpack.c.bf16 %v314_v34, %v314_v34 }
  0x68   : > { %v4915_v4 = vpack.c.bf16 %v310_v20, %v309_v33  ;;  %v4974_v33 = vshll.u32 %v4955_v63, 16  ;;  %v704_v20 = vrot.slane %v4884_v21, 1 }
  0x69   : > { %v4927_v61 = vshll.u32 %v4902_v41, 16  ;;  %v872_v32 = vshrl.u32 %v4902_v41, 16 }
  0x6a   : > { %v4935_v2 = vshll.u32 %v4915_v4, 16  ;;  %v482_v44 = vrot.slane %v4974_v33, 1 }
  0x6b   : > { %992 = vrot.lane.b32.xlu0 %v958_v45, %s4421_s18  ;;  %1135 = vrot.lane.b32.xlu1 %v1084_v60, %s4423_s22  ;;  %v4912_v45 = vshll.u32 %v4888_v27, 16  ;;  %v578_v60 = vrot.slane %v4905_v22, 1  ;;  %v583_v58 = vrot.slane %v4927_v61, 1  ;;  %v874_v29 = vrot.slane %v872_v32, 1 }
  0x6c   : > { %v470_v62 = vrot.slane %v4935_v2, 1  ;;  %v875_v5 = vrot.slane %v4927_v61, 2 }
  0x6d   : > { %v571_v59 = vrot.slane %v4912_v45, 1  ;;  %v579_v30 = vor.u32 %v578_v60, %v4923_v57  ;;  %v866_v18 = vrot.slane %v4912_v45, 2  ;;  %v677_v60 = vrot.slane %v4915_v4, 1 }
  0x6e   : > { %v876_v34 = vor.u32 %v875_v5, %v874_v29 }
  0x6f   : > { %895 = vrot.lane.b32.xlu0 %v787_v6, %s4422_s19  ;;  %974 = vrot.lane.b32.xlu1 %v931_v48, %s4421_s18  ;;  %v1159_v48 = vrot.slane %v4787_v24, 3  ;;  %v4947_v6 = vshrl.u32 %v4915_v4, 16  ;;  %v572_v55 = vsel %vm404_vm0, %v567_v1, %v571_v59  ;;  %v863_v24 = vshrl.u32 %v4888_v27, 16 }
  0x70   : > { %v584_v13 = vsel %vm404_vm0, %v579_v30, %v583_v58  ;;  %v869_v1 = vrot.slane %v4923_v57, 1  ;;  %v870_v59 = vrot.slane %v4905_v22, 2  ;;  %v791_v58 = vshrl.u32 %v4929_v16, 16 }
  0x71   : > { %v1160_v42 = vsel %vm1145_vm5, %v1158_v19, %v1159_v48  ;;  %v483_v48 = vor.u32 %v482_v44, %v4982_v36  ;;  %v800_v44 = vshrl.u32 %v4971_v35, 16 }
  0x73   : > { %1137 = vrot.lane.b32.xlu0 %v1091_v23, %s4423_s22  ;;  %1216 = vrot.lane.b32.xlu1 %v1181_v9, %s4424_s23  ;;  %v471_v23 = vor.u32 %v470_v62, %v4947_v6  ;;  %v865_v9 = vrot.slane %v863_v24, 1  ;;  %v960_v62 = vrot.slane %v4888_v27, 2 }
  0x75   : > { %v476_v49 = vsel %vm404_vm0, %v471_v23, %v475_v31  ;;  %v867_v40 = vor.u32 %v866_v18, %v865_v9  ;;  %v794_v31 = vrot.slane %v4950_v7, 2  ;;  %v680_v18 = vrot.slane %v4955_v63, 1 }
  0x76   : > { %v681_v23 = vrot.slane %v4971_v35, 1 }
  0x77   : > { %976 = vrot.lane.b32.xlu0 %v934_v25, %s4421_s18  ;;  %1119 = vrot.lane.b32.xlu1 %v1028_v28, %s4423_s22  ;;  %v705_v25 = vrot.slane %v4902_v41, 1  ;;  %v703_v28 = vsel %vm661_vm1, %v701_v43, %v702_v12  ;;  %v868_v19 = vsel %vm742_vm3, %v862_v38, %v867_v40  ;;  %v789_v43 = vrot.slane %v4935_v2, 2 }
  0x78   : > { %v1096_v40 = vrot.slane %v4912_v45, 3 }
  0x79   : > { %v706_v54 = vsel %vm661_vm1, %v704_v20, %v705_v25  ;;  %v1092_v25 = vrot.slane %v4908_v37, 2  ;;  %v682_v37 = vsel %vm661_vm1, %v680_v18, %v681_v23  ;;  %v1040_v18 = vrot.slane %v4950_v7, 3 }
  0x7a   : > { %v1185_v23 = vrot.slane %v4872_v11, 3 }
  0x7b   : > { %1218 = vrot.lane.b32.xlu0 %v1184_v50, %s4424_s23  ;;  %1121 = vrot.lane.b32.xlu1 %v1035_v0, %s4423_s22  ;;  %v4988_v50 = vshll.u32 %v4971_v35, 16  ;;  %v678_v0 = vrot.slane %v4929_v16, 1 }
  0x7d   : > { %v487_v30 = vrot.slane %v4988_v50, 1  ;;  %v679_v51 = vsel %vm661_vm1, %v677_v60, %v678_v0  ;;  %v798_v0 = vrot.slane %v4974_v33, 2  ;;  %v803_v29 = vrot.slane %v4988_v50, 2 }
  0x7f   : > { %1200 = vrot.lane.b32.xlu0 %v1157_v56, %s4424_s23  ;;  %623 = vrot.lane.b32.xlu1 %v572_v55, %s4420_s17  ;;  %v1542_v56 = vsel %vm919_vm2, %v4660_v53, 0  ;;  %v959_v55 = vrot.slane %v4872_v11, 2  ;;  %v871_v53 = vor.u32 %v870_v59, %v869_v1  ;;  %v488_v12 = vsel %vm404_vm0, %v483_v48, %v487_v30 }
  0x80   : > { %4220 = vmatpush3.bf16.msra.mxu1 %v1542_v56  ;;  %3967 = vmatpush3.bf16.msra.mxu0 %v1542_v56  ;;  %v802_v59 = vrot.slane %v800_v44, 1  ;;  %v936_v30 = vrot.slane %v4929_v16, 2 }
  0x81   : > { %4219 = vmatprep.subr.bf16.mxu1 %v4288_v52  ;;  %3968 = vmatprep.subr.bf16.mxu0 %v4288_v52  ;;  %v961_v17 = vsel %vm919_vm2, %v959_v55, %v960_v62  ;;  %v877_v9 = vsel %vm742_vm3, %v871_v53, %v876_v34  ;;  %v1099_v55 = vrot.slane %v4923_v57, 2  ;;  %v1100_v62 = vrot.slane %v4905_v22, 3 }
  0x82   : > { %v804_v34 = vor.u32 %v803_v29, %v802_v59  ;;  %v1037_v57 = vrot.slane %v4935_v2, 3  ;;  %v1039_v22 = vrot.slane %v791_v58, 2  ;;  %v1186_v2 = vrot.slane %v4888_v27, 3 }
  0x83   : > { %1202 = vrot.lane.b32.xlu0 %v1160_v42, %s4424_s23  ;;  %625 = vrot.lane.b32.xlu1 %v584_v13, %s4420_s17  ;;  %v788_v42 = vrot.slane %v4947_v6, 1  ;;  %v793_v13 = vrot.slane %v791_v58, 1  ;;  %v1043_v27 = vrot.slane %v4982_v36, 2 }
  0x84   : > { %4221 = vmatpush3.bf16.msra.mxu1 %v4288_v52  ;;  %3969 = vmatpush3.bf16.msra.mxu0 %v4288_v52  ;;  %v962_v52 = vrot.slane %v4884_v21, 2 }
  0x85   : > { %v790_v20 = vor.u32 %v789_v43, %v788_v42  ;;  %v795_v38 = vor.u32 %v794_v31, %v793_v13  ;;  %v1102_v42 = vrot.slane %v872_v32, 2  ;;  %v1103_v43 = vrot.slane %v4927_v61, 3  ;;  %v339_v13 = vld [vmem:[%s4524_s15 + $0x168] sm:$0xff]  ;;  %v340_v31 = vld [vmem:[%s4524_s15 + $0x170] sm:$0xff] }
  0x86   : > { %v1101_v32 = vor.u32 %v1100_v62, %v1099_v55 }
  0x87   : > { %736 = vrot.lane.b32.xlu0 %v703_v28, %s4419_s16  ;;  %607 = vrot.lane.b32.xlu1 %v476_v49, %s4420_s17  ;;  %v1093_v28 = vrot.slane %v4891_v47, 3  ;;  %v1095_v49 = vrot.slane %v863_v24, 2  ;;  %v797_v47 = vrot.slane %v4982_v36, 1  ;;  %v796_v45 = vsel %vm742_vm3, %v790_v20, %v795_v38 }
  0x88   : > { %v1104_v20 = vor.u32 %v1103_v43, %v1102_v42  ;;  %v939_v38 = vrot.slane %v4971_v35, 2 }
  0x89   : > { %v1094_v60 = vor.u32 %v1093_v28, %v1092_v25  ;;  %v1097_v1 = vor.u32 %v1096_v40, %v1095_v49  ;;  %v799_v48 = vor.u32 %v798_v0, %v797_v47  ;;  %v341_v25 = vld [vmem:[%s4524_s15 + $0x178] sm:$0x3f]  ;;  %v938_v28 = vrot.slane %v4955_v63, 2  ;;  %v343_v47 = vld [vmem:[%s4524_s15 + $0x188] sm:$0xff] }
  0x8a   : > { %v1041_v40 = vor.u32 %v1040_v18, %v1039_v22  ;;  %v1105_v0 = vsel %vm1000_vm4, %v1101_v32, %v1104_v20  ;;  %v1162_v32 = vrot.slane %v4929_v16, 3  ;;  %v1164_v16 = vrot.slane %v4955_v63, 3 }
  0x8b   : > { %738 = vrot.lane.b32.xlu0 %v706_v54, %s4419_s16  ;;  %913 = vrot.lane.b32.xlu1 %v868_v19, %s4422_s19  ;;  %v963_v54 = vrot.slane %v4902_v41, 2  ;;  %v935_v19 = vrot.slane %v4915_v4, 2  ;;  %v1098_v53 = vsel %vm1000_vm4, %v1094_v60, %v1097_v1  ;;  %v342_v60 = vld [vmem:[%s4524_s15 + $0x180] sm:$0xff]  ;;  %v5091_v1 = vpack.c.bf16 %v341_v25, %v341_v25 }
  0x8d   : > { %v964_v56 = vsel %vm919_vm2, %v962_v52, %v963_v54  ;;  %v937_v61 = vsel %vm919_vm2, %v935_v19, %v936_v30  ;;  %v1044_v52 = vrot.slane %v4974_v33, 3  ;;  %v1046_v54 = vrot.slane %v800_v44, 2  ;;  %v315_v33 = vld [vmem:[%s4524_s15 + $0xa8] sm:$0xff]  ;;  %v316_v44 = vld [vmem:[%s4524_s15 + $0xb0] sm:$0xff] }
  0x8e   : > { %v5104_v19 = vpack.c.bf16 %v343_v47, %v342_v60  ;;  %v1189_v30 = vrot.slane %v4902_v41, 3  ;;  %v5116_v43 = vshll.u32 %v5091_v1, 16 }
  0x8f   : > { %609 = vrot.lane.b32.xlu0 %v488_v12, %s4420_s17  ;;  %720 = vrot.lane.b32.xlu1 %v679_v51, %s4419_s16  ;;  %v1045_v55 = vor.u32 %v1044_v52, %v1043_v27  ;;  %v1165_v27 = vrot.slane %v4971_v35, 3 }
  0x90   : > { %v5126_v22 = vshll.u32 %v5104_v19, 16 }
  0x92   : > { %v1433_v60 = vrot.slane %v5126_v22, 1 }
  0x93   : > { %915 = vrot.lane.b32.xlu0 %v877_v9, %s4422_s19  ;;  %994 = vrot.lane.b32.xlu1 %v961_v17, %s4421_s18  ;;  %v1036_v17 = vrot.slane %v4947_v6, 2  ;;  %v805_v9 = vsel %vm742_vm3, %v799_v48, %v804_v34  ;;  %v5073_v6 = vpack.c.bf16 %v340_v31, %v339_v13  ;;  %v317_v13 = vld [vmem:[%s4524_s15 + $0xb8] sm:$0x3f]  ;;  %v5119_v31 = vpack.c.bf16 %v316_v44, %v315_v33 }
  0x94   : > { %v5039_v24 = vpop.permute.xlu0 %730 }
  0x95   : > { %v5043_v5 = vpop.permute.xlu1 %728  ;;  %v1038_v49 = vor.u32 %v1037_v57, %v1036_v17  ;;  %v5094_v59 = vshll.u32 %v5073_v6, 16  ;;  %v5112_v34 = vshrl.u32 %v5073_v6, 16  ;;  %v5139_v25 = vshll.u32 %v5119_v31, 16 }
  0x96   : > { %v707_v52 = vrot.slane %v5073_v6, 1  ;;  %v5168_v44 = vshrl.u32 %v5119_v31, 16 }
  0x97   : > { %722 = vrot.lane.b32.xlu0 %v682_v37, %s4419_s16  ;;  %897 = vrot.lane.b32.xlu1 %v796_v45, %s4422_s19  ;;  %v1047_v37 = vrot.slane %v4988_v50, 3  ;;  %v1187_v45 = vsel %vm1145_vm5, %v1185_v23, %v1186_v2  ;;  %v940_v50 = vsel %vm919_vm2, %v938_v28, %v939_v38  ;;  %v1042_v48 = vsel %vm1000_vm4, %v1038_v49, %v1041_v40  ;;  %v318_v28 = vld [vmem:[%s4524_s15 + $0xc0] sm:$0xff]  ;;  %v319_v38 = vld [vmem:[%s4524_s15 + $0xc8] sm:$0xff] }
  0x98   : > { %v590_v42 = vrot.slane %v5094_v59, 1  ;;  %v5133_v23 = vpack.c.bf16 %v317_v13, %v317_v13  ;;  %v595_v2 = vrot.slane %v5116_v43, 1 }
  0x99   : > { %v5056_v12 = vpop.permute.xlu0 %615  ;;  %v5058_v51 = vpop.permute.xlu1 %712  ;;  %v1048_v62 = vor.u32 %v1047_v37, %v1046_v54  ;;  %v708_v54 = vrot.slane %v5091_v1, 1  ;;  %v5152_v37 = vshrl.u32 %v5104_v19, 16 }
  0x9a   : > { %v591_v20 = vor.u32 %v590_v42, %v5112_v34  ;;  %v5162_v35 = vshll.u32 %v5133_v23, 16 }
  0x9b   : > { %996 = vrot.lane.b32.xlu0 %v964_v56, %s4421_s18  ;;  %1139 = vrot.lane.b32.xlu1 %v1098_v53, %s4423_s22  ;;  %v1188_v56 = vrot.slane %v4884_v21, 3  ;;  %v344_v53 = vld [vmem:[%s4524_s15 + $0x190] sm:$0x3f]  ;;  %v709_v42 = vsel %vm661_vm1, %v707_v52, %v708_v54  ;;  %v1434_v13 = vor.u32 %v1433_v60, %v5152_v37  ;;  %v1449_v63 = vrot.slane %v5152_v37, 1 }
  0x9c   : > { %v5123_v41 = vpack.c.bf16 %v344_v53, %v344_v53  ;;  %v596_v33 = vsel %vm404_vm0, %v591_v20, %v595_v2  ;;  %v1166_v53 = vsel %vm1145_vm5, %v1164_v16, %v1165_v27 }
  0x9d   : > { %v5075_v58 = vpop.permute.xlu0 %617  ;;  %v5077_v7 = vpop.permute.xlu1 %986  ;;  %v1190_v18 = vsel %vm1145_vm5, %v1188_v56, %v1189_v30  ;;  %v6819_v56 = vshrl.u32 %v5091_v1, 16  ;;  %v1246_v30 = vsel %vm1226_vm6, %v4536_v8, %v5056_v12  ;;  %v499_v8 = vrot.slane %v5162_v35, 1 }
  0x9e   : > { %v5156_v47 = vshll.u32 %v5123_v41, 16  ;;  %v879_v12 = vrot.slane %v5094_v59, 2  ;;  %v1279_v20 = vsel %vm1259_vm7, %v1246_v30, %v5043_v5  ;;  %v1444_v5 = vrot.slane %v5104_v19, 1 }
  0x9f   : > { %899 = vrot.lane.b32.xlu0 %v805_v9, %s4422_s19  ;;  %978 = vrot.lane.b32.xlu1 %v937_v61, %s4421_s18  ;;  %v1161_v61 = vrot.slane %v4915_v4, 3  ;;  %v1049_v9 = vsel %vm1000_vm4, %v1045_v55, %v1048_v62  ;;  %v1445_v60 = vrot.slane %v5123_v41, 1 }
  0xa1   : > { %v5096_v29 = vpop.permute.xlu0 %601  ;;  %v5098_v36 = vpop.permute.xlu1 %599 }
  0xa3   : > { %1141 = vrot.lane.b32.xlu0 %v1105_v0, %s4423_s22  ;;  %1220 = vrot.lane.b32.xlu1 %v1187_v45, %s4424_s23  ;;  %v1163_v0 = vsel %vm1145_vm5, %v1161_v61, %v1162_v32  ;;  %v5164_v45 = vpack.c.bf16 %v319_v38, %v318_v28  ;;  %v878_v61 = vrot.slane %v5112_v34, 1  ;;  %v883_v28 = vrot.slane %v6819_v56, 1 }
  0xa4   : > { %v884_v38 = vrot.slane %v5116_v43, 2  ;;  %v684_v56 = vrot.slane %v5133_v23, 1 }
  0xa5   : > { %v5121_v17 = vpop.permute.xlu0 %907  ;;  %v906_v57 = vpop.permute.xlu1 %905 }
  0xa6   : > { %v1312_v16 = vsel %vm1292_vm8, %v1279_v20, %v906_v57  ;;  %v5209_v57 = vshrl.u32 %v5164_v45, 16 }
  0xa7   : > { %980 = vrot.lane.b32.xlu0 %v940_v50, %s4421_s18  ;;  %1123 = vrot.lane.b32.xlu1 %v1042_v48, %s4423_s22  ;;  %v494_v50 = vrot.slane %v5139_v25, 1  ;;  %v320_v48 = vld [vmem:[%s4524_s15 + $0xd0] sm:$0x3f] }
  0xa8   : > { %v5187_v32 = vpack.c.bf16 %v320_v48, %v320_v48  ;;  %v1345_v48 = vsel %vm1325_vm9, %v1312_v16, %v5077_v7  ;;  %v1450_v7 = vrot.slane %v5126_v22, 2 }
  0xa9   : > { %v5143_v49 = vpop.permute.xlu0 %714  ;;  %v5145_v40 = vpop.permute.xlu1 %889  ;;  %v495_v2 = vor.u32 %v494_v50, %v5168_v44 }
  0xaa   : > { %v5213_v50 = vshll.u32 %v5187_v32, 16 }
  0xab   : > { %1222 = vrot.lane.b32.xlu0 %v1190_v18, %s4424_s23  ;;  %1125 = vrot.lane.b32.xlu1 %v1049_v9, %s4423_s22  ;;  %v1438_v18 = vrot.slane %v5156_v47, 1  ;;  %v5190_v9 = vshll.u32 %v5164_v45, 16  ;;  %v500_v30 = vsel %vm404_vm0, %v495_v2, %v499_v8  ;;  %v1248_v8 = vsel %vm1226_vm6, %v4529_v3, %v5075_v58 }
  0xac   : > { %v1455_v3 = vrot.slane %v5156_v47, 2 }
  0xad   : > { %v5176_v55 = vpop.permute.xlu0 %988  ;;  %v1132_v62 = vpop.permute.xlu1 %1131  ;;  %v1439_v54 = vsel %vm404_vm0, %v1434_v13, %v1438_v18  ;;  %v885_v13 = vor.u32 %v884_v38, %v883_v28  ;;  %v6821_v18 = vshrl.u32 %v5123_v41, 16  ;;  %v511_v28 = vrot.slane %v5213_v50, 1 }
  0xaf   : > { %1204 = vrot.lane.b32.xlu0 %v1163_v0, %s4424_s23  ;;  %627 = vrot.lane.b32.xlu1 %v596_v33, %s4420_s17  ;;  %v880_v0 = vor.u32 %v879_v12, %v878_v61  ;;  %v506_v33 = vrot.slane %v5190_v9, 1  ;;  %v683_v12 = vrot.slane %v5119_v31, 1  ;;  %v1454_v16 = vrot.slane %v6821_v18, 1 }
  0xb0   : > { %v1230_v18 = vsel %vm1226_vm6, %v4545_v15, %v5098_v36  ;;  %v812_v15 = vrot.slane %v5162_v35, 2 }
  0xb1   : > { %v5199_v27 = vpop.permute.xlu0 %891  ;;  %v5201_v52 = vpop.permute.xlu1 %970  ;;  %v507_v2 = vor.u32 %v506_v33, %v5209_v57  ;;  %v886_v38 = vsel %vm742_vm3, %v880_v0, %v885_v13  ;;  %v686_v33 = vrot.slane %v5164_v45, 1  ;;  %v1281_v0 = vsel %vm1259_vm7, %v1248_v8, %v5039_v24 }
  0xb2   : > { %v685_v13 = vsel %vm661_vm1, %v683_v12, %v684_v56  ;;  %v1314_v58 = vsel %vm1292_vm8, %v1281_v0, %v5121_v17  ;;  %v807_v24 = vrot.slane %v5139_v25, 2  ;;  %v1456_v56 = vor.u32 %v1455_v3, %v1454_v16 }
  0xb3   : > { %1206 = vrot.lane.b32.xlu0 %v1166_v53, %s4424_s23  ;;  %740 = vrot.lane.b32.xlu1 %v709_v42, %s4419_s16  ;;  %v1378_v53 = vsel %vm1358_vm10, %v1345_v48, %v1132_v62  ;;  %v1446_v62 = vsel %vm661_vm1, %v1444_v5, %v1445_v60  ;;  %v965_v5 = vrot.slane %v5073_v6, 2  ;;  %v966_v60 = vrot.slane %v5091_v1, 2 }
  0xb4   : > { %v6828_v12 = vshrl.u32 %v5133_v23, 16  ;;  %v1107_v16 = vrot.slane %v5094_v59, 3  ;;  %v1461_v0 = vrot.slane %v5123_v41, 2 }
  0xb5   : > { %v1134_v42 = vpop.permute.xlu0 %1133  ;;  %v1213_v61 = vpop.permute.xlu1 %1212 }
  0xb6   : > { %v5222_v20 = vsel %vm1391_vm11, %v1378_v53, %v1213_v61  ;;  %v1451_v53 = vor.u32 %v1450_v7, %v1449_v63  ;;  %v806_v61 = vrot.slane %v5168_v44, 1  ;;  %v1347_v63 = vsel %vm1325_vm9, %v1314_v58, %v5176_v55 }
  0xb7   : > { %6827 = vst [vmem:[#allocation10_spill] sm:$0xff] %v5222_v20  ;;  %1440 = vrot.lane.b32.xlu0 %v1439_v54, %s4420_s17  ;;  %611 = vrot.lane.b32.xlu1 %v500_v30, %s4420_s17  ;;  %v687_v30 = vrot.slane %v5187_v32, 1  ;;  %v811_v7 = vrot.slane %v6828_v12, 1  ;;  %v1380_v36 = vsel %vm1358_vm10, %v1347_v63, %v1134_v42  ;;  %v1106_v55 = vrot.slane %v5112_v34, 2  ;;  %v4289_v42 = vld [vmem:[%s6814_s3 + $0x8] sm:$0x3f]  }
  0xb8   : > { %3986 = vmatprep.mubr.msk.bf16.mxu1 %vm1507_vm12, %v5222_v20  ;;  %v512_v20 = vsel %vm404_vm0, %v507_v2, %v511_v28  ;;  %v1263_v2 = vsel %vm1259_vm7, %v1230_v18, %v5058_v51  ;;  %v808_v58 = vor.u32 %v807_v24, %v806_v61  ;;  %v6829_v51 = vshrl.u32 %v5091_v1, 16  ;;  %4224 = vmatprep.subr.msk.bf16.mxu1 %vm919_vm2, %v4289_v42 }
  0xb9   : > { %v973_v54 = vpop.permute.xlu0 %972  ;;  %v1116_v48 = vpop.permute.xlu1 %1115  ;;  %v1296_v3 = vsel %vm1292_vm8, %v1263_v2, %v5145_v40  ;;  %v1457_v34 = vsel %vm742_vm3, %v1451_v53, %v1456_v56  ;;  %v818_v40 = vshrl.u32 %v5187_v32, 16  ;;  %v1108_v61 = vor.u32 %v1107_v16, %v1106_v55 }
  0xba   : > { %v1109_v18 = vrot.slane %v6829_v51, 2  ;;  %v1329_v59 = vsel %vm1325_vm9, %v1296_v3, %v5201_v52  ;;  %v1460_v52 = vrot.slane %v5104_v19, 2  ;;  %v1719_v24 = vsel %vm919_vm2, %v4289_v42, 0 }
  0xbb   : > { %917 = vrot.lane.b32.xlu0 %v886_v38, %s4422_s19  ;;  %1447 = vrot.lane.b32.xlu1 %v1446_v62, %s4419_s16  ;;  %v967_v38 = vsel %vm919_vm2, %v965_v5, %v966_v60  ;;  %v688_v62 = vsel %vm661_vm1, %v686_v33, %v687_v30  ;;  %v1110_v5 = vrot.slane %v5116_v43, 3  ;;  %v813_v60 = vor.u32 %v812_v15, %v811_v7 }
  0xbc   : > { %v1362_v33 = vsel %vm1358_vm10, %v1329_v59, %v1116_v48  ;;  %v816_v63 = vrot.slane %v5190_v9, 2  ;;  %v820_v7 = vrot.slane %v818_v40, 1  ;;  %v941_v2 = vrot.slane %v5119_v31, 2 }
  0xbd   : > { %v1215_v17 = vpop.permute.xlu0 %1214  ;;  %v1118_v8 = vpop.permute.xlu1 %1117  ;;  %v1111_v48 = vor.u32 %v1110_v5, %v1109_v18  ;;  %v814_v12 = vsel %vm742_vm3, %v808_v58, %v813_v60  ;;  %v1466_v16 = vrot.slane %v5126_v22, 3  ;;  %v6830_v42 = vshrl.u32 %v5123_v41, 16  ;;  %v295_v22 = vld [vmem:[%s4524_s15 + $0x8] sm:$0xff] }
  0xbe   : > { %v5270_v28 = vsel %vm1391_vm11, %v1380_v36, %v1215_v17  ;;  %v1469_v58 = vrot.slane %v5156_v47, 3  ;;  %v1191_v60 = vrot.slane %v5073_v6, 3  ;;  %v1192_v47 = vrot.slane %v5091_v1, 3 }
  0xbf   : > { %613 = vrot.lane.b32.xlu0 %v512_v20, %s4420_s17  ;;  %724 = vrot.lane.b32.xlu1 %v685_v13, %s4419_s16  ;;  %v1232_v20 = vsel %vm1226_vm6, %v4585_v39, %v5096_v29  ;;  %v4290_v39 = vld [vmem:[%s6814_s3 + $0x28] sm:$0x3f]   ;;  %v1468_v3 = vrot.slane %v6830_v42, 2  ;;  %v1112_v51 = vsel %vm1000_vm4, %v1108_v61, %v1111_v48  ;;  %v1054_v61 = vrot.slane %v5162_v35, 3 }
  0xc0   : > { %3987 = vmatmul.mubr.msk.bf16.vlgmr.msra.gmra.mxu1 %vm1507_vm12, %v5270_v28  ;;  %v1265_v13 = vsel %vm1259_vm7, %v1232_v20, %v5143_v49  ;;  %v815_v49 = vrot.slane %v5209_v57, 1  ;;  %4225 = vmatprep.subr.msk.bf16.mxu0 %vm919_vm2, %v4290_v39  ;;  %v1964_v55 = vsel %vm919_vm2, %v4290_v39, 0  ;;  %v1050_v20 = vrot.slane %v5168_v44, 2 }
  0xc1   : > { %v1197_v43 = vpop.permute.xlu0 %1196  ;;  %v5295_v30 = vpop.permute.xlu1 %619  ;;  %v1298_v29 = vsel %vm1292_vm8, %v1265_v13, %v5199_v27  ;;  %v821_v27 = vrot.slane %v5213_v50, 2  ;;  %4003 = vmatpush3.bf16.msra.mxu1 %v1719_v24  ;;  %v1193_v48 = vsel %vm1145_vm5, %v1191_v60, %v1192_v47  ;;  %v1475_v42 = vrot.slane %v5123_v41, 3 }
  0xc2   : > { %v5302_v53 = vsel %vm1391_vm11, %v1362_v33, %v1197_v43  ;;  %v1331_v56 = vsel %vm1325_vm9, %v1298_v29, %v973_v54  ;;  %v817_v18 = vor.u32 %v816_v63, %v815_v49  ;;  %v1051_v33 = vrot.slane %v5139_v25, 3  ;;  %v296_v29 = vld [vmem:[%s4524_s15 + $0x10] sm:$0x3f] }
  0xc3   : > { %998 = vrot.lane.b32.xlu0 %v967_v38, %s4421_s18  ;;  %1458 = vrot.lane.b32.xlu1 %v1457_v34, %s4422_s19  ;;  %v1364_v15 = vsel %vm1358_vm10, %v1331_v56, %v1118_v8  ;;  %v1462_v38 = vsel %vm919_vm2, %v1460_v52, %v1461_v0  ;;  %v1465_v8 = vrot.slane %v5152_v37, 2  ;;  %v822_v5 = vor.u32 %v821_v27, %v820_v7  ;;  %v294_v37 = vld [vmem:[%s4524_s15] sm:$0xff] }
  0xc4   : > { %3970 = vmatprep.mubr.msk.bf16.mxu0 %vm1507_vm12, %v5302_v53  ;;  %v1470_v52 = vor.u32 %v1469_v58, %v1468_v3  ;;  %v6831_v0 = vshrl.u32 %v5133_v23, 16  ;;  %v5359_v1 = vpack.c.bf16 %v295_v22, %v294_v37  ;;  %v944_v49 = vrot.slane %v5164_v45, 2 }
  0xc5   : > { %v1199_v36 = vpop.permute.xlu0 %1198  ;;  %v5322_v17 = vpop.permute.xlu1 %621  ;;  %v1467_v43 = vor.u32 %v1466_v16, %v1465_v8  ;;  %v823_v24 = vsel %vm742_vm3, %v817_v18, %v822_v5  ;;  %v945_v63 = vrot.slane %v5187_v32, 2  ;;  %v1052_v56 = vor.u32 %v1051_v33, %v1050_v20 }
  0xc6   : > { %v5326_v54 = vsel %vm1391_vm11, %v1364_v15, %v1199_v36  ;;  %v1053_v13 = vrot.slane %v6831_v0, 2  ;;  %v1057_v7 = vrot.slane %v5209_v57, 2  ;;  %v1058_v27 = vrot.slane %v5190_v9, 3  ;;  %v4291_v15 = vld [vmem:[%s6814_s3] sm:$0xff]  }
  0xc7   : > { %726 = vrot.lane.b32.xlu0 %v688_v62, %s4419_s16  ;;  %901 = vrot.lane.b32.xlu1 %v814_v12, %s4422_s19  ;;  %v942_v62 = vrot.slane %v5133_v23, 2  ;;  %v1471_v35 = vsel %vm1000_vm4, %v1467_v43, %v1470_v52  ;;  %v1060_v36 = vrot.slane %v818_v40, 2  ;;  %v946_v9 = vsel %vm919_vm2, %v944_v49, %v945_v63  ;;  %v4292_v57 = vld [vmem:[%s6814_s3 + $0x20] sm:$0xff]   ;;  %v345_v52 = vld [vmem:[%s4524_s15 + $0x198] sm:$0xff] }
  0xc8   : > { %3971 = vmatmul.mubr.msk.bf16.vlgmr.msra.gmra.mxu0 %vm1507_vm12, %v5326_v54  ;;  %v1055_v12 = vor.u32 %v1054_v61, %v1053_v13  ;;  %4004 = vmatprep.subr.bf16.mxu1 %v4291_v15  ;;  %v1474_v40 = vrot.slane %v5104_v19, 3  ;;  %v1059_v3 = vor.u32 %v1058_v27, %v1057_v7  ;;  %v1167_v22 = vrot.slane %v5119_v31, 3  ;;  %v346_v0 = vld [vmem:[%s4524_s15 + $0x1a0] sm:$0xff]  ;;  %v347_v27 = vld [vmem:[%s4524_s15 + $0x1a8] sm:$0x3f] }
  0xc9   : > { %v5342_v59 = vpop.permute.xlu0 %732  ;;  %v5344_v34 = vpop.permute.xlu1 %603  ;;  %4039 = vmatpush3.bf16.msra.mxu0 %v1964_v55  ;;  %v943_v39 = vsel %vm919_vm2, %v941_v2, %v942_v62  ;;  %v5380_v2 = vpack.c.bf16 %v296_v29, %v296_v29  ;;  %v5383_v55 = vshll.u32 %v5359_v1, 16  ;;  %4005 = vmatpush3.bf16.msra.mxu1 %v4291_v15  ;;  %v1168_v41 = vrot.slane %v5133_v23, 3 }
  0xca   : > { %4040 = vmatprep.subr.bf16.mxu0 %v4292_v57  ;;  %v1476_v60 = vsel %vm1145_vm5, %v1474_v40, %v1475_v42  ;;  %v662_v29 = vrot.slane %v5359_v1, 1  ;;  %v5425_v63 = vpack.c.bf16 %v346_v0, %v345_v52  ;;  %v5437_v42 = vpack.c.bf16 %v347_v27, %v347_v27 }
  0xcb   : > { %1143 = vrot.lane.b32.xlu0 %v1112_v51, %s4423_s22  ;;  %1463 = vrot.lane.b32.xlu1 %v1462_v38, %s4421_s18  ;;  %v1061_v38 = vrot.slane %v5213_v50, 3  ;;  %v1056_v50 = vsel %vm1000_vm4, %v1052_v56, %v1055_v12  ;;  %v406_v51 = vshrl.u32 %v5359_v1, 16  ;;  %v410_v18 = vrot.slane %v5383_v55, 1 }
  0xcc   : > { %v413_v5 = vshll.u32 %v5380_v2, 16  ;;  %v746_v43 = vshrl.u32 %v5380_v2, 16  ;;  %v1169_v23 = vsel %vm1145_vm5, %v1167_v22, %v1168_v41  ;;  %v921_v40 = vrot.slane %v5380_v2, 2 }
  0xcd   : > { %v5361_v44 = vpop.permute.xlu0 %734  ;;  %v5363_v25 = vpop.permute.xlu1 %909  ;;  %v1062_v58 = vor.u32 %v1061_v38, %v1060_v36  ;;  %4041 = vmatpush3.bf16.msra.mxu0 %v4292_v57  ;;  %v411_v20 = vor.u32 %v410_v18, %v406_v51  ;;  %v743_v49 = vrot.slane %v406_v51, 1  ;;  %v1001_v36 = vrot.slane %v406_v51, 2 }
  0xce   : > { %v415_v33 = vrot.slane %v413_v5, 1  ;;  %v748_v12 = vrot.slane %v746_v43, 1  ;;  %v749_v7 = vrot.slane %v413_v5, 2  ;;  %v1002_v38 = vrot.slane %v5383_v55, 3 }
  0xcf   : > { %903 = vrot.lane.b32.xlu0 %v823_v24, %s4422_s19  ;;  %982 = vrot.lane.b32.xlu1 %v943_v39, %s4421_s18  ;;  %v1063_v47 = vsel %vm1000_vm4, %v1059_v3, %v1062_v58  ;;  %v1170_v24 = vrot.slane %v5164_v45, 3  ;;  %v1171_v39 = vrot.slane %v5187_v32, 3  ;;  %v1005_v57 = vrot.slane %v413_v5, 3  ;;  %v5447_v5 = vld [vmem:[%s6814_s3 + $0x38] sm:$0x3f]  }
  0xd0   : > { %v416_v56 = vsel %vm404_vm0, %v411_v20, %v415_v33  ;;  %v5440_v3 = vshll.u32 %v5425_v63, 16  ;;  %v750_v18 = vor.u32 %v749_v7, %v748_v12  ;;  %v1250_v22 = vsel %vm1226_vm6, %v4692_v14, %v5295_v30  ;;  %4226 = vmatprep.subr.msk.bf16.mxu1 %vm919_vm2, %v5447_v5  ;;  %v5467_v14 = vld [vmem:[%s6814_s3 + $0x48] sm:$0x3f]  }
  0xd1   : > { %v5385_v8 = vpop.permute.xlu0 %605  ;;  %v5387_v16 = vpop.permute.xlu1 %716  ;;  %v1172_v58 = vsel %vm1145_vm5, %v1170_v24, %v1171_v39  ;;  %v1147_v20 = vrot.slane %v5380_v2, 3  ;;  %v1906_v33 = vshrl.u32 %v5437_v42, 16  ;;  %v1003_v52 = vor.u32 %v1002_v38, %v1001_v36  ;;  %4227 = vmatprep.subr.msk.bf16.mxu0 %vm919_vm2, %v5467_v14  ;;  %v348_v36 = vld [vmem:[%s4524_s15 + $0x1b0] sm:$0xff]  ;;  %v349_v38 = vld [vmem:[%s4524_s15 + $0x1b8] sm:$0xff] }
  0xd2   : > { %v1890_v24 = vshll.u32 %v5437_v42, 16 }
  0xd3   : > { %1224 = vrot.lane.b32.xlu0 %v1193_v48, %s4424_s23  ;;  %1472 = vrot.lane.b32.xlu1 %v1471_v35, %s4423_s22  ;;  %v663_v48 = vrot.slane %v5380_v2, 1  ;;  %v744_v35 = vrot.slane %v5383_v55, 2  ;;  %v1887_v2 = vrot.slane %v5440_v3, 1  ;;  %v1908_v7 = vrot.slane %v1906_v33, 1 }
  0xd4   : > { %v1909_v27 = vrot.slane %v1890_v24, 2 }
  0xd5   : > { %v5401_v62 = vpop.permute.xlu0 %911  ;;  %v5403_v37 = vpop.permute.xlu1 %990  ;;  %v664_v51 = vsel %vm661_vm1, %v662_v29, %v663_v48  ;;  %v745_v55 = vor.u32 %v744_v35, %v743_v49 }
  0xd7   : > { %984 = vrot.lane.b32.xlu0 %v946_v9, %s4421_s18  ;;  %1127 = vrot.lane.b32.xlu1 %v1056_v50, %s4423_s22  ;;  %v1004_v9 = vrot.slane %v746_v43, 2  ;;  %v920_v50 = vrot.slane %v5359_v1, 2  ;;  %v1283_v43 = vsel %vm1259_vm7, %v1250_v22, %v5342_v59  ;;  %v751_v29 = vsel %vm742_vm3, %v745_v55, %v750_v18 }
  0xd8   : > { %v1316_v30 = vsel %vm1292_vm8, %v1283_v43, %v5363_v25  ;;  %v1904_v25 = vrot.slane %v5440_v3, 2  ;;  %v1920_v22 = vrot.slane %v5440_v3, 3  ;;  %v352_v43 = vld [vmem:[%s4524_s15 + $0x1d0] sm:$0xff] }
  0xd9   : > { %v5414_v13 = vpop.permute.xlu0 %718  ;;  %v5416_v61 = vpop.permute.xlu1 %893  ;;  %v1006_v0 = vor.u32 %v1005_v57, %v1004_v9  ;;  %v922_v59 = vsel %vm919_vm2, %v920_v50, %v921_v40  ;;  %v1349_v39 = vsel %vm1325_vm9, %v1316_v30, %v5403_v37  ;;  %v1898_v57 = vrot.slane %v5425_v63, 1 }
  0xda   : > { %v1899_v50 = vrot.slane %v5437_v42, 1  ;;  %v1892_v40 = vrot.slane %v1890_v24, 1 }
  0xdb   : > { %1477 = vrot.lane.b32.xlu0 %v1476_v60, %s4424_s23  ;;  %1129 = vrot.lane.b32.xlu1 %v1063_v47, %s4423_s22  ;;  %v1146_v47 = vrot.slane %v5359_v1, 3  ;;  %v1007_v9 = vsel %vm1000_vm4, %v1003_v52, %v1006_v0  ;;  %v1252_v52 = vsel %vm1226_vm6, %v4700_v26, %v5322_v17 }
  0xdc   : > { %v1900_v3 = vsel %vm661_vm1, %v1898_v57, %v1899_v50  ;;  %v1928_v57 = vrot.slane %v5425_v63, 3 }
  0xdd   : > { %v5430_v15 = vpop.permute.xlu0 %992  ;;  %v1136_v32 = vpop.permute.xlu1 %1135  ;;  %v1148_v12 = vsel %vm1145_vm5, %v1146_v47, %v1147_v20  ;;  %v5499_v47 = vpack.c.bf16 %v349_v38, %v348_v36  ;;  %v351_v20 = vld [vmem:[%s4524_s15 + $0x1c8] sm:$0xff] }
  0xde   : > { %v1382_v49 = vsel %vm1358_vm10, %v1349_v39, %v1136_v32  ;;  %v1922_v39 = vrot.slane %v1906_v33, 2  ;;  %v5515_v17 = vpack.c.bf16 %v352_v43, %v351_v20 }
  0xdf   : > { %1208 = vrot.lane.b32.xlu0 %v1169_v23, %s4424_s23  ;;  %597 = vrot.lane.b32.xlu1 %v416_v56, %s4420_s17  ;;  %v1883_v23 = vshrl.u32 %v5425_v63, 16 }
  0xe1   : > { %v5452_v41 = vpop.permute.xlu0 %895  ;;  %v5454_v60 = vpop.permute.xlu1 %974  ;;  %v1903_v48 = vrot.slane %v1883_v23, 1  ;;  %v1888_v32 = vor.u32 %v1887_v2, %v1883_v23  ;;  %v1919_v18 = vrot.slane %v1883_v23, 2  ;;  %v1910_v2 = vor.u32 %v1909_v27, %v1908_v7 }
  0xe2   : > { %v1285_v23 = vsel %vm1259_vm7, %v1252_v52, %v5361_v44 }
  0xe3   : > { %1210 = vrot.lane.b32.xlu0 %v1172_v58, %s4424_s23  ;;  %710 = vrot.lane.b32.xlu1 %v664_v51, %s4419_s16  ;;  %v1914_v58 = vrot.slane %v5425_v63, 2  ;;  %v1915_v51 = vrot.slane %v5437_v42, 2  ;;  %v1905_v55 = vor.u32 %v1904_v25, %v1903_v48  ;;  %v1893_v48 = vsel %vm404_vm0, %v1888_v32, %v1892_v40 }
  0xe4   : > { %v5523_v25 = vshll.u32 %v5499_v47, 16 }
  0xe5   : > { %v1138_v56 = vpop.permute.xlu0 %1137  ;;  %v1217_v35 = vpop.permute.xlu1 %1216  ;;  %v1916_v26 = vsel %vm919_vm2, %v1914_v58, %v1915_v51  ;;  %v1911_v38 = vsel %vm742_vm3, %v1905_v55, %v1910_v2  ;;  %v1236_v51 = vsel %vm1226_vm6, %v4771_v10, %v5385_v8  ;;  %v5579_v8 = vshrl.u32 %v5515_v17, 16 }
  0xe6   : > { %v5487_v37 = vsel %vm1391_vm11, %v1382_v49, %v1217_v35  ;;  %v350_v49 = vld [vmem:[%s4524_s15 + $0x1c0] sm:$0x3f]  ;;  %v1234_v35 = vsel %vm1226_vm6, %v4731_v46, %v5344_v34  ;;  %v5544_v34 = vshrl.u32 %v5499_v47, 16  ;;  %v2164_v40 = vrot.slane %v5523_v25, 1 }
  0xe7   : > { %3990 = vmatprep.mubr.msk.bf16.mxu1 %vm1507_vm12, %v5487_v37  ;;  %887 = vrot.lane.b32.xlu0 %v751_v29, %s4422_s19  ;;  %v1923_v29 = vrot.slane %v1890_v24, 3  ;;  %v1921_v24 = vor.u32 %v1920_v22, %v1919_v18  ;;  %v5520_v44 = vpack.c.bf16 %v350_v49, %v350_v49  ;;  %v2181_v20 = vrot.slane %v5523_v25, 2 }
  0xe8   : > { %968 = vrot.lane.b32.xlu1 %v922_v59, %s4421_s18  ;;  %v1318_v59 = vsel %vm1292_vm8, %v1285_v23, %v5401_v62  ;;  %v353_v62 = vld [vmem:[%s4524_s15 + $0x1d8] sm:$0x3f] }
  0xe9   : > { %v977_v0 = vpop.permute.xlu0 %976  ;;  %v1120_v30 = vpop.permute.xlu1 %1119  ;;  %v1351_v33 = vsel %vm1325_vm9, %v1318_v59, %v5430_v15  ;;  %v1924_v15 = vor.u32 %v1923_v29, %v1922_v39  ;;  %v2183_v50 = vshrl.u32 %v5520_v44, 16  ;;  %v5557_v58 = vshll.u32 %v5520_v44, 16 }
  0xea   : > { %v1384_v7 = vsel %vm1358_vm10, %v1351_v33, %v1138_v56  ;;  %v5546_v56 = vpack.c.bf16 %v353_v62, %v353_v62  ;;  %v2175_v33 = vrot.slane %v5499_v47, 1  ;;  %v2176_v62 = vrot.slane %v5520_v44, 1 }
  0xeb   : > { %1113 = vrot.lane.b32.xlu0 %v1007_v9, %s4423_s22  ;;  %v2185_v52 = vrot.slane %v2183_v50, 1  ;;  %v2186_v2 = vrot.slane %v5557_v58, 2  ;;  %v1925_v29 = vsel %vm1000_vm4, %v1921_v24, %v1924_v15  ;;  %v2169_v49 = vrot.slane %v5557_v58, 1 }
  0xec   : > { %1194 = vrot.lane.b32.xlu1 %v1148_v12, %s4424_s23  ;;  %v1267_v12 = vsel %vm1259_vm7, %v1234_v35, %v5387_v16  ;;  %v5549_v16 = vshll.u32 %v5515_v17, 16  ;;  %v2177_v15 = vsel %vm661_vm1, %v2175_v33, %v2176_v62  ;;  %v356_v62 = vld [vmem:[%s4524_s15 + $0x1f0] sm:$0x3f] }
  0xed   : > { %v1219_v27 = vpop.permute.xlu0 %1218  ;;  %v1122_v36 = vpop.permute.xlu1 %1121  ;;  %v1300_v46 = vsel %vm1292_vm8, %v1267_v12, %v5416_v61  ;;  %v1929_v61 = vrot.slane %v5437_v42, 3  ;;  %v1269_v42 = vsel %vm1259_vm7, %v1236_v51, %v5414_v13  ;;  %v5583_v13 = vshll.u32 %v5546_v56, 16 }
  0xee   : > { %v5534_v9 = vsel %vm1391_vm11, %v1384_v7, %v1219_v27  ;;  %v1333_v32 = vsel %vm1325_vm9, %v1300_v46, %v5454_v60  ;;  %v2180_v60 = vrot.slane %v5544_v34, 1  ;;  %v1302_v10 = vsel %vm1292_vm8, %v1269_v42, %v5452_v41 }
  0xef   : > { %3991 = vmatmul.mubr.msk.bf16.gmra.mxu1 %vm1507_vm12, %v5534_v9  ;;  %1894 = vrot.lane.b32.xlu0 %v1893_v48, %s4420_s17  ;;  %v1366_v55 = vsel %vm1358_vm10, %v1333_v32, %v1120_v30  ;;  %v2441_v30 = vrot.slane %v5549_v16, 1  ;;  %v1335_v39 = vsel %vm1325_vm9, %v1302_v10, %v977_v0  ;;  %v2165_v41 = vor.u32 %v2164_v40, %v5544_v34 }
  0xf0   : > { %1901 = vrot.lane.b32.xlu1 %v1900_v3, %s4419_s16  ;;  %v1368_v23 = vsel %vm1358_vm10, %v1335_v39, %v1122_v36  ;;  %v1930_v48 = vsel %vm1145_vm5, %v1928_v57, %v1929_v61  ;;  %v2187_v24 = vor.u32 %v2186_v2, %v2185_v52  ;;  %v2446_v7 = vrot.slane %v5583_v13, 1 }
  0xf1   : > { %v1201_v18 = vpop.permute.xlu0 %1200  ;;  %v5563_v22 = vpop.permute.xlu1 %623  ;;  %v2442_v35 = vor.u32 %v2441_v30, %v5579_v8  ;;  %v2170_v27 = vsel %vm404_vm0, %v2165_v41, %v2169_v49  ;;  %v2460_v12 = vshrl.u32 %v5546_v56, 16  ;;  %v2191_v46 = vrot.slane %v5499_v47, 2  ;;  %v355_v41 = vld [vmem:[%s4524_s15 + $0x1e8] sm:$0xff] }
  0xf2   : > { %v5570_v43 = vsel %vm1391_vm11, %v1366_v55, %v1201_v18  ;;  %v2192_v61 = vrot.slane %v5520_v44, 2  ;;  %v2452_v40 = vrot.slane %v5515_v17, 1  ;;  %v2453_v51 = vrot.slane %v5546_v56, 1 }
  0xf3   : > { %3974 = vmatprep.mubr.msk.bf16.mxu0 %vm1507_vm12, %v5570_v43  ;;  %1912 = vrot.lane.b32.xlu0 %v1911_v38, %s4422_s19  ;;  %v2447_v32 = vsel %vm404_vm0, %v2442_v35, %v2446_v7  ;;  %v2196_v55 = vrot.slane %v5544_v34, 2  ;;  %v2197_v18 = vrot.slane %v5523_v25, 3  ;;  %v2457_v2 = vrot.slane %v5579_v8, 1 }
  0xf4   : > { %1917 = vrot.lane.b32.xlu1 %v1916_v26, %s4421_s18  ;;  %v2182_v26 = vor.u32 %v2181_v20, %v2180_v60  ;;  %v2199_v60 = vrot.slane %v2183_v50, 2  ;;  %v2200_v20 = vrot.slane %v5557_v58, 3  ;;  %v2458_v10 = vrot.slane %v5549_v16, 2 }
  0xf5   : > { %v1203_v3 = vpop.permute.xlu0 %1202  ;;  %v5591_v59 = vpop.permute.xlu1 %625  ;;  %v2462_v30 = vrot.slane %v2460_v12, 1  ;;  %v2463_v39 = vrot.slane %v5583_v13, 2  ;;  %v2193_v50 = vsel %vm919_vm2, %v2191_v46, %v2192_v61  ;;  %v2198_v34 = vor.u32 %v2197_v18, %v2196_v55  ;;  %v359_v55 = vld [vmem:[%s4524_s15 + $0x208] sm:$0x3f] }
  0xf6   : > { %v5597_v0 = vsel %vm1391_vm11, %v1368_v23, %v1203_v3  ;;  %v2188_v57 = vsel %vm742_vm3, %v2182_v26, %v2187_v24  ;;  %v2201_v58 = vor.u32 %v2200_v20, %v2199_v60  ;;  %v2454_v3 = vsel %vm661_vm1, %v2452_v40, %v2453_v51 }
  0xf7   : > { %3975 = vmatmul.mubr.msk.bf16.gmra.mxu0 %vm1507_vm12, %v5597_v0  ;;  %1926 = vrot.lane.b32.xlu0 %v1925_v29, %s4423_s22  ;;  %v354_v29 = vld [vmem:[%s4524_s15 + $0x1e0] sm:$0xff]  ;;  %v2464_v33 = vor.u32 %v2463_v39, %v2462_v30  ;;  %v2473_v26 = vrot.slane %v5579_v8, 2  ;;  %v2474_v24 = vrot.slane %v5549_v16, 3  ;;  %v2476_v35 = vrot.slane %v2460_v12, 2 }
  0xf8   : > { %1931 = vrot.lane.b32.xlu1 %v1930_v48, %s4424_s23  ;;  %v5633_v25 = vpack.c.bf16 %v355_v41, %v354_v29  ;;  %v2459_v48 = vor.u32 %v2458_v10, %v2457_v2  ;;  %v2477_v7 = vrot.slane %v5583_v13, 3  ;;  %v2202_v46 = vsel %vm1000_vm4, %v2198_v34, %v2201_v58 }
  0xf9   : > { %v5606_v36 = vpop.permute.xlu0 %736  ;;  %v5608_v38 = vpop.permute.xlu1 %607  ;;  %v2206_v8 = vrot.slane %v5520_v44, 3  ;;  %v5656_v61 = vpack.c.bf16 %v356_v62, %v356_v62  ;;  %v2468_v40 = vrot.slane %v5515_v17, 2  ;;  %v2469_v51 = vrot.slane %v5546_v56, 2 }
  0xfa   : > { %v2465_v13 = vsel %vm742_vm3, %v2459_v48, %v2464_v33  ;;  %v2475_v20 = vor.u32 %v2474_v24, %v2473_v26  ;;  %v2478_v44 = vor.u32 %v2477_v7, %v2476_v35  ;;  %v5669_v2 = vshrl.u32 %v5633_v25, 16 }
  0xfb   : > { %2171 = vrot.lane.b32.xlu0 %v2170_v27, %s4420_s17  ;;  %v5648_v27 = vshll.u32 %v5633_v25, 16  ;;  %v2737_v60 = vshrl.u32 %v5656_v61, 16  ;;  %v5675_v39 = vshll.u32 %v5656_v61, 16  ;;  %v5677_v29 = vpack.c.bf16 %v359_v55, %v359_v55 }
  0xfc   : > { %2178 = vrot.lane.b32.xlu1 %v2177_v15, %s4419_s16  ;;  %v357_v15 = vld [vmem:[%s4524_s15 + $0x1f8] sm:$0xff]  ;;  %v2470_v34 = vsel %vm919_vm2, %v2468_v40, %v2469_v51  ;;  %v2482_v58 = vrot.slane %v5515_v17, 3  ;;  %v2734_v33 = vrot.slane %v5669_v2, 1  ;;  %v2479_v35 = vsel %vm1000_vm4, %v2475_v20, %v2478_v44 }
  0xfd   : > { %v5623_v42 = vpop.permute.xlu0 %738  ;;  %v5625_v52 = vpop.permute.xlu1 %913  ;;  %v2718_v10 = vrot.slane %v5648_v27, 1  ;;  %v2735_v62 = vrot.slane %v5648_v27, 2  ;;  %v2739_v26 = vrot.slane %v2737_v60, 1  ;;  %v2740_v24 = vrot.slane %v5675_v39, 2 }
  0xfe   : > { %v2729_v40 = vrot.slane %v5633_v25, 1  ;;  %v2730_v51 = vrot.slane %v5656_v61, 1  ;;  %v1254_v44 = vsel %vm1226_vm6, %v4872_v11, %v5563_v22  ;;  %v3014_v22 = vshrl.u32 %v5677_v29, 16 }
  0xff   : > { %2189 = vrot.lane.b32.xlu0 %v2188_v57, %s4422_s19  ;;  %v358_v57 = vld [vmem:[%s4524_s15 + $0x200] sm:$0xff]  ;;  %v2719_v7 = vor.u32 %v2718_v10, %v5669_v2  ;;  %v2736_v55 = vor.u32 %v2735_v62, %v2734_v33  ;;  %v2741_v20 = vor.u32 %v2740_v24, %v2739_v26  ;;  %v1287_v10 = vsel %vm1259_vm7, %v1254_v44, %v5606_v36 }
 0x100   : > { %2448 = vrot.lane.b32.xlu1 %v2447_v32, %s4420_s17  ;;  %v2205_v32 = vrot.slane %v5499_v47, 3  ;;  %v5664_v18 = vpack.c.bf16 %v358_v57, %v357_v15  ;;  %v2731_v11 = vsel %vm661_vm1, %v2729_v40, %v2730_v51  ;;  %v2745_v24 = vrot.slane %v5633_v25, 2 }
 0x101   : > { %v5637_v49 = vpop.permute.xlu0 %609  ;;  %v5639_v23 = vpop.permute.xlu1 %720  ;;  %v2742_v26 = vsel %vm742_vm3, %v2736_v55, %v2741_v20  ;;  %v3007_v51 = vrot.slane %v5677_v29, 1 }
 0x102   : > { %v2207_v30 = vsel %vm1145_vm5, %v2205_v32, %v2206_v8  ;;  %v5687_v48 = vshll.u32 %v5664_v18, 16  ;;  %v5698_v15 = vshrl.u32 %v5664_v18, 16  ;;  %v3006_v40 = vrot.slane %v5664_v18, 1 }
 0x103   : > { %2194 = vrot.lane.b32.xlu0 %v2193_v50, %s4421_s18 }
 0x104   : > { %2455 = vrot.lane.b32.xlu1 %v2454_v3, %s4419_s16  ;;  %v2483_v3 = vrot.slane %v5546_v56, 3  ;;  %v2723_v56 = vrot.slane %v5675_v39, 1  ;;  %v2995_v57 = vrot.slane %v5687_v48, 1  ;;  %v3011_v44 = vrot.slane %v5698_v15, 1 }
 0x105   : > { %v5658_v16 = vpop.permute.xlu0 %915  ;;  %v995_v12 = vpop.permute.xlu1 %994 }
 0x107   : > { %2203 = vrot.lane.b32.xlu0 %v2202_v46, %s4423_s22  ;;  %v5702_v46 = vshll.u32 %v5677_v29, 16 }
 0x108   : > { %2466 = vrot.lane.b32.xlu1 %v2465_v13, %s4422_s19  ;;  %v2484_v13 = vsel %vm1145_vm5, %v2482_v58, %v2483_v3  ;;  %v1320_v3 = vsel %vm1292_vm8, %v1287_v10, %v5625_v52  ;;  %v2751_v52 = vrot.slane %v5648_v27, 3  ;;  %v3016_v27 = vrot.slane %v3014_v22, 1 }
 0x109   : > { %v5679_v41 = vpop.permute.xlu0 %722  ;;  %v5681_v50 = vpop.permute.xlu1 %897  ;;  %v3000_v58 = vrot.slane %v5702_v46, 1  ;;  %v1353_v36 = vsel %vm1325_vm9, %v1320_v3, %v995_v12 }
 0x10b   : > { %2208 = vrot.lane.b32.xlu0 %v2207_v30, %s4424_s23  ;;  %v2724_v30 = vsel %vm404_vm0, %v2719_v7, %v2723_v56  ;;  %v2750_v7 = vrot.slane %v5669_v2, 2  ;;  %v2753_v56 = vrot.slane %v2737_v60, 2  ;;  %v3012_v2 = vrot.slane %v5687_v48, 2 }
 0x10c   : > { %2471 = vrot.lane.b32.xlu1 %v2470_v34, %s4421_s18  ;;  %v2996_v34 = vor.u32 %v2995_v57, %v5698_v15  ;;  %v2754_v57 = vrot.slane %v5675_v39, 3  ;;  %v3017_v60 = vrot.slane %v5702_v46, 2 }
 0x10d   : > { %v997_v32 = vpop.permute.xlu0 %996  ;;  %v1140_v8 = vpop.permute.xlu1 %1139 }
 0x10e   : > { %v3001_v12 = vsel %vm404_vm0, %v2996_v34, %v3000_v58  ;;  %v2755_v10 = vor.u32 %v2754_v57, %v2753_v56 }
 0x10f   : > { %2480 = vrot.lane.b32.xlu0 %v2479_v35, %s4423_s22  ;;  %v2746_v35 = vrot.slane %v5656_v61, 2 }
 0x110   : > { %2485 = vrot.lane.b32.xlu1 %v2484_v13, %s4424_s23  ;;  %v1386_v13 = vsel %vm1358_vm10, %v1353_v36, %v1140_v8  ;;  %v2752_v8 = vor.u32 %v2751_v52, %v2750_v7  ;;  %v3008_v36 = vsel %vm661_vm1, %v3006_v40, %v3007_v51  ;;  %v3027_v7 = vrot.slane %v5698_v15, 2 }
 0x111   : > { %v5719_v33 = vpop.permute.xlu0 %899  ;;  %v979_v62 = vpop.permute.xlu1 %978  ;;  %v2747_v34 = vsel %vm919_vm2, %v2745_v24, %v2746_v35  ;;  %v2760_v35 = vrot.slane %v5656_v61, 3  ;;  %v3028_v52 = vrot.slane %v5687_v48, 3  ;;  %v3023_v40 = vrot.slane %v5677_v29, 2  ;;  %v6832_v48 = vld [vmem:[#allocation9_spill] sm:$0xff] }
 0x112   : > { %v2756_v24 = vsel %vm1000_vm4, %v2752_v8, %v2755_v10  ;;  %v3037_v8 = vrot.slane %v5677_v29, 3 }
 0x113   : > { %2725 = vrot.lane.b32.xlu0 %v2724_v30, %s4420_s17  ;;  %v1256_v30 = vsel %vm1226_vm6, %v4884_v21, %v5591_v59 }
 0x114   : > { %2732 = vrot.lane.b32.xlu1 %v2731_v11, %s4419_s16  ;;  %v1289_v58 = vsel %vm1259_vm7, %v1256_v30, %v5623_v42  ;;  %v2759_v42 = vrot.slane %v5633_v25, 3 }
 0x115   : > { %v1142_v55 = vpop.permute.xlu0 %1141  ;;  %v1221_v20 = vpop.permute.xlu1 %1220  ;;  %v1322_v21 = vsel %vm1292_vm8, %v1289_v58, %v5658_v16 }
 0x116   : > { %v5740_v39 = vsel %vm1391_vm11, %v1386_v13, %v1221_v20  ;;  %v3013_v13 = vor.u32 %v3012_v2, %v3011_v44  ;;  %v3018_v20 = vor.u32 %v3017_v60, %v3016_v27  ;;  %v1355_v59 = vsel %vm1325_vm9, %v1322_v21, %v997_v32 }
 0x117   : > { %3994 = vmatprep.mubr.msk.bf16.mxu1 %vm1507_vm12, %v5740_v39  ;;  %2743 = vrot.lane.b32.xlu0 %v2742_v26, %s4422_s19  ;;  %v1238_v26 = vsel %vm1226_vm6, %v4915_v4, %v5608_v38  ;;  %v3030_v4 = vrot.slane %v3014_v22, 2  ;;  %v3031_v38 = vrot.slane %v5702_v46, 3  ;;  %v1388_v16 = vsel %vm1358_vm10, %v1355_v59, %v1142_v55 }
 0x118   : > { %3002 = vrot.lane.b32.xlu1 %v3001_v12, %s4420_s17  ;;  %v3019_v57 = vsel %vm742_vm3, %v3013_v13, %v3018_v20  ;;  %v3022_v12 = vrot.slane %v5664_v18, 2  ;;  %v1271_v61 = vsel %vm1259_vm7, %v1238_v26, %v5639_v23  ;;  %v1240_v46 = vsel %vm1226_vm6, %v6832_v48, %v5637_v49 }
 0x119   : > { %v981_v3 = vpop.permute.xlu0 %980  ;;  %v1124_v11 = vpop.permute.xlu1 %1123  ;;  %v1304_v22 = vsel %vm1292_vm8, %v1271_v61, %v5681_v50  ;;  %v2761_v23 = vsel %vm1145_vm5, %v2759_v42, %v2760_v35  ;;  %v3029_v55 = vor.u32 %v3028_v52, %v3027_v7  ;;  %v3032_v44 = vor.u32 %v3031_v38, %v3030_v4 }
 0x11a   : > { %v1337_v51 = vsel %vm1325_vm9, %v1304_v22, %v979_v62  ;;  %v3024_v60 = vsel %vm919_vm2, %v3022_v12, %v3023_v40  ;;  %v3036_v50 = vrot.slane %v5664_v18, 3  ;;  %v1273_v10 = vsel %vm1259_vm7, %v1240_v46, %v5679_v41 }
 0x11b   : > { %2748 = vrot.lane.b32.xlu0 %v2747_v34, %s4421_s18  ;;  %v1370_v2 = vsel %vm1358_vm10, %v1337_v51, %v1124_v11  ;;  %v1306_v30 = vsel %vm1292_vm8, %v1273_v10, %v5719_v33  ;;  %v3033_v29 = vsel %vm1000_vm4, %v3029_v55, %v3032_v44 }
 0x11c   : > { %3009 = vrot.lane.b32.xlu1 %v3008_v36, %s4419_s16  ;;  %v1339_v34 = vsel %vm1325_vm9, %v1306_v30, %v981_v3  ;;  %v3038_v36 = vsel %vm1145_vm5, %v3036_v50, %v3037_v8 }
 0x11d   : > { %v1223_v32 = vpop.permute.xlu0 %1222  ;;  %v1126_v56 = vpop.permute.xlu1 %1125 }
 0x11e   : > { %v5774_v15 = vsel %vm1391_vm11, %v1388_v16, %v1223_v32  ;;  %v1372_v58 = vsel %vm1358_vm10, %v1339_v34, %v1126_v56 }
 0x11f   : > { %3995 = vmatmul.mubr.msk.bf16.gmra.mxu1 %vm1507_vm12, %v5774_v15  ;;  %2757 = vrot.lane.b32.xlu0 %v2756_v24, %s4423_s22 }
 0x120   : > { %3020 = vrot.lane.b32.xlu1 %v3019_v57, %s4422_s19  ;;  %s3839_s19 = sshll.u32 %s4490_s26, 12 }
 0x121   : > { %v1205_v27 = vpop.permute.xlu0 %1204  ;;  %v628_v49 = vpop.permute.xlu1 %627  ;;  %s6679_s21 = scalar_lea.hbm %s6816_s5, %s3839_s19 }
 0x122   : > { %v5794_v62 = vsel %vm1391_vm11, %v1370_v2, %v1205_v27  ;;  %v1258_v38 = vsel %vm1226_vm6, %v5073_v6, %v628_v49 }
 0x123   : > { %3978 = vmatprep.mubr.msk.bf16.mxu0 %vm1507_vm12, %v5794_v62  ;;  %2762 = vrot.lane.b32.xlu0 %v2761_v23, %s4424_s23 }
 0x124   : > { %3025 = vrot.lane.b32.xlu1 %v3024_v60, %s4421_s18  ;;  %s6460_s18 = scalar_lea.vmem [#allocation2], %s3679_s14  ;;  %s4307_s14 = scalar_lea.vmem %s4306_s12, 8192 }
 0x125   : > { %v1207_v41 = vpop.permute.xlu0 %1206  ;;  %v741_v11 = vpop.permute.xlu1 %740 }
 0x126   : > { %v5807_v13 = vsel %vm1391_vm11, %v1372_v58, %v1207_v41  ;;  %v1291_v56 = vsel %vm1259_vm7, %v1258_v38, %v741_v11  ;;  %v2518_v38 = vsel %vm919_vm2, %v5467_v14, 0  ;;  %v4297_v14 = vld [vmem:[%s6814_s3 + $0x58] sm:$0x3f]  }
 0x127   : > { %3979 = vmatmul.mubr.msk.bf16.gmra.mxu0 %vm1507_vm12, %v5807_v13  ;;  %3034 = vrot.lane.b32.xlu0 %v3033_v29, %s4423_s22  ;;  %s3534_s22 = sshll.u32 %s6460_s18, 4  ;;  %s6686_s22 = int_to_ptr.vmem [resolvable:$true] %s3534_s22 }
 0x128   : > { %3039 = vrot.lane.b32.xlu1 %v3038_v36, %s4424_s23  ;;  %s4301_s30 = scalar_lea.vmem %s6686_s22, 4096  ;;  %p4308_p0 = scmp.lt.s32.totalorder %s6686_s22, %s4306_s12 }
 0x129   : > { %v1441_v33 = vpop.permute.xlu0 %1440  ;;  %v612_v3 = vpop.permute.xlu1 %611  ;;  %p4302_p11 = scmp.ne.s32.totalorder %s6686_s22, %s4301_s30  ;;  %p4309_p1 = scmp.lt.s32.totalorder %s4307_s14, %s4301_s30 }
 0x12a   : > { %v1480_v6 = vsel %vm1226_vm6, %v5104_v19, %v1441_v33  ;;  %v1242_v2 = vsel %vm1226_vm6, %v5119_v31, %v612_v3 }
 0x12b   : > { %p4303_p12 = pnand %p4302_p11, %p4509_p5  ;;  %p4310_p2 = por %p4309_p1, %p4308_p0 }
 0x12d   : > { %v918_v20 = vpop.permute.xlu0 %917  ;;  %v1448_v26 = vpop.permute.xlu1 %1447  ;;  %p4304_p13 = pneg %p4303_p12 }
 0x12e   : > { %v1324_v57 = vsel %vm1292_vm8, %v1291_v56, %v918_v20  ;;  %v1482_v23 = vsel %vm1259_vm7, %v1480_v6, %v1448_v26  ;;  %v4296_v56 = vld [vmem:[%s6814_s3 + $0x40] sm:$0xff]  }
 0x12f   : > { %p4311_p3 = pnand %p4310_p2, %p4304_p13 }
 0x131   : > { %v614_v21 = vpop.permute.xlu0 %613  ;;  %v725_v59 = vpop.permute.xlu1 %724 }
 0x132   : > { %v1275_v50 = vsel %vm1259_vm7, %v1242_v2, %v725_v59  ;;  %v1244_v30 = vsel %vm1226_vm6, %v5164_v45, %v614_v21  ;;  %v4300_v2 = vld [vmem:[%s6814_s3 + $0x60] sm:$0xff]  }
 0x135   : > { %v999_v24 = vpop.permute.xlu0 %998  ;;  %v1459_v42 = vpop.permute.xlu1 %1458 }
 0x136   : > { %v1357_v12 = vsel %vm1325_vm9, %v1324_v57, %v999_v24  ;;  %v1484_v55 = vsel %vm1292_vm8, %v1482_v23, %v1459_v42 }
 0x139   : > { %v727_v35 = vpop.permute.xlu0 %726  ;;  %v902_v7 = vpop.permute.xlu1 %901 }
 0x13a   : > { %v1308_v19 = vsel %vm1292_vm8, %v1275_v50, %v902_v7  ;;  %v1277_v58 = vsel %vm1259_vm7, %v1244_v30, %v727_v35 }
 0x13d   : > { %v1144_v52 = vpop.permute.xlu0 %1143  ;;  %v1464_v4 = vpop.permute.xlu1 %1463 }
 0x13e   : > { %v1390_v40 = vsel %vm1358_vm10, %v1357_v12, %v1144_v52  ;;  %v1486_v44 = vsel %vm1325_vm9, %v1484_v55, %v1464_v4 }
 0x141   : > { %v904_v16 = vpop.permute.xlu0 %903  ;;  %v983_v32 = vpop.permute.xlu1 %982 }
 0x142   : > { %v1341_v10 = vsel %vm1325_vm9, %v1308_v19, %v983_v32  ;;  %v1310_v11 = vsel %vm1292_vm8, %v1277_v58, %v904_v16  ;;  %v2241_v16 = vsel %vm919_vm2, %v5447_v5, 0  ;;  %v4295_v32 = vld [vmem:[%s6814_s3 + $0x30] sm:$0xff]   ;;  %v4298_v5 = vld [vmem:[%s6814_s3 + $0x68] sm:$0x3f]  }
 0x145   : > { %v1225_v61 = vpop.permute.xlu0 %1224  ;;  %v1473_v48 = vpop.permute.xlu1 %1472 }
 0x146   : > { %v5820_v46 = vsel %vm1391_vm11, %v1390_v40, %v1225_v61  ;;  %v1488_v27 = vsel %vm1358_vm10, %v1486_v44, %v1473_v48  ;;  %v3072_v44 = vsel %vm919_vm2, %v4298_v5, 0 }
 0x147   : > { %3998 = vmatprep.mubr.msk.bf16.mxu1 %vm1507_vm12, %v5820_v46 }
 0x149   : > { %v985_v22 = vpop.permute.xlu0 %984  ;;  %v1128_v51 = vpop.permute.xlu1 %1127 }
 0x14a   : > { %v1374_v31 = vsel %vm1358_vm10, %v1341_v10, %v1128_v51  ;;  %v1343_v36 = vsel %vm1325_vm9, %v1310_v11, %v985_v22 }
 0x14d   : > { %v1478_v49 = vpop.permute.xlu0 %1477  ;;  %v1130_v60 = vpop.permute.xlu1 %1129 }
 0x14e   : > { %v5834_v8 = vsel %vm1391_vm11, %v1488_v27, %v1478_v49  ;;  %v1376_v33 = vsel %vm1358_vm10, %v1343_v36, %v1130_v60  ;;  %v2795_v27 = vsel %vm919_vm2, %v4297_v14, 0  ;;  %v4299_v49 = vld [vmem:[%s6814_s3 + $0x50] sm:$0xff]  }
 0x14f   : > { %3999 = vmatmul.mubr.msk.bf16.gmra.mxu1 %vm1507_vm12, %v5834_v8 }
 0x151   : > { %v1209_v34 = vpop.permute.xlu0 %1208  ;;  %v598_v29 = vpop.permute.xlu1 %597 }
 0x152   : > { %v5845_v41 = vsel %vm1391_vm11, %v1374_v31, %v1209_v34  ;;  %v1228_v26 = vsel %vm1226_vm6, %v5359_v1, %v598_v29 }
 0x153   : > { %3982 = vmatprep.mubr.msk.bf16.mxu0 %vm1507_vm12, %v5845_v41 }
 0x155   : > { %v1211_v3 = vpop.permute.xlu0 %1210  ;;  %v711_v45 = vpop.permute.xlu1 %710 }
 0x156   : > { %v5853_v20 = vsel %vm1391_vm11, %v1376_v33, %v1211_v3  ;;  %v1261_v21 = vsel %vm1259_vm7, %v1228_v26, %v711_v45 }
 0x157   : > { %3983 = vmatmul.mubr.msk.bf16.gmra.mxu0 %vm1507_vm12, %v5853_v20 }
 0x158   : > { %4042 = vmatprep.mubr.msk.bf16.mxu0 %vm1507_vm12, %v5326_v54 }
 0x159   : > { %v888_v59 = vpop.permute.xlu0 %887 }
 0x15a   : > { %v1294_v24 = vsel %vm1292_vm8, %v1261_v21, %v888_v59  ;;  %v969_v42 = vpop.permute.xlu1 %968 }
 0x15b   : > { %v1327_v35 = vsel %vm1325_vm9, %v1294_v24, %v969_v42 }
 0x15d   : > { %v1114_v7 = vpop.permute.xlu0 %1113 }
 0x15e   : > { %v1360_v52 = vsel %vm1358_vm10, %v1327_v35, %v1114_v7  ;;  %v1195_v4 = vpop.permute.xlu1 %1194 }
 0x15f   : > { %v1393_v1 = vsel %vm1391_vm11, %v1360_v52, %v1195_v4  ;;  %4043 = vmatmul.mubr.msk.bf16.vlgmr.msra.gmra.mxu0 %vm1507_vm12, %v5570_v43 }
 0x160   : > { %4006 = vmatprep.mubr.msk.bf16.mxu1 %vm1507_vm12, %v1393_v1  ;;  %4046 = vmatprep.mubr.msk.bf16.mxu0 %vm1507_vm12, %v5597_v0 }
 0x161   : > { %4007 = vmatmul.mubr.msk.bf16.vlgmr.msra.gmra.mxu1 %vm1507_vm12, %v5302_v53  ;;  %4111 = vmatpush3.bf16.msra.mxu0 %v2518_v38  ;;  %v6833_v53 = vld [vmem:[#allocation10_spill] sm:$0xff] }
 0x162   : > { %4075 = vmatpush3.bf16.msra.mxu1 %v2241_v16  ;;  %4010 = vmatprep.mubr.msk.bf16.mxu1 %vm1507_vm12, %v5326_v54  ;;  %v1895_v54 = vpop.permute.xlu0 %1894  ;;  %v1902_v12 = vpop.permute.xlu1 %1901 }
 0x163   : > { %4076 = vmatprep.subr.bf16.mxu1 %v4295_v32  ;;  %4112 = vmatprep.subr.bf16.mxu0 %v4296_v56  ;;  %v1934_v57 = vsel %vm1226_vm6, %v5425_v63, %v1895_v54 }
 0x164   : > { %v1936_v40 = vsel %vm1259_vm7, %v1934_v57, %v1902_v12 }
 0x165   : > { %4113 = vmatpush3.bf16.msra.mxu0 %v4296_v56 }
 0x166   : > { %4077 = vmatpush3.bf16.msra.mxu1 %v4295_v32  ;;  %4229 = vmatprep.subr.msk.bf16.mxu0 %vm919_vm2, %v4298_v5  ;;  %v1913_v61 = vpop.permute.xlu0 %1912  ;;  %v1918_v6 = vpop.permute.xlu1 %1917 }
 0x167   : > { %4047 = vmatmul.mubr.msk.bf16.gmra.mxu0 %vm1507_vm12, %v5794_v62  ;;  %4228 = vmatprep.subr.msk.bf16.mxu1 %vm919_vm2, %v4297_v14  ;;  %v1938_v48 = vsel %vm1292_vm8, %v1936_v40, %v1913_v61 }
 0x168   : > { %4050 = vmatprep.mubr.msk.bf16.mxu0 %vm1507_vm12, %v5807_v13  ;;  %v1940_v63 = vsel %vm1325_vm9, %v1938_v48, %v1918_v6 }
 0x169   : > { %4011 = vmatmul.mubr.msk.bf16.gmra.mxu1 %vm1507_vm12, %v5570_v43 }
 0x16a   : > { %4014 = vmatprep.mubr.msk.bf16.mxu1 %vm1507_vm12, %v5597_v0  ;;  %v1927_v22 = vpop.permute.xlu0 %1926  ;;  %v1932_v23 = vpop.permute.xlu1 %1931 }
 0x16b   : > { %v1942_v51 = vsel %vm1358_vm10, %v1940_v63, %v1927_v22 }
 0x16c   : > { %v5948_v55 = vsel %vm1391_vm11, %v1942_v51, %v1932_v23 }
 0x16f   : > { %4051 = vmatmul.mubr.msk.bf16.gmra.mxu0 %vm1507_vm12, %v5845_v41 }
 0x170   : > { %4054 = vmatprep.mubr.msk.bf16.mxu0 %vm1507_vm12, %v5853_v20 }
 0x171   : > { %4015 = vmatmul.mubr.msk.bf16.gmra.mxu1 %vm1507_vm12, %v5794_v62 }
 0x172   : > { %4018 = vmatprep.mubr.msk.bf16.mxu1 %vm1507_vm12, %v5807_v13 }
 0x177   : > { %4055 = vmatmul.mubr.msk.bf16.gmra.mxu0 %vm1507_vm12, %v6833_v53 }
 0x178   : > { %4058 = vmatprep.mubr.msk.bf16.mxu0 %vm1507_vm12, %v5270_v28 }
 0x179   : > { %4019 = vmatmul.mubr.msk.bf16.gmra.mxu1 %vm1507_vm12, %v5845_v41 }
 0x17a   : > { %4022 = vmatprep.mubr.msk.bf16.mxu1 %vm1507_vm12, %v5853_v20 }
 0x17f   : > { %4059 = vmatmul.mubr.msk.bf16.gmra.mxu0 %vm1507_vm12, %v5487_v37 }
 0x180   : > { %4062 = vmatprep.mubr.msk.bf16.mxu0 %vm1507_vm12, %v5534_v9  ;;  %v6060_v7 = vpop.f32.mrf.mxu1 }
 0x181   : > { %4023 = vmatmul.mubr.msk.bf16.gmra.mxu1 %vm1507_vm12, %v6833_v53 }
 0x182   : > { %4026 = vmatprep.mubr.msk.bf16.mxu1 %vm1507_vm12, %v5270_v28 }
 0x187   : > { %4063 = vmatmul.mubr.msk.bf16.gmra.mxu0 %vm1507_vm12, %v5740_v39 }
 0x188   : > { %4066 = vmatprep.mubr.msk.bf16.mxu0 %vm1507_vm12, %v5774_v15 }
 0x189   : > { %4027 = vmatmul.mubr.msk.bf16.gmra.mxu1 %vm1507_vm12, %v5487_v37 }
 0x18a   : > { %4030 = vmatprep.mubr.msk.bf16.mxu1 %vm1507_vm12, %v5534_v9 }
 0x18f   : > { %4067 = vmatmul.mubr.msk.bf16.gmra.mxu0 %vm1507_vm12, %v5820_v46 }
 0x190   : > { %4070 = vmatprep.mubr.msk.bf16.mxu0 %vm1507_vm12, %v5834_v8 }
 0x191   : > { %4031 = vmatmul.mubr.msk.bf16.gmra.mxu1 %vm1507_vm12, %v5740_v39 }
 0x192   : > { %4034 = vmatprep.mubr.msk.bf16.mxu1 %vm1507_vm12, %v5774_v15 }
 0x197   : > { %4071 = vmatmul.mubr.msk.bf16.gmra.mxu0 %vm1507_vm12, %v5948_v55 }
 0x198   : > { %4114 = vmatprep.mubr.msk.bf16.mxu0 %vm1507_vm12, %v5597_v0 }
 0x199   : > { %4035 = vmatmul.mubr.msk.bf16.gmra.mxu1 %vm1507_vm12, %v5820_v46 }
 0x19a   : > { %4078 = vmatprep.mubr.msk.bf16.mxu1 %vm1507_vm12, %v5570_v43  ;;  %v2172_v43 = vpop.permute.xlu0 %2171 }
 0x19b   : > { %v2211_v10 = vsel %vm1226_vm6, %v5499_v47, %v2172_v43 }
 0x19e   : > { %v2190_v60 = vpop.permute.xlu0 %2189 }
 0x19f   : > { %4115 = vmatmul.mubr.msk.bf16.vlgmr.msra.gmra.mxu0 %vm1507_vm12, %v5794_v62 }
 0x1a0   : > { %4118 = vmatprep.mubr.msk.bf16.mxu0 %vm1507_vm12, %v5807_v13  ;;  %4183 = vmatpush3.bf16.msra.mxu0 %v3072_v44 }
 0x1a1   : > { %4079 = vmatmul.mubr.msk.bf16.vlgmr.msra.gmra.mxu1 %vm1507_vm12, %v5597_v0  ;;  %4184 = vmatprep.subr.bf16.mxu0 %v4300_v2  ;;  %v2179_v0 = vpop.permute.xlu1 %2178 }
 0x1a2   : > { %4147 = vmatpush3.bf16.msra.mxu1 %v2795_v27  ;;  %4082 = vmatprep.mubr.msk.bf16.mxu1 %vm1507_vm12, %v5794_v62  ;;  %v2195_v19 = vpop.permute.xlu0 %2194  ;;  %v2213_v31 = vsel %vm1259_vm7, %v2211_v10, %v2179_v0 }
 0x1a3   : > { %4148 = vmatprep.subr.bf16.mxu1 %v4299_v49  ;;  %v2215_v29 = vsel %vm1292_vm8, %v2213_v31, %v2190_v60 }
 0x1a4   : > { %4185 = vmatpush3.bf16.msra.mxu0 %v4300_v2  ;;  %v2217_v47 = vsel %vm1325_vm9, %v2215_v29, %v2195_v19 }
 0x1a5   : > { %v2449_v50 = vpop.permute.xlu1 %2448 }
 0x1a6   : > { %4149 = vmatpush3.bf16.msra.mxu1 %v4299_v49  ;;  %v2204_v34 = vpop.permute.xlu0 %2203  ;;  %v2488_v58 = vsel %vm1226_vm6, %v5515_v17, %v2449_v50 }
 0x1a7   : > { %4119 = vmatmul.mubr.msk.bf16.gmra.mxu0 %vm1507_vm12, %v5845_v41  ;;  %v2219_v17 = vsel %vm1358_vm10, %v2217_v47, %v2204_v34 }
 0x1a8   : > { %4122 = vmatprep.mubr.msk.bf16.mxu0 %vm1507_vm12, %v5853_v20 }
 0x1a9   : > { %4083 = vmatmul.mubr.msk.bf16.gmra.mxu1 %vm1507_vm12, %v5807_v13  ;;  %v2456_v30 = vpop.permute.xlu1 %2455 }
 0x1aa   : > { %4086 = vmatprep.mubr.msk.bf16.mxu1 %vm1507_vm12, %v5845_v41  ;;  %v2490_v36 = vsel %vm1259_vm7, %v2488_v58, %v2456_v30  ;;  %v2209_v33 = vpop.permute.xlu0 %2208 }
 0x1ab   : > { %v6025_v26 = vsel %vm1391_vm11, %v2219_v17, %v2209_v33 }
 0x1ad   : > { %v2467_v11 = vpop.permute.xlu1 %2466 }
 0x1ae   : > { %v2492_v3 = vsel %vm1292_vm8, %v2490_v36, %v2467_v11  ;;  %v2481_v59 = vpop.permute.xlu0 %2480 }
 0x1af   : > { %4123 = vmatmul.mubr.msk.bf16.gmra.mxu0 %vm1507_vm12, %v6833_v53 }
 0x1b0   : > { %4126 = vmatprep.mubr.msk.bf16.mxu0 %vm1507_vm12, %v5270_v28 }
 0x1b1   : > { %4087 = vmatmul.mubr.msk.bf16.gmra.mxu1 %vm1507_vm12, %v5853_v20  ;;  %v2472_v45 = vpop.permute.xlu1 %2471 }
 0x1b2   : > { %4090 = vmatprep.mubr.msk.bf16.mxu1 %vm1507_vm12, %v6833_v53  ;;  %v2494_v21 = vsel %vm1325_vm9, %v2492_v3, %v2472_v45 }
 0x1b3   : > { %v2496_v24 = vsel %vm1358_vm10, %v2494_v21, %v2481_v59 }
 0x1b5   : > { %v2486_v42 = vpop.permute.xlu1 %2485 }
 0x1b6   : > { %v6038_v35 = vsel %vm1391_vm11, %v2496_v24, %v2486_v42 }
 0x1b7   : > { %4127 = vmatmul.mubr.msk.bf16.gmra.mxu0 %vm1507_vm12, %v5487_v37 }
 0x1b8   : > { %4130 = vmatprep.mubr.msk.bf16.mxu0 %vm1507_vm12, %v5534_v9 }
 0x1b9   : > { %4091 = vmatmul.mubr.msk.bf16.gmra.mxu1 %vm1507_vm12, %v5270_v28  ;;  %v2733_v4 = vpop.permute.xlu1 %2732 }
 0x1ba   : > { %4094 = vmatprep.mubr.msk.bf16.mxu1 %vm1507_vm12, %v5487_v37 }
 0x1bf   : > { %4131 = vmatmul.mubr.msk.bf16.gmra.mxu0 %vm1507_vm12, %v5740_v39 }
 0x1c0   : > { %4134 = vmatprep.mubr.msk.bf16.mxu0 %vm1507_vm12, %v5774_v15 }
 0x1c1   : > { %4095 = vmatmul.mubr.msk.bf16.gmra.mxu1 %vm1507_vm12, %v5534_v9 }
 0x1c2   : > { %4098 = vmatprep.mubr.msk.bf16.mxu1 %vm1507_vm12, %v5740_v39 }
 0x1c7   : > { %4135 = vmatmul.mubr.msk.bf16.gmra.mxu0 %vm1507_vm12, %v5820_v46 }
 0x1c8   : > { %4138 = vmatprep.mubr.msk.bf16.mxu0 %vm1507_vm12, %v5834_v8 }
 0x1c9   : > { %4099 = vmatmul.mubr.msk.bf16.gmra.mxu1 %vm1507_vm12, %v5774_v15 }
 0x1ca   : > { %4102 = vmatprep.mubr.msk.bf16.mxu1 %vm1507_vm12, %v5820_v46 }
 0x1cf   : > { %4139 = vmatmul.mubr.msk.bf16.gmra.mxu0 %vm1507_vm12, %v5948_v55 }
 0x1d0   : > { %4142 = vmatprep.mubr.msk.bf16.mxu0 %vm1507_vm12, %v6025_v26 }
 0x1d1   : > { %4103 = vmatmul.mubr.msk.bf16.gmra.mxu1 %vm1507_vm12, %v5834_v8 }
 0x1d2   : > { %4106 = vmatprep.mubr.msk.bf16.mxu1 %vm1507_vm12, %v5948_v55 }
 0x1d7   : > { %4143 = vmatmul.mubr.msk.bf16.gmra.mxu0 %vm1507_vm12, %v6038_v35 }
 0x1d8   : > { %4186 = vmatprep.mubr.msk.bf16.mxu0 %vm1507_vm12, %v5807_v13 }
 0x1d9   : > { %4107 = vmatmul.mubr.msk.bf16.gmra.mxu1 %vm1507_vm12, %v6025_v26 }
 0x1da   : > { %4150 = vmatprep.mubr.msk.bf16.mxu1 %vm1507_vm12, %v5794_v62  ;;  %v6066_v62 = vpop.f32.mrf.mxu1 }
 0x1df   : > { %4187 = vmatmul.mubr.msk.bf16.vlgmr.msra.gmra.mxu0 %vm1507_vm12, %v5845_v41 }
 0x1e0   : > { %4190 = vmatprep.mubr.msk.bf16.mxu0 %vm1507_vm12, %v5853_v20 }
 0x1e1   : > { %4151 = vmatmul.mubr.msk.bf16.vlgmr.msra.gmra.mxu1 %vm1507_vm12, %v5807_v13  ;;  %v6068_v13 = vpop.f32.mrf.mxu0 }
 0x1e2   : > { %4154 = vmatprep.mubr.msk.bf16.mxu1 %vm1507_vm12, %v5845_v41  ;;  %v6074_v41 = vpop.f32.mrf.mxu1 }
 0x1e3   : > { %v6076_v52 = vpop.f32.mrf.mxu0 }
 0x1e4   : > { %v6082_v38 = vpop.f32.mrf.mxu1 }
 0x1e5   : > { %v6084_v1 = vpop.f32.mrf.mxu0 }
 0x1e6   : > { %v6086_v16 = vpop.f32.mrf.mxu1 }
 0x1e7   : > { %4191 = vmatmul.mubr.msk.bf16.gmra.mxu0 %vm1507_vm12, %v6833_v53  ;;  %v6092_v56 = vpop.f32.mrf.mxu0 }
 0x1e8   : > { %4194 = vmatprep.mubr.msk.bf16.mxu0 %vm1507_vm12, %v5270_v28 }
 0x1e9   : > { %4155 = vmatmul.mubr.msk.bf16.gmra.mxu1 %vm1507_vm12, %v5853_v20  ;;  %v2726_v20 = vpop.permute.xlu0 %2725  ;;  %v6100_v5 = vpop.f32.mrf.mxu0 }
 0x1ea   : > { %4158 = vmatprep.mubr.msk.bf16.mxu1 %vm1507_vm12, %v6833_v53  ;;  %v2765_v57 = vsel %vm1226_vm6, %v5633_v25, %v2726_v20 }
 0x1eb   : > { %v6104_v54 = vpop.f32.mrf.mxu0  ;;  %v2767_v40 = vsel %vm1259_vm7, %v2765_v57, %v2733_v4 }
 0x1ed   : > { %v2744_v32 = vpop.permute.xlu0 %2743  ;;  %v6118_v12 = vpop.f32.mrf.mxu0 }
 0x1ee   : > { %v2769_v25 = vsel %vm1292_vm8, %v2767_v40, %v2744_v32 }
 0x1ef   : > { %4195 = vmatmul.mubr.msk.bf16.gmra.mxu0 %vm1507_vm12, %v5487_v37  ;;  %v6124_v63 = vpop.f32.mrf.mxu0 }
 0x1f0   : > { %4198 = vmatprep.mubr.msk.bf16.mxu0 %vm1507_vm12, %v5534_v9 }
 0x1f1   : > { %4159 = vmatmul.mubr.msk.bf16.gmra.mxu1 %vm1507_vm12, %v5270_v28  ;;  %v3003_v28 = vpop.permute.xlu1 %3002  ;;  %v2749_v14 = vpop.permute.xlu0 %2748 }
 0x1f2   : > { %4162 = vmatprep.mubr.msk.bf16.mxu1 %vm1507_vm12, %v5487_v37  ;;  %v6098_v37 = vpop.f32.mrf.mxu1  ;;  %v6134_v22 = vpop.f32.mrf.mxu0  ;;  %v2771_v51 = vsel %vm1325_vm9, %v2769_v25, %v2749_v14 }
 0x1f4   : > { %v6102_v53 = vpop.f32.mrf.mxu1  ;;  %v6145_v49 = vpop.f32.mrf.mxu0 }
 0x1f5   : > { %v2758_v61 = vpop.permute.xlu0 %2757 }
 0x1f6   : > { %v3981_v50 = vpop.f32.mrf.mxu0 }
 0x1f7   : > { %4199 = vmatmul.mubr.msk.bf16.gmra.mxu0 %vm1507_vm12, %v5740_v39 }
 0x1f8   : > { %4202 = vmatprep.mubr.msk.bf16.mxu0 %vm1507_vm12, %v5774_v15  ;;  %v1613_v31 = vpop.f32.mrf.mxu0 }
 0x1f9   : > { %4163 = vmatmul.mubr.msk.bf16.gmra.mxu1 %vm1507_vm12, %v5534_v9  ;;  %v3010_v9 = vpop.permute.xlu1 %3009  ;;  %v2763_v44 = vpop.permute.xlu0 %2762 }
 0x1fa   : > { %4166 = vmatprep.mubr.msk.bf16.mxu1 %vm1507_vm12, %v5740_v39  ;;  %v6116_v39 = vpop.f32.mrf.mxu1 }
 0x1fc   : > { %v6121_v48 = vpop.f32.mrf.mxu1 }
 0x1fd   : > { %v3021_v6 = vpop.permute.xlu1 %3020  ;;  %v3035_v60 = vpop.permute.xlu0 %3034 }
 0x1ff   : > { %4203 = vmatmul.mubr.msk.bf16.gmra.mxu0 %vm1507_vm12, %v5820_v46 }
 0x200   : > { %4206 = vmatprep.mubr.msk.bf16.mxu0 %vm1507_vm12, %v5834_v8 }
 0x201   : > { %4167 = vmatmul.mubr.msk.bf16.gmra.mxu1 %vm1507_vm12, %v5774_v15  ;;  %v3042_v15 = vsel %vm1226_vm6, %v5664_v18, %v3003_v28  ;;  %v2773_v18 = vsel %vm1358_vm10, %v2771_v51, %v2758_v61  ;;  %v3026_v2 = vpop.permute.xlu1 %3025 }
 0x202   : > { %4170 = vmatprep.mubr.msk.bf16.mxu1 %vm1507_vm12, %v5820_v46  ;;  %v6132_v46 = vpop.f32.mrf.mxu1  ;;  %v3044_v23 = vsel %vm1259_vm7, %v3042_v15, %v3010_v9  ;;  %v2775_v0 = vsel %vm1391_vm11, %v2773_v18, %v2763_v44 }
 0x203   : > { %v3046_v43 = vsel %vm1292_vm8, %v3044_v23, %v3021_v6 }
 0x204   : > { %v6143_v27 = vpop.f32.mrf.mxu1 }
 0x205   : > { %v3040_v10 = vpop.permute.xlu1 %3039 }
 0x207   : > { %4207 = vmatmul.mubr.msk.bf16.gmra.mxu0 %vm1507_vm12, %v5948_v55 }
 0x208   : > { %4210 = vmatprep.mubr.msk.bf16.mxu0 %vm1507_vm12, %v6025_v26 }
 0x209   : > { %4171 = vmatmul.mubr.msk.bf16.gmra.mxu1 %vm1507_vm12, %v5834_v8  ;;  %v3048_v8 = vsel %vm1325_vm9, %v3046_v43, %v3026_v2 }
 0x20a   : > { %4174 = vmatprep.mubr.msk.bf16.mxu1 %vm1507_vm12, %v5948_v55  ;;  %v6153_v55 = vpop.f32.mrf.mxu1  ;;  %v3050_v19 = vsel %vm1358_vm10, %v3048_v8, %v3035_v60 }
 0x20b   : > { %v3052_v34 = vsel %vm1391_vm11, %v3050_v19, %v3040_v10 }
 0x20f   : > { %4211 = vmatmul.mubr.msk.bf16.gmra.mxu0 %vm1507_vm12, %v6038_v35  ;;  %v6160_v30 = vpop.f32.mrf.mxu1 }
 0x210   : > { %4214 = vmatprep.mubr.msk.bf16.mxu0 %vm1507_vm12, %v2775_v0 }
 0x211   : > { %4175 = vmatmul.mubr.msk.bf16.gmra.mxu1 %vm1507_vm12, %v6025_v26  ;;  %v6163_v29 = vpop.f32.mrf.mxu1 }
 0x212   : > { %4178 = vmatprep.mubr.msk.bf16.mxu1 %vm1507_vm12, %v6038_v35 }
 0x213   : > { %v6167_v47 = vpop.f32.mrf.mxu1 }
 0x215   : > { %v6171_v17 = vpop.f32.mrf.mxu1 }
 0x217   : > { %v3984_v58 = vpop.f32.mrf.mxu0  ;;  %4215 = vmatmul.mubr.msk.bf16.gmra.mxu0 %vm1507_vm12, %v3052_v34 }
 0x219   : > { %v1626_v11 = vpop.f32.mrf.mxu0  ;;  %4179 = vmatmul.mubr.msk.bf16.gmra.mxu1 %vm1507_vm12, %v2775_v0 }
 0x21b   : > { %v3985_v36 = vpop.f32.mrf.mxu0 }
 0x21d   : > { %v6169_v33 = vpop.f32.mrf.mxu0 }
 0x21f   : > { %v4044_v3 = vpop.f32.mrf.mxu0 }
 0x221   : > { %v4008_v45 = vpop.f32.mrf.mxu1  ;;  %v2000_v26 = vpop.f32.mrf.mxu0 }
 0x222   : > { %v1764_v21 = vadd.f32 %v4008_v45, %v6068_v13 }
 0x223   : > { %v1755_v59 = vpop.f32.mrf.mxu1  ;;  %v4045_v24 = vpop.f32.mrf.mxu0 }
 0x224   : > { %v1756_v42 = vadd.f32 %v1755_v59, %v6076_v52  ;;  %v6175_v35 = vadd.f32 %v4044_v3, %v1764_v21 }
 0x225   : > { %v4009_v20 = vpop.f32.mrf.mxu1  ;;  %v2003_v4 = vpop.f32.mrf.mxu0 }
 0x226   : > { %v1767_v32 = vadd.f32 %v4009_v20, %v6084_v1  ;;  %v6178_v28 = vadd.f32 %v2000_v26, %v1756_v42 }
 0x227   : > { %v1758_v14 = vpop.f32.mrf.mxu1  ;;  %v4048_v57 = vpop.f32.mrf.mxu0 }
 0x228   : > { %v1759_v9 = vadd.f32 %v1758_v14, %v6092_v56  ;;  %v6181_v40 = vadd.f32 %v4045_v24, %v1767_v32 }
 0x229   : > { %v4012_v61 = vpop.f32.mrf.mxu1  ;;  %v2016_v13 = vpop.f32.mrf.mxu0 }
 0x22a   : > { %v1780_v25 = vadd.f32 %v4012_v61, %v6100_v5  ;;  %v6184_v6 = vadd.f32 %v2003_v4, %v1759_v9 }
 0x22b   : > { %v1771_v52 = vpop.f32.mrf.mxu1  ;;  %v4049_v15 = vpop.f32.mrf.mxu0 }
 0x22c   : > { %v1772_v51 = vadd.f32 %v1771_v52, %v6104_v54  ;;  %v6187_v23 = vadd.f32 %v4048_v57, %v1780_v25 }
 0x22d   : > { %v4013_v1 = vpop.f32.mrf.mxu1  ;;  %v2019_v44 = vpop.f32.mrf.mxu0 }
 0x22e   : > { %v1783_v18 = vadd.f32 %v4013_v1, %v6118_v12  ;;  %v6190_v2 = vadd.f32 %v2016_v13, %v1772_v51 }
 0x22f   : > { %v1774_v56 = vpop.f32.mrf.mxu1  ;;  %v4052_v43 = vpop.f32.mrf.mxu0 }
 0x230   : > { %v1775_v0 = vadd.f32 %v1774_v56, %v6124_v63  ;;  %v6193_v8 = vadd.f32 %v4049_v15, %v1783_v18 }
 0x231   : > { %v4016_v5 = vpop.f32.mrf.mxu1  ;;  %v2032_v60 = vpop.f32.mrf.mxu0 }
 0x232   : > { %v1796_v19 = vadd.f32 %v4016_v5, %v6134_v22  ;;  %v6196_v10 = vadd.f32 %v2019_v44, %v1775_v0 }
 0x233   : > { %v1787_v54 = vpop.f32.mrf.mxu1  ;;  %v4053_v34 = vpop.f32.mrf.mxu0 }
 0x234   : > { %v1788_v3 = vadd.f32 %v1787_v54, %v6145_v49  ;;  %v6199_v45 = vadd.f32 %v4052_v43, %v1796_v19 }
 0x235   : > { %v4017_v12 = vpop.f32.mrf.mxu1  ;;  %v2035_v26 = vpop.f32.mrf.mxu0 }
 0x236   : > { %v1799_v21 = vadd.f32 %v4017_v12, %v3981_v50  ;;  %v6201_v59 = vadd.f32 %v2032_v60, %v1788_v3 }
 0x237   : > { %v1790_v63 = vpop.f32.mrf.mxu1  ;;  %v4056_v24 = vpop.f32.mrf.mxu0 }
 0x238   : > { %v1791_v42 = vadd.f32 %v1790_v63, %v1613_v31  ;;  %v6203_v20 = vadd.f32 %v4053_v34, %v1799_v21 }
 0x239   : > { %v4020_v4 = vpop.f32.mrf.mxu1  ;;  %v2048_v22 = vpop.f32.mrf.mxu0 }
 0x23a   : > { %v1812_v32 = vadd.f32 %v4020_v4, %v3984_v58  ;;  %v6205_v14 = vadd.f32 %v2035_v26, %v1791_v42 }
 0x23b   : > { %v1803_v57 = vpop.f32.mrf.mxu1  ;;  %v4057_v9 = vpop.f32.mrf.mxu0 }
 0x23c   : > { %v1804_v49 = vadd.f32 %v1803_v57, %v1626_v11  ;;  %v6207_v61 = vadd.f32 %v4056_v24, %v1812_v32 }
 0x23d   : > { %v4021_v13 = vpop.f32.mrf.mxu1  ;;  %v2051_v25 = vpop.f32.mrf.mxu0 }
 0x23e   : > { %v1815_v50 = vadd.f32 %v4021_v13, %v3985_v36  ;;  %v6209_v52 = vadd.f32 %v2048_v22, %v1804_v49 }
 0x23f   : > { %v1806_v15 = vpop.f32.mrf.mxu1  ;;  %v4060_v51 = vpop.f32.mrf.mxu0 }
 0x240   : > { %v1807_v31 = vadd.f32 %v1806_v15, %v6169_v33  ;;  %v6212_v1 = vadd.f32 %v4057_v9, %v1815_v50 }
 0x241   : > { %v4024_v44 = vpop.f32.mrf.mxu1  ;;  %v2064_v58 = vpop.f32.mrf.mxu0 }
 0x242   : > { %v1828_v18 = vadd.f32 %v4024_v44, %v6060_v7  ;;  %v6215_v56 = vadd.f32 %v2051_v25, %v1807_v31 }
 0x243   : > { %v1819_v11 = vpop.f32.mrf.mxu1  ;;  %v4061_v43 = vpop.f32.mrf.mxu0 }
 0x244   : > { %v1820_v0 = vadd.f32 %v1819_v11, %v6066_v62  ;;  %v6218_v5 = vadd.f32 %v4060_v51, %v1828_v18 }
 0x245   : > { %v4025_v36 = vpop.f32.mrf.mxu1  ;;  %v2067_v60 = vpop.f32.mrf.mxu0 }
 0x246   : > { %v1831_v19 = vadd.f32 %v4025_v36, %v6074_v41  ;;  %v6221_v54 = vadd.f32 %v2064_v58, %v1820_v0 }
 0x247   : > { %v1822_v33 = vpop.f32.mrf.mxu1  ;;  %v4064_v34 = vpop.f32.mrf.mxu0 }
 0x248   : > { %v1823_v3 = vadd.f32 %v1822_v33, %v6082_v38  ;;  %v6224_v12 = vadd.f32 %v4061_v43, %v1831_v19 }
 0x249   : > { %v4028_v7 = vpop.f32.mrf.mxu1  ;;  %v2080_v26 = vpop.f32.mrf.mxu0 }
 0x24a   : > { %v1844_v21 = vadd.f32 %v4028_v7, %v6086_v16  ;;  %v6227_v63 = vadd.f32 %v2067_v60, %v1823_v3 }
 0x24b   : > { %v1835_v62 = vpop.f32.mrf.mxu1  ;;  %v4065_v24 = vpop.f32.mrf.mxu0 }
 0x24c   : > { %6834 = vst [vmem:[#allocation9_spill] sm:$0xff] %v6227_v63  ;;  %v1836_v42 = vadd.f32 %v1835_v62, %v6098_v37  ;;  %v6230_v4 = vadd.f32 %v4064_v34, %v1844_v21 }
 0x24d   : > { %v4029_v41 = vpop.f32.mrf.mxu1  ;;  %v2083_v22 = vpop.f32.mrf.mxu0 }
 0x24e   : > { %6835 = vst [vmem:[#allocation10_spill] sm:$0xff] %v6230_v4  ;;  %v1847_v32 = vadd.f32 %v4029_v41, %v6102_v53  ;;  %v6233_v57 = vadd.f32 %v2080_v26, %v1836_v42 }
 0x24f   : > { %v1838_v38 = vpop.f32.mrf.mxu1  ;;  %v4068_v9 = vpop.f32.mrf.mxu0 }
 0x250   : > { %6836 = vst [vmem:[#allocation11_spill] sm:$0xff] %v6233_v57  ;;  %v1839_v49 = vadd.f32 %v1838_v38, %v6116_v39  ;;  %v6236_v13 = vadd.f32 %v4065_v24, %v1847_v32 }
 0x251   : > { %v4032_v16 = vpop.f32.mrf.mxu1  ;;  %v2096_v25 = vpop.f32.mrf.mxu0 }
 0x252   : > { %6837 = vst [vmem:[#allocation12_spill] sm:$0xff] %v6236_v13  ;;  %v1860_v50 = vadd.f32 %v4032_v16, %v6121_v48  ;;  %v6239_v15 = vadd.f32 %v2083_v22, %v1839_v49 }
 0x253   : > { %v1851_v37 = vpop.f32.mrf.mxu1  ;;  %v4069_v51 = vpop.f32.mrf.mxu0 }
 0x254   : > { %6838 = vst [vmem:[#allocation13_spill] sm:$0xff] %v6239_v15  ;;  %v1852_v31 = vadd.f32 %v1851_v37, %v6132_v46  ;;  %v6242_v44 = vadd.f32 %v4068_v9, %v1860_v50 }
 0x255   : > { %v4033_v53 = vpop.f32.mrf.mxu1  ;;  %v2099_v58 = vpop.f32.mrf.mxu0 }
 0x256   : > { %6839 = vst [vmem:[#allocation14_spill] sm:$0xff] %v6242_v44  ;;  %v1863_v18 = vadd.f32 %v4033_v53, %v6143_v27  ;;  %v6245_v11 = vadd.f32 %v2096_v25, %v1852_v31 }
 0x257   : > { %v1854_v39 = vpop.f32.mrf.mxu1  ;;  %v4072_v43 = vpop.f32.mrf.mxu0 }
 0x258   : > { %6840 = vst [vmem:[#allocation15_spill] sm:$0xff] %v6245_v11  ;;  %v1855_v0 = vadd.f32 %v1854_v39, %v6153_v55  ;;  %v6248_v36 = vadd.f32 %v4069_v51, %v1863_v18 }
 0x259   : > { %v4036_v48 = vpop.f32.mrf.mxu1  ;;  %v2112_v60 = vpop.f32.mrf.mxu0 }
 0x25a   : > { %6841 = vst [vmem:[#allocation16_spill] sm:$0xff] %v6248_v36  ;;  %v1876_v19 = vadd.f32 %v4036_v48, %v6160_v30  ;;  %v6251_v33 = vadd.f32 %v2099_v58, %v1855_v0 }
 0x25b   : > { %v1867_v46 = vpop.f32.mrf.mxu1  ;;  %v4073_v34 = vpop.f32.mrf.mxu0 }
 0x25c   : > { %6842 = vst [vmem:[#allocation17_spill] sm:$0xff] %v6251_v33  ;;  %v1868_v3 = vadd.f32 %v1867_v46, %v6163_v29  ;;  %v6254_v7 = vadd.f32 %v4072_v43, %v1876_v19 }
 0x25d   : > { %v4037_v27 = vpop.f32.mrf.mxu1  ;;  %v2115_v26 = vpop.f32.mrf.mxu0 }
 0x25e   : > { %6843 = vst [vmem:[#allocation18_spill] sm:$0xff] %v6254_v7  ;;  %v1879_v21 = vadd.f32 %v4037_v27, %v6167_v47  ;;  %v6257_v62 = vadd.f32 %v2112_v60, %v1868_v3 }
 0x25f   : > { %v1870_v55 = vpop.f32.mrf.mxu1  ;;  %v6259_v24 = vpop.f32.mrf.mxu0 }
 0x260   : > { %6844 = vst [vmem:[#allocation19_spill] sm:$0xff] %v6257_v62  ;;  %v1871_v42 = vadd.f32 %v1870_v55, %v6171_v17  ;;  %v6262_v30 = vadd.f32 %v4073_v34, %v1879_v21 }
 0x261   : > { %v4080_v41 = vpop.f32.mrf.mxu1  ;;  %v6264_v22 = vpop.f32.mrf.mxu0 }
 0x262   : > { %6845 = vst [vmem:[#allocation20_spill] sm:$0xff] %v6262_v30  ;;  %v6266_v32 = vadd.f32 %v2115_v26, %v1871_v42 }
 0x263   : > { %v2277_v29 = vpop.f32.mrf.mxu1  ;;  %v6268_v38 = vpop.f32.mrf.mxu0 }
 0x264   : > { %6846 = vst [vmem:[#allocation21_spill] sm:$0xff] %v6266_v32 }
 0x265   : > { %v4081_v9 = vpop.f32.mrf.mxu1  ;;  %v6270_v49 = vpop.f32.mrf.mxu0 }
 0x267   : > { %v2280_v47 = vpop.f32.mrf.mxu1  ;;  %v6272_v16 = vpop.f32.mrf.mxu0 }
 0x269   : > { %v4084_v25 = vpop.f32.mrf.mxu1  ;;  %v6274_v50 = vpop.f32.mrf.mxu0 }
 0x26b   : > { %v2293_v17 = vpop.f32.mrf.mxu1  ;;  %v6276_v37 = vpop.f32.mrf.mxu0 }
 0x26d   : > { %v4085_v51 = vpop.f32.mrf.mxu1  ;;  %v6278_v31 = vpop.f32.mrf.mxu0 }
 0x26f   : > { %v2296_v53 = vpop.f32.mrf.mxu1  ;;  %v6280_v58 = vpop.f32.mrf.mxu0 }
 0x271   : > { %v4088_v18 = vpop.f32.mrf.mxu1  ;;  %v6282_v39 = vpop.f32.mrf.mxu0 }
 0x273   : > { %v2309_v43 = vpop.f32.mrf.mxu1  ;;  %v6284_v0 = vpop.f32.mrf.mxu0 }
 0x275   : > { %v4089_v48 = vpop.f32.mrf.mxu1  ;;  %v6286_v60 = vpop.f32.mrf.mxu0 }
 0x277   : > { %v2312_v19 = vpop.f32.mrf.mxu1  ;;  %v6288_v46 = vpop.f32.mrf.mxu0 }
 0x279   : > { %v4092_v34 = vpop.f32.mrf.mxu1  ;;  %v6290_v3 = vpop.f32.mrf.mxu0 }
 0x27b   : > { %v2325_v27 = vpop.f32.mrf.mxu1  ;;  %v6292_v26 = vpop.f32.mrf.mxu0 }
 0x27d   : > { %v4093_v21 = vpop.f32.mrf.mxu1  ;;  %v6294_v55 = vpop.f32.mrf.mxu0 }
 0x27e   : > { %6847 = vst [vmem:[#allocation22_spill] sm:$0xff] %v6294_v55 }
 0x27f   : > { %v2328_v42 = vpop.f32.mrf.mxu1  ;;  %v6296_v32 = vpop.f32.mrf.mxu0 }
 0x280   : > { %6848 = vst [vmem:[#allocation23_spill] sm:$0xff] %v6296_v32 }
 0x281   : > { %v4096_v30 = vpop.f32.mrf.mxu1  ;;  %v6298_v62 = vpop.f32.mrf.mxu0 }
 0x282   : > { %6849 = vst [vmem:[#allocation24_spill] sm:$0xff] %v6298_v62 }
 0x283   : > { %v2341_v7 = vpop.f32.mrf.mxu1  ;;  %v6300_v33 = vpop.f32.mrf.mxu0 }
 0x284   : > { %6850 = vst [vmem:[#allocation25_spill] sm:$0xff] %v6300_v33 }
 0x285   : > { %v4097_v36 = vpop.f32.mrf.mxu1  ;;  %v6302_v11 = vpop.f32.mrf.mxu0 }
 0x286   : > { %6851 = vst [vmem:[#allocation26_spill] sm:$0xff] %v6302_v11 }
 0x287   : > { %v6304_v44 = vpop.f32.mrf.mxu1  ;;  %v6306_v15 = vpop.f32.mrf.mxu0 }
 0x288   : > { %6852 = vst [vmem:[#allocation27_spill] sm:$0xff] %v6304_v44  ;;  %6853 = vst [vmem:[#allocation28_spill] sm:$0xff] %v6306_v15 }
 0x289   : > { %v6308_v13 = vpop.f32.mrf.mxu1  ;;  %v6310_v57 = vpop.f32.mrf.mxu0 }
 0x28a   : > { %6854 = vst [vmem:[#allocation29_spill] sm:$0xff] %v6308_v13  ;;  %6855 = vst [vmem:[#allocation30_spill] sm:$0xff] %v6310_v57 }
 0x28b   : > { %v6312_v55 = vpop.f32.mrf.mxu1  ;;  %v6314_v32 = vpop.f32.mrf.mxu0 }
 0x28c   : > { %6856 = vst [vmem:[#allocation31_spill] sm:$0xff] %v6312_v55  ;;  %6857 = vst [vmem:[#allocation32_spill] sm:$0xff] %v6314_v32  ;;  %v2406_v32 = vadd.f32 %v4080_v41, %v6175_v35 }
 0x28d   : > { %v6316_v4 = vpop.f32.mrf.mxu1  ;;  %v6318_v62 = vpop.f32.mrf.mxu0 }
 0x28e   : > { %6858 = vst [vmem:[#allocation33_spill] sm:$0xff] %v6316_v4  ;;  %6859 = vst [vmem:[#allocation34_spill] sm:$0xff] %v6318_v62  ;;  %v2683_v41 = vadd.f32 %v6259_v24, %v2406_v32 }
 0x28f   : > { %v6320_v33 = vpop.f32.mrf.mxu1  ;;  %v6322_v63 = vpop.f32.mrf.mxu0 }
 0x290   : > { %6860 = vst [vmem:[#allocation35_spill] sm:$0xff] %v6320_v33  ;;  %6861 = vst [vmem:[#allocation36_spill] sm:$0xff] %v6322_v63  ;;  %v2404_v63 = vadd.f32 %v2277_v29, %v6178_v28  ;;  %v2411_v28 = vadd.f32 %v4085_v51, %v6193_v8  ;;  %v2418_v8 = vadd.f32 %v4092_v34, %v6207_v61 }
 0x291   : > { %v6324_v11 = vpop.f32.mrf.mxu1  ;;  %v6326_v44 = vpop.f32.mrf.mxu0  ;;  %v6871_v51 = vld [vmem:[#allocation29_spill] sm:$0xff] }
 0x292   : > { %6862 = vst [vmem:[#allocation37_spill] sm:$0xff] %v6324_v11  ;;  %6863 = vst [vmem:[#allocation38_spill] sm:$0xff] %v6326_v44  ;;  %v2407_v11 = vadd.f32 %v4081_v9, %v6181_v40  ;;  %v2409_v40 = vadd.f32 %v2296_v53, %v6196_v10  ;;  %v2681_v29 = vadd.f32 %v6264_v22, %v2404_v63  ;;  %v6419_v53 = vld [vmem:[%s6815_s4] ss:$0 sm:$0xff] }
 0x293   : > { %v6328_v15 = vpop.f32.mrf.mxu1  ;;  %v6330_v13 = vpop.f32.mrf.mxu0  ;;  %v2416_v10 = vadd.f32 %v2325_v27, %v6209_v52  ;;  %v2419_v63 = vadd.f32 %v4093_v21, %v6212_v1  ;;  %v2420_v52 = vadd.f32 %v2341_v7, %v6221_v54  ;;  %v2423_v1 = vadd.f32 %v4097_v36, %v6224_v12  ;;  %v6877_v21 = vld [vmem:[#allocation31_spill] sm:$0xff] }
 0x294   : > { %6864 = vst [vmem:[#allocation39_spill] sm:$0xff] %v6328_v15  ;;  %6865 = vst [vmem:[#allocation40_spill] sm:$0xff] %v6330_v13  ;;  %v2405_v13 = vadd.f32 %v2280_v47, %v6184_v6  ;;  %v2684_v9 = vadd.f32 %v6268_v38, %v2407_v11  ;;  %v2414_v6 = vadd.f32 %v4088_v18, %v6199_v45 }
 0x295   : > { %v6332_v57 = vpop.f32.mrf.mxu1  ;;  %v6334_v55 = vpop.f32.mrf.mxu0  ;;  %v2413_v47 = vadd.f32 %v2312_v19, %v6205_v14  ;;  %v2417_v45 = vadd.f32 %v2328_v42, %v6215_v56  ;;  %v6388_v56 = vadd.f32 %v6278_v31, %v2409_v40  ;;  %v6404_v36 = vadd.f32 %v6288_v46, %v2418_v8  ;;  %v6874_v46 = vld [vmem:[#allocation24_spill] sm:$0xff]  ;;  %v6880_v40 = vld [vmem:[#allocation13_spill] sm:$0xff] }
 0x296   : > { %6866 = vst [vmem:[#allocation41_spill] sm:$0xff] %v6332_v57  ;;  %6867 = vst [vmem:[#allocation42_spill] sm:$0xff] %v6334_v55  ;;  %v2410_v57 = vadd.f32 %v4084_v25, %v6187_v23  ;;  %v2408_v55 = vadd.f32 %v2293_v17, %v6190_v2  ;;  %v2412_v23 = vadd.f32 %v2309_v43, %v6201_v59  ;;  %v6878_v42 = vld [vmem:[#allocation12_spill] sm:$0xff] }
 0x297   : > { %v6337_v4 = vpop.f32.mrf.mxu1  ;;  %v6339_v62 = vpop.f32.mrf.mxu0  ;;  %v2415_v2 = vadd.f32 %v4089_v48, %v6203_v20  ;;  %v2682_v11 = vadd.f32 %v6270_v49, %v2405_v13  ;;  %v2422_v59 = vadd.f32 %v4096_v30, %v6218_v5  ;;  %v6385_v13 = vadd.f32 %v6276_v37, %v2411_v28  ;;  %v6870_v37 = vld [vmem:[#allocation10_spill] sm:$0xff] }
 0x298   : > { %v2687_v22 = vadd.f32 %v6272_v16, %v2410_v57  ;;  %v6380_v61 = vadd.f32 %v6274_v50, %v2408_v55  ;;  %v6391_v32 = vadd.f32 %v6280_v58, %v2414_v6  ;;  %v6394_v57 = vadd.f32 %v6282_v39, %v2412_v23  ;;  %v6868_v16 = vld [vmem:[#allocation9_spill] sm:$0xff]  ;;  %v6869_v50 = vld [vmem:[#allocation27_spill] sm:$0xff]  ;;  %v6872_v39 = vld [vmem:[#allocation22_spill] sm:$0xff] }
 0x299   : > { %v6343_v33 = vpop.f32.mrf.mxu1  ;;  %v6345_v44 = vpop.f32.mrf.mxu0  ;;  %v6397_v38 = vadd.f32 %v6284_v0, %v2415_v2  ;;  %v6400_v54 = vadd.f32 %v6286_v60, %v2413_v47  ;;  %v6407_v7 = vadd.f32 %v6290_v3, %v2416_v10  ;;  %v6410_v49 = vadd.f32 %v6292_v26, %v2419_v63  ;;  %v6873_v0 = vld [vmem:[#allocation23_spill] sm:$0xff]  ;;  %v6875_v3 = vld [vmem:[#allocation25_spill] sm:$0xff]  ;;  %v6882_v2 = vld [vmem:[#allocation14_spill] sm:$0xff] }
 0x29a   : > { %v2421_v17 = vadd.f32 %v6869_v50, %v6868_v16  ;;  %v2426_v31 = vadd.f32 %v6871_v51, %v6870_v37  ;;  %v6422_v43 = vadd.f32 %v6872_v39, %v2417_v45  ;;  %v6425_v48 = vadd.f32 %v6873_v0, %v2422_v59  ;;  %v6876_v26 = vld [vmem:[#allocation11_spill] sm:$0xff]  ;;  %v6883_v47 = vld [vmem:[#allocation37_spill] sm:$0xff]  ;;  %v6889_v39 = vld [vmem:[#allocation26_spill] sm:$0xff] }
 0x29b   : > { %v6350_v15 = vpop.f32.mrf.mxu1  ;;  %v6352_v35 = vpop.f32.mrf.mxu0  ;;  %v6428_v34 = vadd.f32 %v6874_v46, %v2420_v52  ;;  %v6431_v27 = vadd.f32 %v6875_v3, %v2423_v1  ;;  %v2424_v55 = vadd.f32 %v6877_v21, %v6876_v26  ;;  %v6881_v6 = vld [vmem:[#allocation35_spill] sm:$0xff]  ;;  %v2430_v8 = vadd.f32 %v6883_v47, %v6882_v2  ;;  %v6888_v50 = vld [vmem:[#allocation17_spill] sm:$0xff]  ;;  %v6890_v46 = vld [vmem:[#allocation28_spill] sm:$0xff] }
 0x29c   : > { %v2425_v23 = vadd.f32 %v6881_v6, %v6880_v40  ;;  %v6884_v63 = vld [vmem:[#allocation15_spill] sm:$0xff]  ;;  %v2429_v37 = vadd.f32 %v6337_v4, %v6888_v50  ;;  %v6449_v0 = vadd.f32 %v6889_v39, %v2421_v17  ;;  %v6452_v3 = vadd.f32 %v6890_v46, %v2426_v31  ;;  %v6891_v26 = vld [vmem:[#allocation18_spill] sm:$0xff]  ;;  %v6896_v2 = vld [vmem:[#allocation20_spill] sm:$0xff] }
 0x29d   : > { %v6363_v25 = vpop.f32.mrf.mxu1  ;;  %v6365_v24 = vpop.f32.mrf.mxu0  ;;  %v6885_v45 = vld [vmem:[#allocation39_spill] sm:$0xff]  ;;  %v2434_v21 = vadd.f32 %v6343_v33, %v6891_v26  ;;  %v6894_v33 = vld [vmem:[#allocation32_spill] sm:$0xff] }
 0x29e   : > { %v2428_v59 = vadd.f32 %v6885_v45, %v6884_v63  ;;  %v2435_v47 = vadd.f32 %v6363_v25, %v6896_v2  ;;  %v6898_v63 = vld [vmem:[#allocation38_spill] sm:$0xff]  ;;  %v6901_v25 = vld [vmem:[#allocation21_spill] sm:$0xff] }
 0x29f   : > { %v6373_v20 = vpop.f32.mrf.mxu1  ;;  %v4188_v14 = vpop.f32.mrf.mxu0 }
 0x2a0   : > { %v6483_v45 = vadd.f32 %v6898_v63, %v2428_v59 }
 0x2a1   : > { %v4152_v5 = vpop.f32.mrf.mxu1  ;;  %v3108_v30 = vpop.f32.mrf.mxu0 }
 0x2a2   : > { %v2960_v12 = vadd.f32 %v4152_v5, %v2683_v41  ;;  %v6879_v41 = vld [vmem:[#allocation33_spill] sm:$0xff]  ;;  %v6886_v5 = vld [vmem:[#allocation16_spill] sm:$0xff] }
 0x2a3   : > { %v2831_v58 = vpop.f32.mrf.mxu1  ;;  %v4189_v18 = vpop.f32.mrf.mxu0  ;;  %v2427_v28 = vadd.f32 %v6879_v41, %v6878_v42  ;;  %v6893_v42 = vld [vmem:[#allocation30_spill] sm:$0xff] }
 0x2a4   : > { %v3237_v60 = vadd.f32 %v4188_v14, %v2960_v12  ;;  %v2958_v19 = vadd.f32 %v2831_v58, %v2681_v29  ;;  %v6887_v12 = vld [vmem:[#allocation41_spill] sm:$0xff]  ;;  %v6466_v41 = vadd.f32 %v6893_v42, %v2424_v55 }
 0x2a5   : > { %v4153_v29 = vpop.f32.mrf.mxu1  ;;  %v3111_v10 = vpop.f32.mrf.mxu0  ;;  %v2431_v16 = vadd.f32 %v6887_v12, %v6886_v5  ;;  %v6469_v40 = vadd.f32 %v6894_v33, %v2427_v28  ;;  %v6899_v5 = vld [vmem:[#allocation40_spill] sm:$0xff]  ;;  %v6900_v12 = vld [vmem:[#allocation42_spill] sm:$0xff] }
 0x2a6   : > { %v3276_v14 = vadd.f32 %v6419_v53, %v3237_v60  ;;  %v3235_v52 = vadd.f32 %v3108_v30, %v2958_v19  ;;  %v2961_v1 = vadd.f32 %v4153_v29, %v2684_v9  ;;  %v6892_v60 = vld [vmem:[#allocation19_spill] sm:$0xff]  ;;  %v6489_v50 = vadd.f32 %v6900_v12, %v2429_v37 }
 0x2a7   : > { %v2834_v51 = vpop.f32.mrf.mxu1  ;;  %v4192_v58 = vpop.f32.mrf.mxu0  ;;  %v2432_v9 = vadd.f32 %v6350_v15, %v6892_v60  ;;  %v6895_v15 = vld [vmem:[#allocation34_spill] sm:$0xff] }
 0x2a8   : > { %3309 = vst.msk [vmem:[%s6460_s18 + $0x10] sm:$0xff] %vm3306_vm13, %v3276_v14  ;;  %v3274_v4 = vadd.f32 %v6419_v53, %v3235_v52  ;;  %v3238_v30 = vadd.f32 %v4189_v18, %v2961_v1  ;;  %v2959_v17 = vadd.f32 %v2834_v51, %v2682_v11  ;;  %v6472_v6 = vadd.f32 %v6895_v15, %v2425_v23  ;;  %v6897_v11 = vld [vmem:[#allocation36_spill] sm:$0xff] }
 0x2a9   : > { %v4156_v19 = vpop.f32.mrf.mxu1  ;;  %v3124_v31 = vpop.f32.mrf.mxu0  ;;  %v6480_v29 = vadd.f32 %v6897_v11, %v2430_v8  ;;  %v6486_v23 = vadd.f32 %v6899_v5, %v2431_v16  ;;  %v6493_v51 = vadd.f32 %v6373_v20, %v6901_v25  ;;  %v3412_v59 = vmul.f32 %v3276_v14, %v3276_v14 }
 0x2aa   : > { %3307 = vst.msk [vmem:[%s6460_s18] sm:$0xff] %vm3306_vm13, %v3274_v4  ;;  %v3277_v18 = vadd.f32 %v6419_v53, %v3238_v30  ;;  %v3236_v55 = vadd.f32 %v3111_v10, %v2959_v17  ;;  %v2964_v52 = vadd.f32 %v4156_v19, %v2687_v22  ;;  %v6499_v10 = vadd.f32 %v6339_v62, %v2434_v21 }
 0x2ab   : > { %v2847_v28 = vpop.f32.mrf.mxu1  ;;  %v4193_v1 = vpop.f32.mrf.mxu0  ;;  %v6502_v22 = vadd.f32 %v6345_v44, %v2432_v9  ;;  %v3410_v16 = vmul.f32 %v3274_v4, %v3274_v4  ;;  %v3339_v20 = vsel %vm3306_vm13, %v3274_v4, 0.0  ;;  %v3445_v42 = vsel %vm3306_vm13, %v3412_v59, 0.0 }
 0x2ac   : > { %3310 = vst.msk [vmem:[%s6460_s18 + $0x18] sm:$0xff] %vm3306_vm13, %v3277_v18  ;;  %v2962_v8 = vadd.f32 %v2847_v28, %v6380_v61  ;;  %v3275_v37 = vadd.f32 %v6419_v53, %v3236_v55  ;;  %v3241_v39 = vadd.f32 %v4192_v58, %v2964_v52  ;;  %v6508_v61 = vadd.f32 %v6352_v35, %v2435_v47 }
 0x2ad   : > { %v4157_v46 = vpop.f32.mrf.mxu1  ;;  %v3127_v26 = vpop.f32.mrf.mxu0  ;;  %v3413_v62 = vmul.f32 %v3277_v18, %v3277_v18  ;;  %v3342_v35 = vsel %vm3306_vm13, %v3276_v14, 0.0  ;;  %v3442_v33 = vsel %vm3306_vm13, %v3410_v16, 0.0  ;;  %v3344_v11 = vsel %vm3306_vm13, %v3277_v18, 0.0 }
 0x2ae   : > { %v3239_v60 = vadd.f32 %v3124_v31, %v2962_v8  ;;  %v2965_v30 = vadd.f32 %v4157_v46, %v6385_v13  ;;  %3308 = vst.msk [vmem:[%s6460_s18 + $0x8] sm:$0xff] %vm3306_vm13, %v3275_v37  ;;  %v3340_v44 = vsel %vm3306_vm13, %v3275_v37, 0.0  ;;  %v3411_v21 = vmul.f32 %v3275_v37, %v3275_v37 }
 0x2af   : > { %v3280_v9 = vadd.f32 %v6419_v53, %v3241_v39  ;;  %v2850_v58 = vpop.f32.mrf.mxu1  ;;  %v4196_v17 = vpop.f32.mrf.mxu0  ;;  %v3341_v19 = vadd.f32 %v3340_v44, %v3339_v20  ;;  %v3447_v14 = vsel %vm3306_vm13, %v3413_v62, 0.0 }
 0x2b0   : > { %v3278_v4 = vadd.f32 %v6419_v53, %v3239_v60  ;;  %v3242_v31 = vadd.f32 %v4193_v1, %v2965_v30  ;;  %v2963_v13 = vadd.f32 %v2850_v58, %v6388_v56  ;;  %v3443_v15 = vsel %vm3306_vm13, %v3411_v21, 0.0 }
 0x2b1   : > { %3313 = vst.msk [vmem:[%s6460_s18 + $0x30] sm:$0xff] %vm3306_vm13, %v3280_v9  ;;  %v4160_v2 = vpop.f32.mrf.mxu1  ;;  %v3140_v47 = vpop.f32.mrf.mxu0  ;;  %v3343_v63 = vadd.f32 %v3342_v35, %v3341_v19  ;;  %v3444_v55 = vadd.f32 %v3443_v15, %v3442_v33  ;;  %v3416_v8 = vmul.f32 %v3280_v9, %v3280_v9 }
 0x2b2   : > { %3311 = vst.msk [vmem:[%s6460_s18 + $0x20] sm:$0xff] %vm3306_vm13, %v3278_v4  ;;  %v3414_v56 = vmul.f32 %v3278_v4, %v3278_v4  ;;  %v3281_v52 = vadd.f32 %v6419_v53, %v3242_v31  ;;  %v3240_v28 = vadd.f32 %v3127_v26, %v2963_v13  ;;  %v2968_v1 = vadd.f32 %v4160_v2, %v6391_v32 }
 0x2b3   : > { %v2863_v5 = vpop.f32.mrf.mxu1  ;;  %v4197_v12 = vpop.f32.mrf.mxu0  ;;  %v3446_v25 = vadd.f32 %v3445_v42, %v3444_v55  ;;  %v3345_v59 = vadd.f32 %v3344_v11, %v3343_v63  ;;  %v3346_v16 = vsel %vm3306_vm13, %v3278_v4, 0.0  ;;  %v3350_v42 = vsel %vm3306_vm13, %v3280_v9, 0.0 }
 0x2b4   : > { %v2966_v18 = vadd.f32 %v2863_v5, %v6394_v57  ;;  %v3449_v37 = vsel %vm3306_vm13, %v3414_v56, 0.0  ;;  %3314 = vst.msk [vmem:[%s6460_s18 + $0x38] sm:$0xff] %vm3306_vm13, %v3281_v52  ;;  %v3279_v39 = vadd.f32 %v6419_v53, %v3240_v28  ;;  %v3245_v46 = vadd.f32 %v4196_v17, %v2968_v1 }
 0x2b5   : > { %v4161_v26 = vpop.f32.mrf.mxu1  ;;  %v3143_v20 = vpop.f32.mrf.mxu0  ;;  %v3347_v32 = vadd.f32 %v3346_v16, %v3345_v59  ;;  %v3448_v60 = vadd.f32 %v3447_v14, %v3446_v25  ;;  %v3417_v44 = vmul.f32 %v3281_v52, %v3281_v52  ;;  %v3352_v11 = vsel %vm3306_vm13, %v3281_v52, 0.0 }
 0x2b6   : > { %v3243_v30 = vadd.f32 %v3140_v47, %v2966_v18  ;;  %v2969_v62 = vadd.f32 %v4161_v26, %v6397_v38  ;;  %3312 = vst.msk [vmem:[%s6460_s18 + $0x28] sm:$0xff] %vm3306_vm13, %v3279_v39  ;;  %v3348_v57 = vsel %vm3306_vm13, %v3279_v39, 0.0  ;;  %v3415_v21 = vmul.f32 %v3279_v39, %v3279_v39 }
 0x2b7   : > { %v3284_v58 = vadd.f32 %v6419_v53, %v3245_v46  ;;  %v2866_v19 = vpop.f32.mrf.mxu1  ;;  %v4200_v4 = vpop.f32.mrf.mxu0  ;;  %v3450_v17 = vadd.f32 %v3449_v37, %v3448_v60  ;;  %v3349_v31 = vadd.f32 %v3348_v57, %v3347_v32  ;;  %v3453_v38 = vsel %vm3306_vm13, %v3416_v8, 0.0 }
 0x2b8   : > { %v3282_v13 = vadd.f32 %v6419_v53, %v3243_v30  ;;  %v3246_v35 = vadd.f32 %v4197_v12, %v2969_v62  ;;  %v3451_v33 = vsel %vm3306_vm13, %v3415_v21, 0.0  ;;  %v2967_v15 = vadd.f32 %v2866_v19, %v6400_v54 }
 0x2b9   : > { %3317 = vst.msk [vmem:[%s6460_s18 + $0x50] sm:$0xff] %vm3306_vm13, %v3284_v58  ;;  %v4164_v2 = vpop.f32.mrf.mxu1  ;;  %v3156_v47 = vpop.f32.mrf.mxu0  ;;  %v3351_v63 = vadd.f32 %v3350_v42, %v3349_v31  ;;  %v3452_v55 = vadd.f32 %v3451_v33, %v3450_v17  ;;  %v3455_v9 = vsel %vm3306_vm13, %v3417_v44, 0.0  ;;  %v3420_v25 = vmul.f32 %v3284_v58, %v3284_v58 }
 0x2ba   : > { %3315 = vst.msk [vmem:[%s6460_s18 + $0x40] sm:$0xff] %vm3306_vm13, %v3282_v13  ;;  %v3418_v56 = vmul.f32 %v3282_v13, %v3282_v13  ;;  %v3285_v14 = vadd.f32 %v6419_v53, %v3246_v35  ;;  %v3244_v28 = vadd.f32 %v3143_v20, %v2967_v15  ;;  %v2972_v1 = vadd.f32 %v4164_v2, %v6404_v36 }
 0x2bb   : > { %v2879_v5 = vpop.f32.mrf.mxu1  ;;  %v4201_v12 = vpop.f32.mrf.mxu0  ;;  %v3454_v54 = vadd.f32 %v3453_v38, %v3452_v55  ;;  %v3353_v8 = vadd.f32 %v3352_v11, %v3351_v63  ;;  %v3354_v59 = vsel %vm3306_vm13, %v3282_v13, 0.0  ;;  %v3358_v31 = vsel %vm3306_vm13, %v3284_v58, 0.0 }
 0x2bc   : > { %v2970_v52 = vadd.f32 %v2879_v5, %v6407_v7  ;;  %v3457_v18 = vsel %vm3306_vm13, %v3418_v56, 0.0  ;;  %3318 = vst.msk [vmem:[%s6460_s18 + $0x58] sm:$0xff] %vm3306_vm13, %v3285_v14  ;;  %v3283_v16 = vadd.f32 %v6419_v53, %v3244_v28  ;;  %v3249_v37 = vadd.f32 %v4200_v4, %v2972_v1 }
 0x2bd   : > { %v4165_v39 = vpop.f32.mrf.mxu1  ;;  %v3159_v46 = vpop.f32.mrf.mxu0  ;;  %v3355_v36 = vadd.f32 %v3354_v59, %v3353_v8  ;;  %v3456_v26 = vadd.f32 %v3455_v9, %v3454_v54  ;;  %v3421_v60 = vmul.f32 %v3285_v14, %v3285_v14  ;;  %v3360_v33 = vsel %vm3306_vm13, %v3285_v14, 0.0 }
 0x2be   : > { %v3247_v20 = vadd.f32 %v3156_v47, %v2970_v52  ;;  %v2973_v32 = vadd.f32 %v4165_v39, %v6410_v49  ;;  %3316 = vst.msk [vmem:[%s6460_s18 + $0x48] sm:$0xff] %vm3306_vm13, %v3283_v16  ;;  %v3356_v7 = vsel %vm3306_vm13, %v3283_v16, 0.0  ;;  %v3419_v30 = vmul.f32 %v3283_v16, %v3283_v16 }
 0x2bf   : > { %v3288_v62 = vadd.f32 %v6419_v53, %v3249_v37  ;;  %v2882_v44 = vpop.f32.mrf.mxu1  ;;  %v4204_v57 = vpop.f32.mrf.mxu0  ;;  %v3458_v21 = vadd.f32 %v3457_v18, %v3456_v26  ;;  %v3357_v19 = vadd.f32 %v3356_v7, %v3355_v36  ;;  %v3461_v49 = vsel %vm3306_vm13, %v3420_v25, 0.0 }
 0x2c0   : > { %v3286_v4 = vadd.f32 %v6419_v53, %v3247_v20  ;;  %v3250_v17 = vadd.f32 %v4201_v12, %v2973_v32  ;;  %v3459_v13 = vsel %vm3306_vm13, %v3419_v30, 0.0  ;;  %v2971_v35 = vadd.f32 %v2882_v44, %v6422_v43 }
 0x2c1   : > { %3321 = vst.msk [vmem:[%s6460_s18 + $0x70] sm:$0xff] %vm3306_vm13, %v3288_v62  ;;  %v4168_v42 = vpop.f32.mrf.mxu1  ;;  %v3172_v38 = vpop.f32.mrf.mxu0  ;;  %v3359_v15 = vadd.f32 %v3358_v31, %v3357_v19  ;;  %v3460_v2 = vadd.f32 %v3459_v13, %v3458_v21  ;;  %v3463_v58 = vsel %vm3306_vm13, %v3421_v60, 0.0  ;;  %v3424_v28 = vmul.f32 %v3288_v62, %v3288_v62 }
 0x2c2   : > { %3319 = vst.msk [vmem:[%s6460_s18 + $0x60] sm:$0xff] %vm3306_vm13, %v3286_v4  ;;  %v3422_v47 = vmul.f32 %v3286_v4, %v3286_v4  ;;  %v3289_v11 = vadd.f32 %v6419_v53, %v3250_v17  ;;  %v3248_v63 = vadd.f32 %v3159_v46, %v2971_v35  ;;  %v2976_v55 = vadd.f32 %v4168_v42, %v6425_v48 }
 0x2c3   : > { %v2895_v56 = vpop.f32.mrf.mxu1  ;;  %v4205_v9 = vpop.f32.mrf.mxu0  ;;  %v3462_v43 = vadd.f32 %v3461_v49, %v3460_v2  ;;  %v3361_v1 = vadd.f32 %v3360_v33, %v3359_v15  ;;  %v3362_v5 = vsel %vm3306_vm13, %v3286_v4, 0.0  ;;  %v3366_v30 = vsel %vm3306_vm13, %v3288_v62, 0.0 }
 0x2c4   : > { %v2974_v14 = vadd.f32 %v2895_v56, %v6428_v34  ;;  %v3465_v12 = vsel %vm3306_vm13, %v3422_v47, 0.0  ;;  %3322 = vst.msk [vmem:[%s6460_s18 + $0x78] sm:$0xff] %vm3306_vm13, %v3289_v11  ;;  %v3287_v54 = vadd.f32 %v6419_v53, %v3248_v63  ;;  %v3253_v25 = vadd.f32 %v4204_v57, %v2976_v55 }
 0x2c5   : > { %v4169_v8 = vpop.f32.mrf.mxu1  ;;  %v3175_v52 = vpop.f32.mrf.mxu0  ;;  %v3363_v48 = vadd.f32 %v3362_v5, %v3361_v1  ;;  %v3464_v59 = vadd.f32 %v3463_v58, %v3462_v43  ;;  %v3425_v37 = vmul.f32 %v3289_v11, %v3289_v11  ;;  %v3368_v4 = vsel %vm3306_vm13, %v3289_v11, 0.0 }
 0x2c6   : > { %v3251_v18 = vadd.f32 %v3172_v38, %v2974_v14  ;;  %v2977_v16 = vadd.f32 %v4169_v8, %v6431_v27  ;;  %3320 = vst.msk [vmem:[%s6460_s18 + $0x68] sm:$0xff] %vm3306_vm13, %v3287_v54  ;;  %v3364_v34 = vsel %vm3306_vm13, %v3287_v54, 0.0  ;;  %v3423_v39 = vmul.f32 %v3287_v54, %v3287_v54 }
 0x2c7   : > { %v3292_v46 = vadd.f32 %v6419_v53, %v3253_v25  ;;  %v2898_v36 = vpop.f32.mrf.mxu1  ;;  %v4208_v26 = vpop.f32.mrf.mxu0  ;;  %v3466_v20 = vadd.f32 %v3465_v12, %v3464_v59  ;;  %v3365_v32 = vadd.f32 %v3364_v34, %v3363_v48  ;;  %v3469_v27 = vsel %vm3306_vm13, %v3424_v28, 0.0 }
 0x2c8   : > { %v3290_v60 = vadd.f32 %v6419_v53, %v3251_v18  ;;  %v3254_v7 = vadd.f32 %v4205_v9, %v2977_v16  ;;  %v3467_v44 = vsel %vm3306_vm13, %v3423_v39, 0.0  ;;  %v2975_v57 = vadd.f32 %v2898_v36, %v6449_v0 }
 0x2c9   : > { %3325 = vst.msk [vmem:[%s6460_s18 + $0x90] sm:$0xff] %vm3306_vm13, %v3292_v46  ;;  %v4172_v21 = vpop.f32.mrf.mxu1  ;;  %v3188_v19 = vpop.f32.mrf.mxu0  ;;  %v3367_v17 = vadd.f32 %v3366_v30, %v3365_v32  ;;  %v3468_v31 = vadd.f32 %v3467_v44, %v3466_v20  ;;  %v3471_v62 = vsel %vm3306_vm13, %v3425_v37, 0.0  ;;  %v3428_v15 = vmul.f32 %v3292_v46, %v3292_v46 }
 0x2ca   : > { %3323 = vst.msk [vmem:[%s6460_s18 + $0x80] sm:$0xff] %vm3306_vm13, %v3290_v60  ;;  %v3426_v49 = vmul.f32 %v3290_v60, %v3290_v60  ;;  %v3293_v13 = vadd.f32 %v6419_v53, %v3254_v7  ;;  %v3252_v35 = vadd.f32 %v3175_v52, %v2975_v57  ;;  %v2980_v42 = vadd.f32 %v4172_v21, %v6452_v3 }
 0x2cb   : > { %v2911_v38 = vpop.f32.mrf.mxu1  ;;  %v4209_v33 = vpop.f32.mrf.mxu0  ;;  %v3470_v0 = vadd.f32 %v3469_v27, %v3468_v31  ;;  %v3369_v2 = vadd.f32 %v3368_v4, %v3367_v17  ;;  %v3370_v58 = vsel %vm3306_vm13, %v3290_v60, 0.0  ;;  %v3374_v18 = vsel %vm3306_vm13, %v3292_v46, 0.0 }
 0x2cc   : > { %v2978_v47 = vadd.f32 %v2911_v38, %v6466_v41  ;;  %v3473_v11 = vsel %vm3306_vm13, %v3426_v49, 0.0  ;;  %3326 = vst.msk [vmem:[%s6460_s18 + $0x98] sm:$0xff] %vm3306_vm13, %v3293_v13  ;;  %v3291_v63 = vadd.f32 %v6419_v53, %v3252_v35  ;;  %v3257_v55 = vadd.f32 %v4208_v26, %v2980_v42 }
 0x2cd   : > { %v4173_v56 = vpop.f32.mrf.mxu1  ;;  %v3191_v9 = vpop.f32.mrf.mxu0  ;;  %v3371_v3 = vadd.f32 %v3370_v58, %v3369_v2  ;;  %v3472_v43 = vadd.f32 %v3471_v62, %v3470_v0  ;;  %v3429_v14 = vmul.f32 %v3293_v13, %v3293_v13  ;;  %v3376_v36 = vsel %vm3306_vm13, %v3293_v13, 0.0 }
 0x2ce   : > { %v3255_v28 = vadd.f32 %v3188_v19, %v2978_v47  ;;  %v2981_v1 = vadd.f32 %v4173_v56, %v6469_v40  ;;  %3324 = vst.msk [vmem:[%s6460_s18 + $0x88] sm:$0xff] %vm3306_vm13, %v3291_v63  ;;  %v3372_v41 = vsel %vm3306_vm13, %v3291_v63, 0.0  ;;  %v3427_v5 = vmul.f32 %v3291_v63, %v3291_v63 }
 0x2cf   : > { %v3296_v12 = vadd.f32 %v6419_v53, %v3257_v55  ;;  %v2914_v54 = vpop.f32.mrf.mxu1  ;;  %v4212_v25 = vpop.f32.mrf.mxu0  ;;  %v3474_v8 = vadd.f32 %v3473_v11, %v3472_v43  ;;  %v3373_v52 = vadd.f32 %v3372_v41, %v3371_v3  ;;  %v3477_v40 = vsel %vm3306_vm13, %v3428_v15, 0.0 }
 0x2d0   : > { %v3294_v48 = vadd.f32 %v6419_v53, %v3255_v28  ;;  %v3258_v59 = vadd.f32 %v4209_v33, %v2981_v1  ;;  %v3475_v16 = vsel %vm3306_vm13, %v3427_v5, 0.0  ;;  %v2979_v37 = vadd.f32 %v2914_v54, %v6472_v6 }
 0x2d1   : > { %3329 = vst.msk [vmem:[%s6460_s18 + $0xb0] sm:$0xff] %vm3306_vm13, %v3296_v12  ;;  %v4176_v34 = vpop.f32.mrf.mxu1  ;;  %v3204_v39 = vpop.f32.mrf.mxu0  ;;  %v3375_v26 = vadd.f32 %v3374_v18, %v3373_v52  ;;  %v3476_v20 = vadd.f32 %v3475_v16, %v3474_v8  ;;  %v3479_v46 = vsel %vm3306_vm13, %v3429_v14, 0.0  ;;  %v3432_v57 = vmul.f32 %v3296_v12, %v3296_v12 }
 0x2d2   : > { %3327 = vst.msk [vmem:[%s6460_s18 + $0xa0] sm:$0xff] %vm3306_vm13, %v3294_v48  ;;  %v3430_v32 = vmul.f32 %v3294_v48, %v3294_v48  ;;  %v3297_v60 = vadd.f32 %v6419_v53, %v3258_v59  ;;  %v3256_v7 = vadd.f32 %v3191_v9, %v2979_v37  ;;  %v2984_v30 = vadd.f32 %v4176_v34, %v6480_v29 }
 0x2d3   : > { %v2927_v27 = vpop.f32.mrf.mxu1  ;;  %v4213_v44 = vpop.f32.mrf.mxu0  ;;  %v3478_v6 = vadd.f32 %v3477_v40, %v3476_v20  ;;  %v3377_v21 = vadd.f32 %v3376_v36, %v3375_v26  ;;  %v3378_v4 = vsel %vm3306_vm13, %v3294_v48, 0.0  ;;  %v3382_v56 = vsel %vm3306_vm13, %v3296_v12, 0.0 }
 0x2d4   : > { %v2982_v19 = vadd.f32 %v2927_v27, %v6483_v45  ;;  %v3481_v17 = vsel %vm3306_vm13, %v3430_v32, 0.0  ;;  %3330 = vst.msk [vmem:[%s6460_s18 + $0xb8] sm:$0xff] %vm3306_vm13, %v3297_v60  ;;  %v3295_v31 = vadd.f32 %v6419_v53, %v3256_v7  ;;  %v3261_v49 = vadd.f32 %v4212_v25, %v2984_v30 }
 0x2d5   : > { %v4177_v62 = vpop.f32.mrf.mxu1  ;;  %v3207_v13 = vpop.f32.mrf.mxu0  ;;  %v3379_v29 = vadd.f32 %v3378_v4, %v3377_v21  ;;  %v3480_v35 = vadd.f32 %v3479_v46, %v3478_v6  ;;  %v3433_v33 = vmul.f32 %v3297_v60, %v3297_v60  ;;  %v2710_v43 = vadd.f32 %v6365_v24, %v6493_v51 }
 0x2d6   : > { %v3259_v42 = vadd.f32 %v3204_v39, %v2982_v19  ;;  %v2985_v38 = vadd.f32 %v4177_v62, %v6486_v23  ;;  %3328 = vst.msk [vmem:[%s6460_s18 + $0xa8] sm:$0xff] %vm3306_vm13, %v3295_v31  ;;  %v3380_v45 = vsel %vm3306_vm13, %v3295_v31, 0.0  ;;  %v3431_v0 = vmul.f32 %v3295_v31, %v3295_v31 }
 0x2d7   : > { %v3300_v15 = vadd.f32 %v6419_v53, %v3261_v49  ;;  %v2930_v2 = vpop.f32.mrf.mxu1  ;;  %v4216_v47 = vpop.f32.mrf.mxu0  ;;  %v3482_v58 = vadd.f32 %v3481_v17, %v3480_v35  ;;  %v3381_v11 = vadd.f32 %v3380_v45, %v3379_v29  ;;  %v3485_v28 = vsel %vm3306_vm13, %v3432_v57, 0.0 }
 0x2d8   : > { %v3298_v63 = vadd.f32 %v6419_v53, %v3259_v42  ;;  %v3262_v55 = vadd.f32 %v4213_v44, %v2985_v38  ;;  %v3483_v23 = vsel %vm3306_vm13, %v3431_v0, 0.0  ;;  %v2983_v9 = vadd.f32 %v2930_v2, %v6489_v50 }
 0x2d9   : > { %3333 = vst.msk [vmem:[%s6460_s18 + $0xd0] sm:$0xff] %vm3306_vm13, %v3300_v15  ;;  %v4180_v3 = vpop.f32.mrf.mxu1  ;;  %v3384_v1 = vsel %vm3306_vm13, %v3297_v60, 0.0  ;;  %v3383_v14 = vadd.f32 %v3382_v56, %v3381_v11  ;;  %v3484_v41 = vadd.f32 %v3483_v23, %v3482_v58  ;;  %v3220_v5 = vpop.f32.mrf.mxu0  ;;  %v3487_v52 = vsel %vm3306_vm13, %v3433_v33, 0.0 }
 0x2da   : > { %3331 = vst.msk [vmem:[%s6460_s18 + $0xc0] sm:$0xff] %vm3306_vm13, %v3298_v63  ;;  %v3434_v12 = vmul.f32 %v3298_v63, %v3298_v63  ;;  %v3301_v54 = vadd.f32 %v6419_v53, %v3262_v55  ;;  %v3260_v25 = vadd.f32 %v3207_v13, %v2983_v9  ;;  %v2988_v50 = vadd.f32 %v4180_v3, %v6499_v10 }
 0x2db   : > { %v2943_v8 = vpop.f32.mrf.mxu1  ;;  %v3486_v24 = vadd.f32 %v3485_v28, %v3484_v41  ;;  %v3385_v51 = vadd.f32 %v3384_v1, %v3383_v14  ;;  %v3436_v59 = vmul.f32 %v3300_v15, %v3300_v15  ;;  %v3386_v18 = vsel %vm3306_vm13, %v3298_v63, 0.0  ;;  %v4217_v36 = vpop.f32.mrf.mxu0 }
 0x2dc   : > { %v2986_v48 = vadd.f32 %v2943_v8, %v6502_v22  ;;  %3334 = vst.msk [vmem:[%s6460_s18 + $0xd8] sm:$0xff] %vm3306_vm13, %v3301_v54  ;;  %v3299_v40 = vadd.f32 %v6419_v53, %v3260_v25  ;;  %v3265_v16 = vadd.f32 %v4216_v47, %v2988_v50  ;;  %v3489_v20 = vsel %vm3306_vm13, %v3434_v12, 0.0 }
 0x2dd   : > { %v4181_v37 = vpop.f32.mrf.mxu1  ;;  %v3387_v34 = vadd.f32 %v3386_v18, %v3385_v51  ;;  %v3488_v39 = vadd.f32 %v3487_v52, %v3486_v24  ;;  %v3437_v6 = vmul.f32 %v3301_v54, %v3301_v54  ;;  %v3493_v19 = vsel %vm3306_vm13, %v3436_v59, 0.0  ;;  %v3223_v31 = vpop.f32.mrf.mxu0 }
 0x2de   : > { %v3263_v10 = vadd.f32 %v3220_v5, %v2986_v48  ;;  %v2989_v26 = vadd.f32 %v4181_v37, %v6508_v61  ;;  %3332 = vst.msk [vmem:[%s6460_s18 + $0xc8] sm:$0xff] %vm3306_vm13, %v3299_v40  ;;  %v3388_v22 = vsel %vm3306_vm13, %v3299_v40, 0.0  ;;  %v3435_v32 = vmul.f32 %v3299_v40, %v3299_v40 }
 0x2df   : > { %v6661_v46 = vadd.f32 %v6419_v53, %v3265_v16  ;;  %v2946_v60 = vpop.f32.mrf.mxu1  ;;  %v3490_v7 = vadd.f32 %v3489_v20, %v3488_v39  ;;  %v3389_v30 = vadd.f32 %v3388_v22, %v3387_v34  ;;  %v3390_v61 = vsel %vm3306_vm13, %v3300_v15, 0.0 }
 0x2e0   : > { %v3302_v27 = vadd.f32 %v6419_v53, %v3263_v10  ;;  %v3266_v44 = vadd.f32 %v4217_v36, %v2989_v26  ;;  %v3491_v57 = vsel %vm3306_vm13, %v3435_v32, 0.0  ;;  %v2987_v21 = vadd.f32 %v2946_v60, %v2710_v43 }
 0x2e1   : > { %3337 = vst.msk [vmem:[%s6460_s18 + $0xf0] sm:$0xff] %vm3306_vm13, %v6661_v46  ;;  %v3391_v4 = vadd.f32 %v3390_v61, %v3389_v30  ;;  %v3492_v17 = vadd.f32 %v3491_v57, %v3490_v7  ;;  %v3392_v49 = vsel %vm3306_vm13, %v3301_v54, 0.0  ;;  %v3495_v38 = vsel %vm3306_vm13, %v3437_v6, 0.0 }
 0x2e2   : > { %3335 = vst.msk [vmem:[%s6460_s18 + $0xe0] sm:$0xff] %vm3306_vm13, %v3302_v27  ;;  %v3438_v62 = vmul.f32 %v3302_v27, %v3302_v27  ;;  %v3305_v13 = vadd.f32 %v6419_v53, %v3266_v44  ;;  %v3264_v29 = vadd.f32 %v3223_v31, %v2987_v21  ;;  %v3394_v33 = vsel %vm3306_vm13, %v3302_v27, 0.0 }
 0x2e3   : > { %v3494_v35 = vadd.f32 %v3493_v19, %v3492_v17  ;;  %v3393_v42 = vadd.f32 %v3392_v49, %v3391_v4  ;;  %v3440_v2 = vmul.f32 %v6661_v46, %v6661_v46 }
 0x2e4   : > { %3338 = vst.msk [vmem:[%s6460_s18 + $0xf8] sm:$0xff] %vm3306_vm13, %v3305_v13  ;;  %v3303_v45 = vadd.f32 %v6419_v53, %v3264_v29  ;;  %v3497_v47 = vsel %vm3306_vm13, %v3438_v62, 0.0 }
 0x2e5   : > { %v3395_v0 = vadd.f32 %v3394_v33, %v3393_v42  ;;  %v3496_v15 = vadd.f32 %v3495_v38, %v3494_v35 }
 0x2e6   : > { %3336 = vst.msk [vmem:[%s6460_s18 + $0xe8] sm:$0xff] %vm3306_vm13, %v3303_v45  ;;  %v3396_v58 = vsel %vm3306_vm13, %v3303_v45, 0.0  ;;  %v3439_v11 = vmul.f32 %v3303_v45, %v3303_v45 }
 0x2e7   : > { %v3498_v63 = vadd.f32 %v3497_v47, %v3496_v15  ;;  %v3397_v55 = vadd.f32 %v3396_v58, %v3395_v0 }
 0x2e8   : > { %4314 = shalt.err (!%p4311_p3)
}
 0x2e9   : > { %s4315_s15 = scalar_lea.hbm %s6679_s21, 4096  ;;  %s4319_s19 = scalar_lea.hbm %s6816_s5, 8192 }
 0x2ea   : > { %p4316_p4 = scmp.ne.s32.totalorder %s6679_s21, %s4315_s15  ;;  %p4320_p9 = scmp.lt.s32.totalorder %s6679_s21, %s6816_s5 }
 0x2eb   : > { %p4321_p10 = scmp.lt.s32.totalorder %s4319_s19, %s4315_s15 }
 0x2ec   : > { %p4317_p7 = pnand %p4316_p4, %p4509_p5 }
 0x2ed   : > { %p4322_p11 = por %p4321_p10, %p4320_p9 }
 0x2ee   : > { %p4318_p8 = pneg %p4317_p7 }
 0x2f0   : > { %p4323_p12 = pnand %p4322_p11, %p4318_p8 }
 0x2f2   : > { %4326 = shalt.err (!%p4323_p12)
}
 0x2f3   : > { %s4426_s30 = smov 128   ;;  %v3398_v53 = vsel %vm3306_vm13, %v6661_v46, 0.0  ;;  %v3441_v56 = vmul.f32 %v3305_v13, %v3305_v13  ;;  %v3499_v23 = vsel %vm3306_vm13, %v3439_v11, 0.0  ;;  %v3501_v43 = vsel %vm3306_vm13, %v3440_v2, 0.0  ;;  %s287_s11 = scalar_lea.vmem [#allocation6], %s6376_s13 }
 0x2f4   : > { %4231 = dma.vmem_to_hbm [thread:$0]  (%p4509_p5), %s6686_s22, 4096, %s6679_s21, %s3513_s29, %s4426_s30, %s4426_s30, %s4419_s16   ;;  %v3399_v9 = vadd.f32 %v3398_v53, %v3397_v55  ;;  %v3500_v3 = vadd.f32 %v3499_v23, %v3498_v63  ;;  %v3400_v28 = vsel %vm3306_vm13, %v3305_v13, 0.0  ;;  %vm3408_vm14 = vcmask 516096  }
 0x2f5   : > { %v3503_v41 = vsel %vm3306_vm13, %v3441_v56, 0.0  ;;  %s3517_s16 = sand.u32 1, %s4490_s26   ;;  %s3835_s22 = sshll.u32 %s4490_s26, 4 }
 0x2f6   : > { %v3502_v1 = vadd.f32 %v3501_v43, %v3500_v3  ;;  %v3401_v14 = vadd.f32 %v3400_v28, %v3399_v9  ;;  %s281_s21 = scalar_lea.vmem [#allocation4], %s6376_s13  ;;  %s3563_s12 = sshll.u32 %s287_s11, 4  ;;  %s6743_s12 = int_to_ptr.vmem [resolvable:$true] %s3563_s12 }
 0x2f7   : > { %s3550_s29 = sshll.u32 %s281_s21, 4  ;;  %s6733_s17 = scalar_lea.hbm %s6817_s6, %s3835_s22  ;;  %s6735_s29 = int_to_ptr.vmem [resolvable:$true] %s3550_s29 }
 0x2f8   : > { %v3504_v5 = vadd.f32 %v3503_v41, %v3502_v1  ;;  %v3402_v12 = vrot.slane %v3401_v14, 4  ;;  %s6741_s19 = scalar_lea.hbm %s6818_s7, %s3835_s22  ;;  %s6745_s23 = scalar_lea.sflag [#allocation5], %s3517_s16 }
 0x2f9   : > { %s4327_s20 = scalar_lea.vmem %s6735_s29, 16  ;;  %s4427_s30 = smov [#allocation4]  }
 0x2fa   : > { %v3403_v54 = vadd.f32 %v3402_v12, %v3401_v14  ;;  %v3505_v25 = vrot.slane %v3504_v5, 4  ;;  %p4328_p13 = scmp.ne.s32.totalorder %s6735_s29, %s4327_s20  ;;  %s4331_s14 = sshll.u32 %s4427_s30, 4  ;;  %s4332_s14 = int_to_ptr.vmem [resolvable:$false] %s4331_s14 }
 0x2fb   : > { %s4333_s15 = scalar_lea.vmem %s4332_s14, 32  ;;  %p4334_p2 = scmp.lt.s32.totalorder %s6735_s29, %s4332_s14 }
 0x2fc   : > { %v3404_v50 = vrot.slane %v3403_v54, 2  ;;  %v3506_v8 = vadd.f32 %v3505_v25, %v3504_v5  ;;  %p4329_p0 = pnand %p4328_p13, %p4509_p5  ;;  %p4335_p3 = scmp.lt.s32.totalorder %s4333_s15, %s4327_s20 }
 0x2fe   : > { %v3405_v52 = vadd.f32 %v3404_v50, %v3403_v54  ;;  %v3507_v24 = vrot.slane %v3506_v8, 2  ;;  %p4330_p1 = pneg %p4329_p0  ;;  %p4336_p4 = por %p4335_p3, %p4334_p2 }
 0x300   : > { %v3406_v51 = vrot.slane %v3405_v52, 1  ;;  %v3508_v48 = vadd.f32 %v3507_v24, %v3506_v8  ;;  %p4337_p7 = pnand %p4336_p4, %p4330_p1 }
 0x302   : > { %v3407_v59 = vadd.f32 %v3406_v51, %v3405_v52  ;;  %v3509_v18 = vrot.slane %v3508_v48, 1 }
 0x304   : > { %3409 = vst.msk [vmem:[%s281_s21] sm:$0x1] %vm3408_vm14, %v3407_v59  ;;  %v3510_v40 = vadd.f32 %v3509_v18, %v3508_v48 }
 0x305   : > { %4340 = shalt.err (!%p4337_p7)
}
 0x306   : > { %s4341_s16 = scalar_lea.hbm %s6733_s17, 16  ;;  %s4345_s26 = scalar_lea.hbm %s6817_s6, 32 }
 0x307   : > { %p4342_p8 = scmp.ne.s32.totalorder %s6733_s17, %s4341_s16  ;;  %p4346_p11 = scmp.lt.s32.totalorder %s6733_s17, %s6817_s6 }
 0x308   : > { %p4347_p12 = scmp.lt.s32.totalorder %s4345_s26, %s4341_s16 }
 0x309   : > { %p4343_p9 = pnand %p4342_p8, %p4509_p5 }
 0x30a   : > { %p4348_p13 = por %p4347_p12, %p4346_p11 }
 0x30b   : > { %p4344_p10 = pneg %p4343_p9 }
 0x30d   : > { %p4349_p0 = pnand %p4348_p13, %p4344_p10 }
 0x30f   : > { %4352 = shalt.err (!%p4349_p0)
}
 0x310   : > { %4232 = dma.vmem_to_hbm [thread:$0]  (%p4509_p5), %s6735_s29, 16, %s6733_s17, %s6745_s23   ;;  %3511 = vst.msk [vmem:[%s287_s11] sm:$0x1] %vm3408_vm14, %v3510_v40 }
 0x311   : > { %s4353_s20 = scalar_lea.vmem %s6743_s12, 16  ;;  %s4428_s14 = smov [#allocation6]  }
 0x312   : > { %p4354_p1 = scmp.ne.s32.totalorder %s6743_s12, %s4353_s20  ;;  %s4357_s15 = sshll.u32 %s4428_s14, 4  ;;  %s4358_s15 = int_to_ptr.vmem [resolvable:$false] %s4357_s15 }
 0x313   : > { %s4359_s16 = scalar_lea.vmem %s4358_s15, 32  ;;  %p4360_p4 = scmp.lt.s32.totalorder %s6743_s12, %s4358_s15 }
 0x314   : > { %p4355_p2 = pnand %p4354_p1, %p4509_p5  ;;  %p4361_p7 = scmp.lt.s32.totalorder %s4359_s16, %s4353_s20 }
 0x316   : > { %p4356_p3 = pneg %p4355_p2  ;;  %p4362_p8 = por %p4361_p7, %p4360_p4 }
 0x318   : > { %p4363_p9 = pnand %p4362_p8, %p4356_p3 }
 0x31a   : > { %4366 = shalt.err (!%p4363_p9)
}
 0x31b   : > { %s4367_s13 = scalar_lea.hbm %s6741_s19, 16  ;;  %s4371_s17 = scalar_lea.hbm %s6818_s7, 32 }
 0x31c   : > { %p4368_p10 = scmp.ne.s32.totalorder %s6741_s19, %s4367_s13  ;;  %p4372_p13 = scmp.lt.s32.totalorder %s6741_s19, %s6818_s7 }
 0x31d   : > { %p4373_p0 = scmp.lt.s32.totalorder %s4371_s17, %s4367_s13 }
 0x31e   : > { %p4369_p11 = pnand %p4368_p10, %p4509_p5 }
 0x31f   : > { %p4374_p1 = por %p4373_p0, %p4372_p13 }
 0x320   : > { %p4370_p12 = pneg %p4369_p11 }
 0x322   : > { %p4375_p2 = pnand %p4374_p1, %p4370_p12 }
 0x324   : > { %4378 = shalt.err (!%p4375_p2)
}
 0x325   : > { %4233 = dma.vmem_to_hbm [thread:$0]  (%p4509_p5), %s6743_s12, 16, %s6741_s19, %s6745_s23  }
 0x326 PF: > { %p4247_p3 = scmp.ge.s32.totalorder %s4417_s25, 2  ;;  %s3575_s26 = sand.u32 1, %s4405_s1  }
 0x327   : > { %s3576_s18 = scalar_lea.sflag [#allocation3], %s3575_s26 }
 0x328   : > { %p4238_p4 = pnand %p4247_p3, %p4513_p6 }
 0x32a   : > { %p4239_p7 = pneg %p4238_p4 }
 0x32c   : > { %4396 = dma.done.wait (%p4239_p7), %s3576_s18, 4096  }
 0x32d   : > { %4398 = vsyncadd (%p4239_p7), %s3576_s18, 4294963200  ;;  %s3584_s30 = sand.u32 1, %s3675_s27  }
 0x32e   : > { %s3585_s9 = scalar_lea.sflag [#allocation5], %s3584_s30 }
 0x32f   : > { %4400 = dma.done.wait (%p4239_p7), %s3585_s9, 32  }
 0x330   : > { %4402 = vsyncadd (%p4239_p7), %s3585_s9, 4294967264  ;;  %p21_p5 = scmp.ge.s32.totalorder %s4494_s28, 4   ;;  %s6902_s1 = smov %s4409_s2 }
 0x331   : > { %s6903_s2 = smov %s4413_s24  ;;  %s6904_s24 = smov %s4507_s8 }
 0x332   : > { %s6905_s25 = smov %s4494_s28  ;;  %23 = sbr.rel (!%p21_p5) target bundleno = 5 (0x5), region = 113 }
 0x337   :  { %3597 = vsyncpa [#allocation3], 1 }
 0x338   :  { %3599 = vsyncpa [#allocation3 + $0x1], 1 }
 0x339   :  { %3600 = vsyncpa [#allocation5], 1 }
 0x33a   :  { %3602 = vsyncpa [#allocation5 + $0x1], 1 }

</bundles_post_ra>
